<compile_context>
chip_gen: v7x
topology: tpu7x:2x2x1
jax: 0.10.0
libtpu: 0.0.40
codegen_flags: <defaults>
</compile_context>

<pallas_src>
import numpy as np

import jax
import jax.numpy as jnp
from jax import lax
from jax.experimental import pallas as pl
from jax.experimental.pallas import tpu as pltpu

BN_EPS = 1e-5
C_PAD = 128          # every channel/feature dim is zero-padded to this width


# ---------------------------------------------------------------------------
# geometry helpers + host-side constant builders
# ---------------------------------------------------------------------------
def _out_size(s, k, stride, pad):
    return (s + 2 * pad - k) // stride + 1


def _round_up(x, m):
    return (x + m - 1) // m * m


def _gather_matrix(n, h_in, w_in, k, stride, pad, rout_pad, rin_pad):
    """0/1 matrix G of shape [k*k*rout_pad, rin_pad].

    Row t*rout_pad + (b*Ho*Wo + oh*Wo + ow) has a single 1 at the column of
    input element (b, ih, iw) read by conv tap t=(ki,kj) for output (oh,ow);
    rows whose tap falls in the zero-padding region (or row-padding rows) are
    all-zero, so G @ Y reproduces im2col (incl. conv zero padding) exactly.
    """
    ho = _out_size(h_in, k, stride, pad)
    wo = _out_size(w_in, k, stride, pad)
    g = np.zeros((k * k * rout_pad, rin_pad), np.float32)
    for t in range(k * k):
        ki, kj = divmod(t, k)
        for b in range(n):
            for oh in range(ho):
                ih = oh * stride - pad + ki
                if not (0 <= ih < h_in):
                    continue
                for ow in range(wo):
                    iw = ow * stride - pad + kj
                    if not (0 <= iw < w_in):
                        continue
                    row = t * rout_pad + b * ho * wo + oh * wo + ow
                    col = b * h_in * w_in + ih * w_in + iw
                    g[row, col] = 1.0
    return g


def _pack_w_first(w):
    """[Cout, Cin, k, k] -> [C_PAD, C_PAD]; rows = (Cin,ki,kj) flat (im2col K)."""
    cout = w.shape[0]
    w2d = np.asarray(w, np.float32).reshape(cout, -1).T       # [Cin*k*k, Cout]
    out = np.zeros((C_PAD, C_PAD), np.float32)
    out[: w2d.shape[0], :cout] = w2d
    return out


def _pack_w_taps(w):
    """[Cout, Cin, k, k] -> [k*k*C_PAD, C_PAD]; tap-t block = W[:,:,ki,kj].T."""
    cout, cin, k, _ = w.shape
    wn = np.asarray(w, np.float32)
    out = np.zeros((k * k * C_PAD, C_PAD), np.float32)
    for t in range(k * k):
        ki, kj = divmod(t, k)
        out[t * C_PAD: t * C_PAD + cin, :cout] = wn[:, :, ki, kj].T
    return out


# ---------------------------------------------------------------------------
# fused in-kernel epilogue:  +bias -> ReLU -> BatchNorm2d (batch statistics)
# ---------------------------------------------------------------------------
def _bias_relu_bn(y, b, gamma, beta, rows_valid):
    y = jnp.maximum(y + b, 0.0)                               # bias + ReLU
    rows_pad = y.shape[0]
    if rows_valid != rows_pad:                                # mask padded rows
        rmask = lax.broadcasted_iota(jnp.int32, y.shape, 0) < rows_valid
        ym = jnp.where(rmask, y, 0.0)
    else:
        ym = y
    inv_r = 1.0 / float(rows_valid)
    mean = jnp.sum(ym, axis=0, keepdims=True) * inv_r         # [1, C_PAD]
    ex2 = jnp.sum(ym * ym, axis=0, keepdims=True) * inv_r
    var = jnp.maximum(ex2 - mean * mean, 0.0)                 # guard cancellation
    scale = gamma * lax.rsqrt(var + BN_EPS)                   # folded gamma/rsqrt
    shift = beta - mean * scale
    return y * scale + shift


# ---------------------------------------------------------------------------
# the single fused encoder kernel
# ---------------------------------------------------------------------------
def _make_kernel(r1, r2p, r2, r3p, r3, t2, t3):
    def kernel(cols1_ref, w1_ref, g2_ref, w2_ref, g3_ref, w3_ref, pp_ref,
               out_ref):
        pp = pp_ref[...]                                      # [16, C_PAD] f32

        # -------- layer 1: Conv(5, s2, p2) as one im2col matmul --------
        y = jnp.dot(cols1_ref[...], w1_ref[...],
                    preferred_element_type=jnp.float32)       # [r1, C_PAD]
        y1 = _bias_relu_bn(y, pp[0:1, :], pp[1:2, :], pp[2:3, :], r1)
        y1b = y1.astype(jnp.bfloat16)

        # -------- layer 2: Conv(5, s2, p2), window gather via 0/1 matmuls ----
        acc = jnp.zeros((r2p, C_PAD), jnp.float32)
        for t in range(t2):
            gt = g2_ref[t * r2p:(t + 1) * r2p, :]             # [r2p, r1] bf16
            zt = jnp.dot(gt, y1b, preferred_element_type=jnp.float32)
            acc = acc + jnp.dot(zt.astype(jnp.bfloat16),
                                w2_ref[t * C_PAD:(t + 1) * C_PAD, :],
                                preferred_element_type=jnp.float32)
        y2 = _bias_relu_bn(acc, pp[3:4, :], pp[4:5, :], pp[5:6, :], r2)
        y2b = y2.astype(jnp.bfloat16)

        # -------- layer 3: Conv(3, s2, p0) --------
        acc = jnp.zeros((r3p, C_PAD), jnp.float32)
        for t in range(t3):
            gt = g3_ref[t * r3p:(t + 1) * r3p, :]             # [r3p, r2p] bf16
            zt = jnp.dot(gt, y2b, preferred_element_type=jnp.float32)
            acc = acc + jnp.dot(zt.astype(jnp.bfloat16),
                                w3_ref[t * C_PAD:(t + 1) * C_PAD, :],
                                preferred_element_type=jnp.float32)
        out_ref[...] = _bias_relu_bn(acc, pp[6:7, :], pp[7:8, :], pp[8:9, :],
                                     r3)
    return kernel


# ---------------------------------------------------------------------------
# wrapper: parameter packing + jitted forward
# ---------------------------------------------------------------------------
def make_encoder_forward(params, n, in_channels, height, width):
    """Returns a jitted forward: x [N, Cin, H, W] f32 (NCHW) -> [N, C3, 1, 1]."""
    (w1, b1, ga1, be1), (w2, b2, ga2, be2), (w3, b3, ga3, be3) = params
    c1, c2, c3 = int(w1.shape[0]), int(w2.shape[0]), int(w3.shape[0])
    assert in_channels * 25 <= C_PAD and max(c1, c2, c3) <= C_PAD

    # layer geometry (Conv k5 s2 p2 -> k5 s2 p2 -> k3 s2 p0)
    h1, wi1 = _out_size(height, 5, 2, 2), _out_size(width, 5, 2, 2)
    h2, wi2 = _out_size(h1, 5, 2, 2), _out_size(wi1, 5, 2, 2)
    h3, wi3 = _out_size(h2, 3, 2, 0), _out_size(wi2, 3, 2, 0)
    r1 = n * h1 * wi1
    r2, r2p = n * h2 * wi2, _round_up(n * h2 * wi2, 8)
    r3, r3p = n * h3 * wi3, _round_up(n * h3 * wi3, 8)
    assert r1 % 8 == 0
    t2, t3 = 25, 9

    # constant 0/1 window-gather matrices (im2col-as-matmul, incl. zero pad)
    g2 = jnp.asarray(_gather_matrix(n, h1, wi1, 5, 2, 2, r2p, r1),
                     jnp.bfloat16)
    g3 = jnp.asarray(_gather_matrix(n, h2, wi2, 3, 2, 0, r3p, r2p),
                     jnp.bfloat16)

    # lane-dense zero-padded weights (bf16 for MXU) + f32 bias/gamma/beta pack
    w1p = jnp.asarray(_pack_w_first(w1), jnp.bfloat16)        # [C_PAD, C_PAD]
    w2p = jnp.asarray(_pack_w_taps(w2), jnp.bfloat16)         # [25*C_PAD, C_PAD]
    w3p = jnp.asarray(_pack_w_taps(w3), jnp.bfloat16)         # [ 9*C_PAD, C_PAD]
    pp = np.zeros((16, C_PAD), np.float32)                    # padded slots = 0
    for row, (vec, c) in enumerate([(b1, c1), (ga1, c1), (be1, c1),
                                    (b2, c2), (ga2, c2), (be2, c2),
                                    (b3, c3), (ga3, c3), (be3, c3)]):
        pp[row, :c] = np.asarray(vec, np.float32)
    pp = jnp.asarray(pp)

    vmem = pl.BlockSpec(memory_space=pltpu.MemorySpace.VMEM)
    fused = pl.pallas_call(
        _make_kernel(r1, r2p, r2, r3p, r3, t2, t3),
        out_shape=jax.ShapeDtypeStruct((r3p, C_PAD), jnp.float32),
        in_specs=[vmem] * 7,
        out_specs=vmem,
    )

    @jax.jit
    def forward(x):
        # im2col only for layer 1 (it reads the HBM input anyway); layers 2&3
        # gather from VMEM-resident intermediates inside the single kernel.
        cols = lax.conv_general_dilated_patches(
            x, filter_shape=(5, 5), window_strides=(2, 2),
            padding=((2, 2), (2, 2)))                         # [N, Cin*25, h1, wi1]
        cols = jnp.moveaxis(cols, 1, 3).reshape(r1, in_channels * 25)
        cols = jnp.pad(cols, ((0, 0), (0, C_PAD - in_channels * 25)))
        out = fused(cols.astype(jnp.bfloat16), w1p, g2, w2p, g3, w3p, pp)
        y = out[:r3, :c3].reshape(n, h3, wi3, c3)             # drop padding
        return jnp.transpose(y, (0, 3, 1, 2))                 # back to NCHW once
    return forward


# ---------------------------------------------------------------------------
# deterministic parameter init (fresh PyTorch-like: BN gamma=1, beta=0)
# ---------------------------------------------------------------------------
def init_encoder_params(key, in_channels, hidden_layer_sizes):
    layer_defs = [(in_channels, hidden_layer_sizes[0], 5),
                  (hidden_layer_sizes[0], hidden_layer_sizes[1], 5),
                  (hidden_layer_sizes[1], hidden_layer_sizes[2], 3)]
    params = []
    for cin, cout, k in layer_defs:
        key, k_w, k_b = jax.random.split(key, 3)
        bound = 1.0 / np.sqrt(cin * k * k)
        w = jax.random.uniform(k_w, (cout, cin, k, k), jnp.float32,
                               -bound, bound)
        b = jax.random.uniform(k_b, (cout,), jnp.float32, -bound, bound)
        params.append((w, b, jnp.ones((cout,), jnp.float32),
                       jnp.zeros((cout,), jnp.float32)))
    return params


# ---------------------------------------------------------------------------
# pure-JAX reference (bf16-rounded conv inputs to mirror the kernel's MXU path)
# ---------------------------------------------------------------------------
def _reference_forward(x, params):
    def block(x, w, b, gamma, beta, stride, pad):
        xb = x.astype(jnp.bfloat16).astype(jnp.float32)
        wb = w.astype(jnp.bfloat16).astype(jnp.float32)
        y = lax.conv_general_dilated(
            xb, wb, window_strides=(stride, stride),
            padding=((pad, pad), (pad, pad)),
            dimension_numbers=("NCHW", "OIHW", "NCHW"))
        y = jnp.maximum(y + b[None, :, None, None], 0.0)
        mean = jnp.mean(y, axis=(0, 2, 3), keepdims=True)
        var = jnp.mean((y - mean) ** 2, axis=(0, 2, 3), keepdims=True)
        yh = (y - mean) * lax.rsqrt(var + BN_EPS)
        return yh * gamma[None, :, None, None] + beta[None, :, None, None]

    y = block(x, *params[0], 2, 2)
    y = block(y, *params[1], 2, 2)
    y = block(y, *params[2], 2, 0)
    return y


if __name__ == "__main__":
    key = jax.random.PRNGKey(0)
    k_x, k_p = jax.random.split(key)

    in_channels = 1
    hidden = (8, 16, 32)
    n, height, width = 2, 16, 16                   # 16x16 -> 8x8 -> 4x4 -> 1x1
    x = jax.random.normal(k_x, (n, in_channels, height, width), jnp.float32)
    params = init_encoder_params(k_p, in_channels, hidden)

    forward = make_encoder_forward(params, n, in_channels, height, width)
    out = jax.block_until_ready(forward(x))

    assert out.shape == (n, hidden[2], 1, 1), out.shape
    assert bool(jnp.all(jnp.isfinite(out)))

    ref = _reference_forward(x, params)
    err = float(jnp.mean(jnp.abs(out - ref)))
    assert err < 3e-2, f"mean |err| vs reference = {err}"
    print("KERNEL_OK")
</pallas_src>

<mosaic_0001>
module attributes {stable_mosaic.version = 11 : i64} {
  func.func @kernel(%arg0: memref<128x128xbf16, #tpu.memory_space<vmem>>, %arg1: memref<128x128xbf16, #tpu.memory_space<vmem>>, %arg2: memref<800x128xbf16, #tpu.memory_space<vmem>>, %arg3: memref<3200x128xbf16, #tpu.memory_space<vmem>>, %arg4: memref<72x32xbf16, #tpu.memory_space<vmem>>, %arg5: memref<1152x128xbf16, #tpu.memory_space<vmem>>, %arg6: memref<16x128xf32, #tpu.memory_space<vmem>>, %arg7: memref<8x128xf32, #tpu.memory_space<vmem>>) attributes {dimension_semantics = [], scalar_prefetch = 0 : i64, scratch_operands = 0 : i64, tpu.core_type = #tpu.core_type<tc>} {
    %c0 = arith.constant 0 : index
    %c0_0 = arith.constant 0 : index
    %0 = vector.load %arg6[%c0, %c0_0] : memref<16x128xf32, #tpu.memory_space<vmem>>, vector<16x128xf32>
    %c0_1 = arith.constant 0 : index
    %c0_2 = arith.constant 0 : index
    %1 = vector.load %arg0[%c0_1, %c0_2] : memref<128x128xbf16, #tpu.memory_space<vmem>>, vector<128x128xbf16>
    %c0_3 = arith.constant 0 : index
    %c0_4 = arith.constant 0 : index
    %2 = vector.load %arg1[%c0_3, %c0_4] : memref<128x128xbf16, #tpu.memory_space<vmem>>, vector<128x128xbf16>
    %cst = arith.constant dense<0.000000e+00> : vector<128x128xf32>
    %3 = tpu.matmul %1, %2, %cst {dimension_numbers = #tpu.dot_dimension_numbers<[1], [0], [0], [1], [0, 0, 1, 1], [], []>} : vector<128x128xbf16>, vector<128x128xbf16>, vector<128x128xf32> -> vector<128x128xf32>
    %4 = vector.extract_strided_slice %0 {offsets = [0, 0], sizes = [1, 128], strides = [1, 1]} : vector<16x128xf32> to vector<1x128xf32>
    %5 = vector.extract_strided_slice %0 {offsets = [1, 0], sizes = [1, 128], strides = [1, 1]} : vector<16x128xf32> to vector<1x128xf32>
    %6 = vector.extract_strided_slice %0 {offsets = [2, 0], sizes = [1, 128], strides = [1, 1]} : vector<16x128xf32> to vector<1x128xf32>
    %7 = vector.broadcast %4 : vector<1x128xf32> to vector<128x128xf32>
    %8 = arith.addf %3, %7 : vector<128x128xf32>
    %cst_5 = arith.constant 0.000000e+00 : f32
    %9 = vector.broadcast %cst_5 : f32 to vector<128x128xf32>
    %10 = arith.maximumf %8, %9 : vector<128x128xf32>
    %cst_6 = arith.constant dense<0.000000e+00> : vector<128xf32>
    %11 = vector.multi_reduction <add>, %10, %cst_6 [0] : vector<128x128xf32> to vector<128xf32>
    %12 = vector.shape_cast %11 : vector<128xf32> to vector<1x128xf32>
    %cst_7 = arith.constant 7.812500e-03 : f32
    %13 = vector.broadcast %cst_7 : f32 to vector<1x128xf32>
    %14 = arith.mulf %12, %13 : vector<1x128xf32>
    %15 = arith.mulf %10, %10 : vector<128x128xf32>
    %cst_8 = arith.constant dense<0.000000e+00> : vector<128xf32>
    %16 = vector.multi_reduction <add>, %15, %cst_8 [0] : vector<128x128xf32> to vector<128xf32>
    %17 = vector.shape_cast %16 : vector<128xf32> to vector<1x128xf32>
    %cst_9 = arith.constant 7.812500e-03 : f32
    %18 = vector.broadcast %cst_9 : f32 to vector<1x128xf32>
    %19 = arith.mulf %17, %18 : vector<1x128xf32>
    %20 = arith.mulf %14, %14 : vector<1x128xf32>
    %21 = arith.subf %19, %20 : vector<1x128xf32>
    %cst_10 = arith.constant 0.000000e+00 : f32
    %22 = vector.broadcast %cst_10 : f32 to vector<1x128xf32>
    %23 = arith.maximumf %21, %22 : vector<1x128xf32>
    %cst_11 = arith.constant 9.99999974E-6 : f32
    %24 = vector.broadcast %cst_11 : f32 to vector<1x128xf32>
    %25 = arith.addf %23, %24 : vector<1x128xf32>
    %26 = math.rsqrt %25 : vector<1x128xf32>
    %27 = arith.mulf %5, %26 : vector<1x128xf32>
    %28 = arith.mulf %14, %27 : vector<1x128xf32>
    %29 = arith.subf %6, %28 : vector<1x128xf32>
    %30 = vector.broadcast %27 : vector<1x128xf32> to vector<128x128xf32>
    %31 = arith.mulf %10, %30 : vector<128x128xf32>
    %32 = vector.broadcast %29 : vector<1x128xf32> to vector<128x128xf32>
    %33 = arith.addf %31, %32 : vector<128x128xf32>
    %34 = arith.truncf %33 : vector<128x128xf32> to vector<128x128xbf16>
    %cst_12 = arith.constant 0.000000e+00 : f32
    %35 = vector.broadcast %cst_12 : f32 to vector<32x128xf32>
    %c0_13 = arith.constant 0 : index
    %c0_14 = arith.constant 0 : index
    %36 = vector.load %arg2[%c0_13, %c0_14] : memref<800x128xbf16, #tpu.memory_space<vmem>>, vector<32x128xbf16>
    %cst_15 = arith.constant dense<0.000000e+00> : vector<32x128xf32>
    %37 = tpu.matmul %36, %34, %cst_15 {dimension_numbers = #tpu.dot_dimension_numbers<[1], [0], [0], [1], [0, 0, 1, 1], [], []>} : vector<32x128xbf16>, vector<128x128xbf16>, vector<32x128xf32> -> vector<32x128xf32>
    %38 = arith.truncf %37 : vector<32x128xf32> to vector<32x128xbf16>
    %c0_16 = arith.constant 0 : index
    %c0_17 = arith.constant 0 : index
    %39 = vector.load %arg3[%c0_16, %c0_17] : memref<3200x128xbf16, #tpu.memory_space<vmem>>, vector<128x128xbf16>
    %cst_18 = arith.constant dense<0.000000e+00> : vector<32x128xf32>
    %40 = tpu.matmul %38, %39, %cst_18 {dimension_numbers = #tpu.dot_dimension_numbers<[1], [0], [0], [1], [0, 0, 1, 1], [], []>} : vector<32x128xbf16>, vector<128x128xbf16>, vector<32x128xf32> -> vector<32x128xf32>
    %41 = arith.addf %35, %40 : vector<32x128xf32>
    %c32 = arith.constant 32 : index
    %c0_19 = arith.constant 0 : index
    %42 = vector.load %arg2[%c32, %c0_19] : memref<800x128xbf16, #tpu.memory_space<vmem>>, vector<32x128xbf16>
    %cst_20 = arith.constant dense<0.000000e+00> : vector<32x128xf32>
    %43 = tpu.matmul %42, %34, %cst_20 {dimension_numbers = #tpu.dot_dimension_numbers<[1], [0], [0], [1], [0, 0, 1, 1], [], []>} : vector<32x128xbf16>, vector<128x128xbf16>, vector<32x128xf32> -> vector<32x128xf32>
    %44 = arith.truncf %43 : vector<32x128xf32> to vector<32x128xbf16>
    %c128 = arith.constant 128 : index
    %c0_21 = arith.constant 0 : index
    %45 = vector.load %arg3[%c128, %c0_21] : memref<3200x128xbf16, #tpu.memory_space<vmem>>, vector<128x128xbf16>
    %cst_22 = arith.constant dense<0.000000e+00> : vector<32x128xf32>
    %46 = tpu.matmul %44, %45, %cst_22 {dimension_numbers = #tpu.dot_dimension_numbers<[1], [0], [0], [1], [0, 0, 1, 1], [], []>} : vector<32x128xbf16>, vector<128x128xbf16>, vector<32x128xf32> -> vector<32x128xf32>
    %47 = arith.addf %41, %46 : vector<32x128xf32>
    %c64 = arith.constant 64 : index
    %c0_23 = arith.constant 0 : index
    %48 = vector.load %arg2[%c64, %c0_23] : memref<800x128xbf16, #tpu.memory_space<vmem>>, vector<32x128xbf16>
    %cst_24 = arith.constant dense<0.000000e+00> : vector<32x128xf32>
    %49 = tpu.matmul %48, %34, %cst_24 {dimension_numbers = #tpu.dot_dimension_numbers<[1], [0], [0], [1], [0, 0, 1, 1], [], []>} : vector<32x128xbf16>, vector<128x128xbf16>, vector<32x128xf32> -> vector<32x128xf32>
    %50 = arith.truncf %49 : vector<32x128xf32> to vector<32x128xbf16>
    %c256 = arith.constant 256 : index
    %c0_25 = arith.constant 0 : index
    %51 = vector.load %arg3[%c256, %c0_25] : memref<3200x128xbf16, #tpu.memory_space<vmem>>, vector<128x128xbf16>
    %cst_26 = arith.constant dense<0.000000e+00> : vector<32x128xf32>
    %52 = tpu.matmul %50, %51, %cst_26 {dimension_numbers = #tpu.dot_dimension_numbers<[1], [0], [0], [1], [0, 0, 1, 1], [], []>} : vector<32x128xbf16>, vector<128x128xbf16>, vector<32x128xf32> -> vector<32x128xf32>
    %53 = arith.addf %47, %52 : vector<32x128xf32>
    %c96 = arith.constant 96 : index
    %c0_27 = arith.constant 0 : index
    %54 = vector.load %arg2[%c96, %c0_27] : memref<800x128xbf16, #tpu.memory_space<vmem>>, vector<32x128xbf16>
    %cst_28 = arith.constant dense<0.000000e+00> : vector<32x128xf32>
    %55 = tpu.matmul %54, %34, %cst_28 {dimension_numbers = #tpu.dot_dimension_numbers<[1], [0], [0], [1], [0, 0, 1, 1], [], []>} : vector<32x128xbf16>, vector<128x128xbf16>, vector<32x128xf32> -> vector<32x128xf32>
    %56 = arith.truncf %55 : vector<32x128xf32> to vector<32x128xbf16>
    %c384 = arith.constant 384 : index
    %c0_29 = arith.constant 0 : index
    %57 = vector.load %arg3[%c384, %c0_29] : memref<3200x128xbf16, #tpu.memory_space<vmem>>, vector<128x128xbf16>
    %cst_30 = arith.constant dense<0.000000e+00> : vector<32x128xf32>
    %58 = tpu.matmul %56, %57, %cst_30 {dimension_numbers = #tpu.dot_dimension_numbers<[1], [0], [0], [1], [0, 0, 1, 1], [], []>} : vector<32x128xbf16>, vector<128x128xbf16>, vector<32x128xf32> -> vector<32x128xf32>
    %59 = arith.addf %53, %58 : vector<32x128xf32>
    %c128_31 = arith.constant 128 : index
    %c0_32 = arith.constant 0 : index
    %60 = vector.load %arg2[%c128_31, %c0_32] : memref<800x128xbf16, #tpu.memory_space<vmem>>, vector<32x128xbf16>
    %cst_33 = arith.constant dense<0.000000e+00> : vector<32x128xf32>
    %61 = tpu.matmul %60, %34, %cst_33 {dimension_numbers = #tpu.dot_dimension_numbers<[1], [0], [0], [1], [0, 0, 1, 1], [], []>} : vector<32x128xbf16>, vector<128x128xbf16>, vector<32x128xf32> -> vector<32x128xf32>
    %62 = arith.truncf %61 : vector<32x128xf32> to vector<32x128xbf16>
    %c512 = arith.constant 512 : index
    %c0_34 = arith.constant 0 : index
    %63 = vector.load %arg3[%c512, %c0_34] : memref<3200x128xbf16, #tpu.memory_space<vmem>>, vector<128x128xbf16>
    %cst_35 = arith.constant dense<0.000000e+00> : vector<32x128xf32>
    %64 = tpu.matmul %62, %63, %cst_35 {dimension_numbers = #tpu.dot_dimension_numbers<[1], [0], [0], [1], [0, 0, 1, 1], [], []>} : vector<32x128xbf16>, vector<128x128xbf16>, vector<32x128xf32> -> vector<32x128xf32>
    %65 = arith.addf %59, %64 : vector<32x128xf32>
    %c160 = arith.constant 160 : index
    %c0_36 = arith.constant 0 : index
    %66 = vector.load %arg2[%c160, %c0_36] : memref<800x128xbf16, #tpu.memory_space<vmem>>, vector<32x128xbf16>
    %cst_37 = arith.constant dense<0.000000e+00> : vector<32x128xf32>
    %67 = tpu.matmul %66, %34, %cst_37 {dimension_numbers = #tpu.dot_dimension_numbers<[1], [0], [0], [1], [0, 0, 1, 1], [], []>} : vector<32x128xbf16>, vector<128x128xbf16>, vector<32x128xf32> -> vector<32x128xf32>
    %68 = arith.truncf %67 : vector<32x128xf32> to vector<32x128xbf16>
    %c640 = arith.constant 640 : index
    %c0_38 = arith.constant 0 : index
    %69 = vector.load %arg3[%c640, %c0_38] : memref<3200x128xbf16, #tpu.memory_space<vmem>>, vector<128x128xbf16>
    %cst_39 = arith.constant dense<0.000000e+00> : vector<32x128xf32>
    %70 = tpu.matmul %68, %69, %cst_39 {dimension_numbers = #tpu.dot_dimension_numbers<[1], [0], [0], [1], [0, 0, 1, 1], [], []>} : vector<32x128xbf16>, vector<128x128xbf16>, vector<32x128xf32> -> vector<32x128xf32>
    %71 = arith.addf %65, %70 : vector<32x128xf32>
    %c192 = arith.constant 192 : index
    %c0_40 = arith.constant 0 : index
    %72 = vector.load %arg2[%c192, %c0_40] : memref<800x128xbf16, #tpu.memory_space<vmem>>, vector<32x128xbf16>
    %cst_41 = arith.constant dense<0.000000e+00> : vector<32x128xf32>
    %73 = tpu.matmul %72, %34, %cst_41 {dimension_numbers = #tpu.dot_dimension_numbers<[1], [0], [0], [1], [0, 0, 1, 1], [], []>} : vector<32x128xbf16>, vector<128x128xbf16>, vector<32x128xf32> -> vector<32x128xf32>
    %74 = arith.truncf %73 : vector<32x128xf32> to vector<32x128xbf16>
    %c768 = arith.constant 768 : index
    %c0_42 = arith.constant 0 : index
    %75 = vector.load %arg3[%c768, %c0_42] : memref<3200x128xbf16, #tpu.memory_space<vmem>>, vector<128x128xbf16>
    %cst_43 = arith.constant dense<0.000000e+00> : vector<32x128xf32>
    %76 = tpu.matmul %74, %75, %cst_43 {dimension_numbers = #tpu.dot_dimension_numbers<[1], [0], [0], [1], [0, 0, 1, 1], [], []>} : vector<32x128xbf16>, vector<128x128xbf16>, vector<32x128xf32> -> vector<32x128xf32>
    %77 = arith.addf %71, %76 : vector<32x128xf32>
    %c224 = arith.constant 224 : index
    %c0_44 = arith.constant 0 : index
    %78 = vector.load %arg2[%c224, %c0_44] : memref<800x128xbf16, #tpu.memory_space<vmem>>, vector<32x128xbf16>
    %cst_45 = arith.constant dense<0.000000e+00> : vector<32x128xf32>
    %79 = tpu.matmul %78, %34, %cst_45 {dimension_numbers = #tpu.dot_dimension_numbers<[1], [0], [0], [1], [0, 0, 1, 1], [], []>} : vector<32x128xbf16>, vector<128x128xbf16>, vector<32x128xf32> -> vector<32x128xf32>
    %80 = arith.truncf %79 : vector<32x128xf32> to vector<32x128xbf16>
    %c896 = arith.constant 896 : index
    %c0_46 = arith.constant 0 : index
    %81 = vector.load %arg3[%c896, %c0_46] : memref<3200x128xbf16, #tpu.memory_space<vmem>>, vector<128x128xbf16>
    %cst_47 = arith.constant dense<0.000000e+00> : vector<32x128xf32>
    %82 = tpu.matmul %80, %81, %cst_47 {dimension_numbers = #tpu.dot_dimension_numbers<[1], [0], [0], [1], [0, 0, 1, 1], [], []>} : vector<32x128xbf16>, vector<128x128xbf16>, vector<32x128xf32> -> vector<32x128xf32>
    %83 = arith.addf %77, %82 : vector<32x128xf32>
    %c256_48 = arith.constant 256 : index
    %c0_49 = arith.constant 0 : index
    %84 = vector.load %arg2[%c256_48, %c0_49] : memref<800x128xbf16, #tpu.memory_space<vmem>>, vector<32x128xbf16>
    %cst_50 = arith.constant dense<0.000000e+00> : vector<32x128xf32>
    %85 = tpu.matmul %84, %34, %cst_50 {dimension_numbers = #tpu.dot_dimension_numbers<[1], [0], [0], [1], [0, 0, 1, 1], [], []>} : vector<32x128xbf16>, vector<128x128xbf16>, vector<32x128xf32> -> vector<32x128xf32>
    %86 = arith.truncf %85 : vector<32x128xf32> to vector<32x128xbf16>
    %c1024 = arith.constant 1024 : index
    %c0_51 = arith.constant 0 : index
    %87 = vector.load %arg3[%c1024, %c0_51] : memref<3200x128xbf16, #tpu.memory_space<vmem>>, vector<128x128xbf16>
    %cst_52 = arith.constant dense<0.000000e+00> : vector<32x128xf32>
    %88 = tpu.matmul %86, %87, %cst_52 {dimension_numbers = #tpu.dot_dimension_numbers<[1], [0], [0], [1], [0, 0, 1, 1], [], []>} : vector<32x128xbf16>, vector<128x128xbf16>, vector<32x128xf32> -> vector<32x128xf32>
    %89 = arith.addf %83, %88 : vector<32x128xf32>
    %c288 = arith.constant 288 : index
    %c0_53 = arith.constant 0 : index
    %90 = vector.load %arg2[%c288, %c0_53] : memref<800x128xbf16, #tpu.memory_space<vmem>>, vector<32x128xbf16>
    %cst_54 = arith.constant dense<0.000000e+00> : vector<32x128xf32>
    %91 = tpu.matmul %90, %34, %cst_54 {dimension_numbers = #tpu.dot_dimension_numbers<[1], [0], [0], [1], [0, 0, 1, 1], [], []>} : vector<32x128xbf16>, vector<128x128xbf16>, vector<32x128xf32> -> vector<32x128xf32>
    %92 = arith.truncf %91 : vector<32x128xf32> to vector<32x128xbf16>
    %c1152 = arith.constant 1152 : index
    %c0_55 = arith.constant 0 : index
    %93 = vector.load %arg3[%c1152, %c0_55] : memref<3200x128xbf16, #tpu.memory_space<vmem>>, vector<128x128xbf16>
    %cst_56 = arith.constant dense<0.000000e+00> : vector<32x128xf32>
    %94 = tpu.matmul %92, %93, %cst_56 {dimension_numbers = #tpu.dot_dimension_numbers<[1], [0], [0], [1], [0, 0, 1, 1], [], []>} : vector<32x128xbf16>, vector<128x128xbf16>, vector<32x128xf32> -> vector<32x128xf32>
    %95 = arith.addf %89, %94 : vector<32x128xf32>
    %c320 = arith.constant 320 : index
    %c0_57 = arith.constant 0 : index
    %96 = vector.load %arg2[%c320, %c0_57] : memref<800x128xbf16, #tpu.memory_space<vmem>>, vector<32x128xbf16>
    %cst_58 = arith.constant dense<0.000000e+00> : vector<32x128xf32>
    %97 = tpu.matmul %96, %34, %cst_58 {dimension_numbers = #tpu.dot_dimension_numbers<[1], [0], [0], [1], [0, 0, 1, 1], [], []>} : vector<32x128xbf16>, vector<128x128xbf16>, vector<32x128xf32> -> vector<32x128xf32>
    %98 = arith.truncf %97 : vector<32x128xf32> to vector<32x128xbf16>
    %c1280 = arith.constant 1280 : index
    %c0_59 = arith.constant 0 : index
    %99 = vector.load %arg3[%c1280, %c0_59] : memref<3200x128xbf16, #tpu.memory_space<vmem>>, vector<128x128xbf16>
    %cst_60 = arith.constant dense<0.000000e+00> : vector<32x128xf32>
    %100 = tpu.matmul %98, %99, %cst_60 {dimension_numbers = #tpu.dot_dimension_numbers<[1], [0], [0], [1], [0, 0, 1, 1], [], []>} : vector<32x128xbf16>, vector<128x128xbf16>, vector<32x128xf32> -> vector<32x128xf32>
    %101 = arith.addf %95, %100 : vector<32x128xf32>
    %c352 = arith.constant 352 : index
    %c0_61 = arith.constant 0 : index
    %102 = vector.load %arg2[%c352, %c0_61] : memref<800x128xbf16, #tpu.memory_space<vmem>>, vector<32x128xbf16>
    %cst_62 = arith.constant dense<0.000000e+00> : vector<32x128xf32>
    %103 = tpu.matmul %102, %34, %cst_62 {dimension_numbers = #tpu.dot_dimension_numbers<[1], [0], [0], [1], [0, 0, 1, 1], [], []>} : vector<32x128xbf16>, vector<128x128xbf16>, vector<32x128xf32> -> vector<32x128xf32>
    %104 = arith.truncf %103 : vector<32x128xf32> to vector<32x128xbf16>
    %c1408 = arith.constant 1408 : index
    %c0_63 = arith.constant 0 : index
    %105 = vector.load %arg3[%c1408, %c0_63] : memref<3200x128xbf16, #tpu.memory_space<vmem>>, vector<128x128xbf16>
    %cst_64 = arith.constant dense<0.000000e+00> : vector<32x128xf32>
    %106 = tpu.matmul %104, %105, %cst_64 {dimension_numbers = #tpu.dot_dimension_numbers<[1], [0], [0], [1], [0, 0, 1, 1], [], []>} : vector<32x128xbf16>, vector<128x128xbf16>, vector<32x128xf32> -> vector<32x128xf32>
    %107 = arith.addf %101, %106 : vector<32x128xf32>
    %c384_65 = arith.constant 384 : index
    %c0_66 = arith.constant 0 : index
    %108 = vector.load %arg2[%c384_65, %c0_66] : memref<800x128xbf16, #tpu.memory_space<vmem>>, vector<32x128xbf16>
    %cst_67 = arith.constant dense<0.000000e+00> : vector<32x128xf32>
    %109 = tpu.matmul %108, %34, %cst_67 {dimension_numbers = #tpu.dot_dimension_numbers<[1], [0], [0], [1], [0, 0, 1, 1], [], []>} : vector<32x128xbf16>, vector<128x128xbf16>, vector<32x128xf32> -> vector<32x128xf32>
    %110 = arith.truncf %109 : vector<32x128xf32> to vector<32x128xbf16>
    %c1536 = arith.constant 1536 : index
    %c0_68 = arith.constant 0 : index
    %111 = vector.load %arg3[%c1536, %c0_68] : memref<3200x128xbf16, #tpu.memory_space<vmem>>, vector<128x128xbf16>
    %cst_69 = arith.constant dense<0.000000e+00> : vector<32x128xf32>
    %112 = tpu.matmul %110, %111, %cst_69 {dimension_numbers = #tpu.dot_dimension_numbers<[1], [0], [0], [1], [0, 0, 1, 1], [], []>} : vector<32x128xbf16>, vector<128x128xbf16>, vector<32x128xf32> -> vector<32x128xf32>
    %113 = arith.addf %107, %112 : vector<32x128xf32>
    %c416 = arith.constant 416 : index
    %c0_70 = arith.constant 0 : index
    %114 = vector.load %arg2[%c416, %c0_70] : memref<800x128xbf16, #tpu.memory_space<vmem>>, vector<32x128xbf16>
    %cst_71 = arith.constant dense<0.000000e+00> : vector<32x128xf32>
    %115 = tpu.matmul %114, %34, %cst_71 {dimension_numbers = #tpu.dot_dimension_numbers<[1], [0], [0], [1], [0, 0, 1, 1], [], []>} : vector<32x128xbf16>, vector<128x128xbf16>, vector<32x128xf32> -> vector<32x128xf32>
    %116 = arith.truncf %115 : vector<32x128xf32> to vector<32x128xbf16>
    %c1664 = arith.constant 1664 : index
    %c0_72 = arith.constant 0 : index
    %117 = vector.load %arg3[%c1664, %c0_72] : memref<3200x128xbf16, #tpu.memory_space<vmem>>, vector<128x128xbf16>
    %cst_73 = arith.constant dense<0.000000e+00> : vector<32x128xf32>
    %118 = tpu.matmul %116, %117, %cst_73 {dimension_numbers = #tpu.dot_dimension_numbers<[1], [0], [0], [1], [0, 0, 1, 1], [], []>} : vector<32x128xbf16>, vector<128x128xbf16>, vector<32x128xf32> -> vector<32x128xf32>
    %119 = arith.addf %113, %118 : vector<32x128xf32>
    %c448 = arith.constant 448 : index
    %c0_74 = arith.constant 0 : index
    %120 = vector.load %arg2[%c448, %c0_74] : memref<800x128xbf16, #tpu.memory_space<vmem>>, vector<32x128xbf16>
    %cst_75 = arith.constant dense<0.000000e+00> : vector<32x128xf32>
    %121 = tpu.matmul %120, %34, %cst_75 {dimension_numbers = #tpu.dot_dimension_numbers<[1], [0], [0], [1], [0, 0, 1, 1], [], []>} : vector<32x128xbf16>, vector<128x128xbf16>, vector<32x128xf32> -> vector<32x128xf32>
    %122 = arith.truncf %121 : vector<32x128xf32> to vector<32x128xbf16>
    %c1792 = arith.constant 1792 : index
    %c0_76 = arith.constant 0 : index
    %123 = vector.load %arg3[%c1792, %c0_76] : memref<3200x128xbf16, #tpu.memory_space<vmem>>, vector<128x128xbf16>
    %cst_77 = arith.constant dense<0.000000e+00> : vector<32x128xf32>
    %124 = tpu.matmul %122, %123, %cst_77 {dimension_numbers = #tpu.dot_dimension_numbers<[1], [0], [0], [1], [0, 0, 1, 1], [], []>} : vector<32x128xbf16>, vector<128x128xbf16>, vector<32x128xf32> -> vector<32x128xf32>
    %125 = arith.addf %119, %124 : vector<32x128xf32>
    %c480 = arith.constant 480 : index
    %c0_78 = arith.constant 0 : index
    %126 = vector.load %arg2[%c480, %c0_78] : memref<800x128xbf16, #tpu.memory_space<vmem>>, vector<32x128xbf16>
    %cst_79 = arith.constant dense<0.000000e+00> : vector<32x128xf32>
    %127 = tpu.matmul %126, %34, %cst_79 {dimension_numbers = #tpu.dot_dimension_numbers<[1], [0], [0], [1], [0, 0, 1, 1], [], []>} : vector<32x128xbf16>, vector<128x128xbf16>, vector<32x128xf32> -> vector<32x128xf32>
    %128 = arith.truncf %127 : vector<32x128xf32> to vector<32x128xbf16>
    %c1920 = arith.constant 1920 : index
    %c0_80 = arith.constant 0 : index
    %129 = vector.load %arg3[%c1920, %c0_80] : memref<3200x128xbf16, #tpu.memory_space<vmem>>, vector<128x128xbf16>
    %cst_81 = arith.constant dense<0.000000e+00> : vector<32x128xf32>
    %130 = tpu.matmul %128, %129, %cst_81 {dimension_numbers = #tpu.dot_dimension_numbers<[1], [0], [0], [1], [0, 0, 1, 1], [], []>} : vector<32x128xbf16>, vector<128x128xbf16>, vector<32x128xf32> -> vector<32x128xf32>
    %131 = arith.addf %125, %130 : vector<32x128xf32>
    %c512_82 = arith.constant 512 : index
    %c0_83 = arith.constant 0 : index
    %132 = vector.load %arg2[%c512_82, %c0_83] : memref<800x128xbf16, #tpu.memory_space<vmem>>, vector<32x128xbf16>
    %cst_84 = arith.constant dense<0.000000e+00> : vector<32x128xf32>
    %133 = tpu.matmul %132, %34, %cst_84 {dimension_numbers = #tpu.dot_dimension_numbers<[1], [0], [0], [1], [0, 0, 1, 1], [], []>} : vector<32x128xbf16>, vector<128x128xbf16>, vector<32x128xf32> -> vector<32x128xf32>
    %134 = arith.truncf %133 : vector<32x128xf32> to vector<32x128xbf16>
    %c2048 = arith.constant 2048 : index
    %c0_85 = arith.constant 0 : index
    %135 = vector.load %arg3[%c2048, %c0_85] : memref<3200x128xbf16, #tpu.memory_space<vmem>>, vector<128x128xbf16>
    %cst_86 = arith.constant dense<0.000000e+00> : vector<32x128xf32>
    %136 = tpu.matmul %134, %135, %cst_86 {dimension_numbers = #tpu.dot_dimension_numbers<[1], [0], [0], [1], [0, 0, 1, 1], [], []>} : vector<32x128xbf16>, vector<128x128xbf16>, vector<32x128xf32> -> vector<32x128xf32>
    %137 = arith.addf %131, %136 : vector<32x128xf32>
    %c544 = arith.constant 544 : index
    %c0_87 = arith.constant 0 : index
    %138 = vector.load %arg2[%c544, %c0_87] : memref<800x128xbf16, #tpu.memory_space<vmem>>, vector<32x128xbf16>
    %cst_88 = arith.constant dense<0.000000e+00> : vector<32x128xf32>
    %139 = tpu.matmul %138, %34, %cst_88 {dimension_numbers = #tpu.dot_dimension_numbers<[1], [0], [0], [1], [0, 0, 1, 1], [], []>} : vector<32x128xbf16>, vector<128x128xbf16>, vector<32x128xf32> -> vector<32x128xf32>
    %140 = arith.truncf %139 : vector<32x128xf32> to vector<32x128xbf16>
    %c2176 = arith.constant 2176 : index
    %c0_89 = arith.constant 0 : index
    %141 = vector.load %arg3[%c2176, %c0_89] : memref<3200x128xbf16, #tpu.memory_space<vmem>>, vector<128x128xbf16>
    %cst_90 = arith.constant dense<0.000000e+00> : vector<32x128xf32>
    %142 = tpu.matmul %140, %141, %cst_90 {dimension_numbers = #tpu.dot_dimension_numbers<[1], [0], [0], [1], [0, 0, 1, 1], [], []>} : vector<32x128xbf16>, vector<128x128xbf16>, vector<32x128xf32> -> vector<32x128xf32>
    %143 = arith.addf %137, %142 : vector<32x128xf32>
    %c576 = arith.constant 576 : index
    %c0_91 = arith.constant 0 : index
    %144 = vector.load %arg2[%c576, %c0_91] : memref<800x128xbf16, #tpu.memory_space<vmem>>, vector<32x128xbf16>
    %cst_92 = arith.constant dense<0.000000e+00> : vector<32x128xf32>
    %145 = tpu.matmul %144, %34, %cst_92 {dimension_numbers = #tpu.dot_dimension_numbers<[1], [0], [0], [1], [0, 0, 1, 1], [], []>} : vector<32x128xbf16>, vector<128x128xbf16>, vector<32x128xf32> -> vector<32x128xf32>
    %146 = arith.truncf %145 : vector<32x128xf32> to vector<32x128xbf16>
    %c2304 = arith.constant 2304 : index
    %c0_93 = arith.constant 0 : index
    %147 = vector.load %arg3[%c2304, %c0_93] : memref<3200x128xbf16, #tpu.memory_space<vmem>>, vector<128x128xbf16>
    %cst_94 = arith.constant dense<0.000000e+00> : vector<32x128xf32>
    %148 = tpu.matmul %146, %147, %cst_94 {dimension_numbers = #tpu.dot_dimension_numbers<[1], [0], [0], [1], [0, 0, 1, 1], [], []>} : vector<32x128xbf16>, vector<128x128xbf16>, vector<32x128xf32> -> vector<32x128xf32>
    %149 = arith.addf %143, %148 : vector<32x128xf32>
    %c608 = arith.constant 608 : index
    %c0_95 = arith.constant 0 : index
    %150 = vector.load %arg2[%c608, %c0_95] : memref<800x128xbf16, #tpu.memory_space<vmem>>, vector<32x128xbf16>
    %cst_96 = arith.constant dense<0.000000e+00> : vector<32x128xf32>
    %151 = tpu.matmul %150, %34, %cst_96 {dimension_numbers = #tpu.dot_dimension_numbers<[1], [0], [0], [1], [0, 0, 1, 1], [], []>} : vector<32x128xbf16>, vector<128x128xbf16>, vector<32x128xf32> -> vector<32x128xf32>
    %152 = arith.truncf %151 : vector<32x128xf32> to vector<32x128xbf16>
    %c2432 = arith.constant 2432 : index
    %c0_97 = arith.constant 0 : index
    %153 = vector.load %arg3[%c2432, %c0_97] : memref<3200x128xbf16, #tpu.memory_space<vmem>>, vector<128x128xbf16>
    %cst_98 = arith.constant dense<0.000000e+00> : vector<32x128xf32>
    %154 = tpu.matmul %152, %153, %cst_98 {dimension_numbers = #tpu.dot_dimension_numbers<[1], [0], [0], [1], [0, 0, 1, 1], [], []>} : vector<32x128xbf16>, vector<128x128xbf16>, vector<32x128xf32> -> vector<32x128xf32>
    %155 = arith.addf %149, %154 : vector<32x128xf32>
    %c640_99 = arith.constant 640 : index
    %c0_100 = arith.constant 0 : index
    %156 = vector.load %arg2[%c640_99, %c0_100] : memref<800x128xbf16, #tpu.memory_space<vmem>>, vector<32x128xbf16>
    %cst_101 = arith.constant dense<0.000000e+00> : vector<32x128xf32>
    %157 = tpu.matmul %156, %34, %cst_101 {dimension_numbers = #tpu.dot_dimension_numbers<[1], [0], [0], [1], [0, 0, 1, 1], [], []>} : vector<32x128xbf16>, vector<128x128xbf16>, vector<32x128xf32> -> vector<32x128xf32>
    %158 = arith.truncf %157 : vector<32x128xf32> to vector<32x128xbf16>
    %c2560 = arith.constant 2560 : index
    %c0_102 = arith.constant 0 : index
    %159 = vector.load %arg3[%c2560, %c0_102] : memref<3200x128xbf16, #tpu.memory_space<vmem>>, vector<128x128xbf16>
    %cst_103 = arith.constant dense<0.000000e+00> : vector<32x128xf32>
    %160 = tpu.matmul %158, %159, %cst_103 {dimension_numbers = #tpu.dot_dimension_numbers<[1], [0], [0], [1], [0, 0, 1, 1], [], []>} : vector<32x128xbf16>, vector<128x128xbf16>, vector<32x128xf32> -> vector<32x128xf32>
    %161 = arith.addf %155, %160 : vector<32x128xf32>
    %c672 = arith.constant 672 : index
    %c0_104 = arith.constant 0 : index
    %162 = vector.load %arg2[%c672, %c0_104] : memref<800x128xbf16, #tpu.memory_space<vmem>>, vector<32x128xbf16>
    %cst_105 = arith.constant dense<0.000000e+00> : vector<32x128xf32>
    %163 = tpu.matmul %162, %34, %cst_105 {dimension_numbers = #tpu.dot_dimension_numbers<[1], [0], [0], [1], [0, 0, 1, 1], [], []>} : vector<32x128xbf16>, vector<128x128xbf16>, vector<32x128xf32> -> vector<32x128xf32>
    %164 = arith.truncf %163 : vector<32x128xf32> to vector<32x128xbf16>
    %c2688 = arith.constant 2688 : index
    %c0_106 = arith.constant 0 : index
    %165 = vector.load %arg3[%c2688, %c0_106] : memref<3200x128xbf16, #tpu.memory_space<vmem>>, vector<128x128xbf16>
    %cst_107 = arith.constant dense<0.000000e+00> : vector<32x128xf32>
    %166 = tpu.matmul %164, %165, %cst_107 {dimension_numbers = #tpu.dot_dimension_numbers<[1], [0], [0], [1], [0, 0, 1, 1], [], []>} : vector<32x128xbf16>, vector<128x128xbf16>, vector<32x128xf32> -> vector<32x128xf32>
    %167 = arith.addf %161, %166 : vector<32x128xf32>
    %c704 = arith.constant 704 : index
    %c0_108 = arith.constant 0 : index
    %168 = vector.load %arg2[%c704, %c0_108] : memref<800x128xbf16, #tpu.memory_space<vmem>>, vector<32x128xbf16>
    %cst_109 = arith.constant dense<0.000000e+00> : vector<32x128xf32>
    %169 = tpu.matmul %168, %34, %cst_109 {dimension_numbers = #tpu.dot_dimension_numbers<[1], [0], [0], [1], [0, 0, 1, 1], [], []>} : vector<32x128xbf16>, vector<128x128xbf16>, vector<32x128xf32> -> vector<32x128xf32>
    %170 = arith.truncf %169 : vector<32x128xf32> to vector<32x128xbf16>
    %c2816 = arith.constant 2816 : index
    %c0_110 = arith.constant 0 : index
    %171 = vector.load %arg3[%c2816, %c0_110] : memref<3200x128xbf16, #tpu.memory_space<vmem>>, vector<128x128xbf16>
    %cst_111 = arith.constant dense<0.000000e+00> : vector<32x128xf32>
    %172 = tpu.matmul %170, %171, %cst_111 {dimension_numbers = #tpu.dot_dimension_numbers<[1], [0], [0], [1], [0, 0, 1, 1], [], []>} : vector<32x128xbf16>, vector<128x128xbf16>, vector<32x128xf32> -> vector<32x128xf32>
    %173 = arith.addf %167, %172 : vector<32x128xf32>
    %c736 = arith.constant 736 : index
    %c0_112 = arith.constant 0 : index
    %174 = vector.load %arg2[%c736, %c0_112] : memref<800x128xbf16, #tpu.memory_space<vmem>>, vector<32x128xbf16>
    %cst_113 = arith.constant dense<0.000000e+00> : vector<32x128xf32>
    %175 = tpu.matmul %174, %34, %cst_113 {dimension_numbers = #tpu.dot_dimension_numbers<[1], [0], [0], [1], [0, 0, 1, 1], [], []>} : vector<32x128xbf16>, vector<128x128xbf16>, vector<32x128xf32> -> vector<32x128xf32>
    %176 = arith.truncf %175 : vector<32x128xf32> to vector<32x128xbf16>
    %c2944 = arith.constant 2944 : index
    %c0_114 = arith.constant 0 : index
    %177 = vector.load %arg3[%c2944, %c0_114] : memref<3200x128xbf16, #tpu.memory_space<vmem>>, vector<128x128xbf16>
    %cst_115 = arith.constant dense<0.000000e+00> : vector<32x128xf32>
    %178 = tpu.matmul %176, %177, %cst_115 {dimension_numbers = #tpu.dot_dimension_numbers<[1], [0], [0], [1], [0, 0, 1, 1], [], []>} : vector<32x128xbf16>, vector<128x128xbf16>, vector<32x128xf32> -> vector<32x128xf32>
    %179 = arith.addf %173, %178 : vector<32x128xf32>
    %c768_116 = arith.constant 768 : index
    %c0_117 = arith.constant 0 : index
    %180 = vector.load %arg2[%c768_116, %c0_117] : memref<800x128xbf16, #tpu.memory_space<vmem>>, vector<32x128xbf16>
    %cst_118 = arith.constant dense<0.000000e+00> : vector<32x128xf32>
    %181 = tpu.matmul %180, %34, %cst_118 {dimension_numbers = #tpu.dot_dimension_numbers<[1], [0], [0], [1], [0, 0, 1, 1], [], []>} : vector<32x128xbf16>, vector<128x128xbf16>, vector<32x128xf32> -> vector<32x128xf32>
    %182 = arith.truncf %181 : vector<32x128xf32> to vector<32x128xbf16>
    %c3072 = arith.constant 3072 : index
    %c0_119 = arith.constant 0 : index
    %183 = vector.load %arg3[%c3072, %c0_119] : memref<3200x128xbf16, #tpu.memory_space<vmem>>, vector<128x128xbf16>
    %cst_120 = arith.constant dense<0.000000e+00> : vector<32x128xf32>
    %184 = tpu.matmul %182, %183, %cst_120 {dimension_numbers = #tpu.dot_dimension_numbers<[1], [0], [0], [1], [0, 0, 1, 1], [], []>} : vector<32x128xbf16>, vector<128x128xbf16>, vector<32x128xf32> -> vector<32x128xf32>
    %185 = arith.addf %179, %184 : vector<32x128xf32>
    %186 = vector.extract_strided_slice %0 {offsets = [3, 0], sizes = [1, 128], strides = [1, 1]} : vector<16x128xf32> to vector<1x128xf32>
    %187 = vector.extract_strided_slice %0 {offsets = [4, 0], sizes = [1, 128], strides = [1, 1]} : vector<16x128xf32> to vector<1x128xf32>
    %188 = vector.extract_strided_slice %0 {offsets = [5, 0], sizes = [1, 128], strides = [1, 1]} : vector<16x128xf32> to vector<1x128xf32>
    %189 = vector.broadcast %186 : vector<1x128xf32> to vector<32x128xf32>
    %190 = arith.addf %185, %189 : vector<32x128xf32>
    %cst_121 = arith.constant 0.000000e+00 : f32
    %191 = vector.broadcast %cst_121 : f32 to vector<32x128xf32>
    %192 = arith.maximumf %190, %191 : vector<32x128xf32>
    %cst_122 = arith.constant dense<0.000000e+00> : vector<128xf32>
    %193 = vector.multi_reduction <add>, %192, %cst_122 [0] : vector<32x128xf32> to vector<128xf32>
    %194 = vector.shape_cast %193 : vector<128xf32> to vector<1x128xf32>
    %cst_123 = arith.constant 3.125000e-02 : f32
    %195 = vector.broadcast %cst_123 : f32 to vector<1x128xf32>
    %196 = arith.mulf %194, %195 : vector<1x128xf32>
    %197 = arith.mulf %192, %192 : vector<32x128xf32>
    %cst_124 = arith.constant dense<0.000000e+00> : vector<128xf32>
    %198 = vector.multi_reduction <add>, %197, %cst_124 [0] : vector<32x128xf32> to vector<128xf32>
    %199 = vector.shape_cast %198 : vector<128xf32> to vector<1x128xf32>
    %cst_125 = arith.constant 3.125000e-02 : f32
    %200 = vector.broadcast %cst_125 : f32 to vector<1x128xf32>
    %201 = arith.mulf %199, %200 : vector<1x128xf32>
    %202 = arith.mulf %196, %196 : vector<1x128xf32>
    %203 = arith.subf %201, %202 : vector<1x128xf32>
    %cst_126 = arith.constant 0.000000e+00 : f32
    %204 = vector.broadcast %cst_126 : f32 to vector<1x128xf32>
    %205 = arith.maximumf %203, %204 : vector<1x128xf32>
    %cst_127 = arith.constant 9.99999974E-6 : f32
    %206 = vector.broadcast %cst_127 : f32 to vector<1x128xf32>
    %207 = arith.addf %205, %206 : vector<1x128xf32>
    %208 = math.rsqrt %207 : vector<1x128xf32>
    %209 = arith.mulf %187, %208 : vector<1x128xf32>
    %210 = arith.mulf %196, %209 : vector<1x128xf32>
    %211 = arith.subf %188, %210 : vector<1x128xf32>
    %212 = vector.broadcast %209 : vector<1x128xf32> to vector<32x128xf32>
    %213 = arith.mulf %192, %212 : vector<32x128xf32>
    %214 = vector.broadcast %211 : vector<1x128xf32> to vector<32x128xf32>
    %215 = arith.addf %213, %214 : vector<32x128xf32>
    %216 = arith.truncf %215 : vector<32x128xf32> to vector<32x128xbf16>
    %cst_128 = arith.constant 0.000000e+00 : f32
    %217 = vector.broadcast %cst_128 : f32 to vector<8x128xf32>
    %c0_129 = arith.constant 0 : index
    %c0_130 = arith.constant 0 : index
    %218 = vector.load %arg4[%c0_129, %c0_130] : memref<72x32xbf16, #tpu.memory_space<vmem>>, vector<8x32xbf16>
    %cst_131 = arith.constant dense<0.000000e+00> : vector<8x128xf32>
    %219 = tpu.matmul %218, %216, %cst_131 {dimension_numbers = #tpu.dot_dimension_numbers<[1], [0], [0], [1], [0, 0, 1, 1], [], []>} : vector<8x32xbf16>, vector<32x128xbf16>, vector<8x128xf32> -> vector<8x128xf32>
    %220 = arith.truncf %219 : vector<8x128xf32> to vector<8x128xbf16>
    %c0_132 = arith.constant 0 : index
    %c0_133 = arith.constant 0 : index
    %221 = vector.load %arg5[%c0_132, %c0_133] : memref<1152x128xbf16, #tpu.memory_space<vmem>>, vector<128x128xbf16>
    %cst_134 = arith.constant dense<0.000000e+00> : vector<8x128xf32>
    %222 = tpu.matmul %220, %221, %cst_134 {dimension_numbers = #tpu.dot_dimension_numbers<[1], [0], [0], [1], [0, 0, 1, 1], [], []>} : vector<8x128xbf16>, vector<128x128xbf16>, vector<8x128xf32> -> vector<8x128xf32>
    %223 = arith.addf %217, %222 : vector<8x128xf32>
    %c8 = arith.constant 8 : index
    %c0_135 = arith.constant 0 : index
    %224 = vector.load %arg4[%c8, %c0_135] : memref<72x32xbf16, #tpu.memory_space<vmem>>, vector<8x32xbf16>
    %cst_136 = arith.constant dense<0.000000e+00> : vector<8x128xf32>
    %225 = tpu.matmul %224, %216, %cst_136 {dimension_numbers = #tpu.dot_dimension_numbers<[1], [0], [0], [1], [0, 0, 1, 1], [], []>} : vector<8x32xbf16>, vector<32x128xbf16>, vector<8x128xf32> -> vector<8x128xf32>
    %226 = arith.truncf %225 : vector<8x128xf32> to vector<8x128xbf16>
    %c128_137 = arith.constant 128 : index
    %c0_138 = arith.constant 0 : index
    %227 = vector.load %arg5[%c128_137, %c0_138] : memref<1152x128xbf16, #tpu.memory_space<vmem>>, vector<128x128xbf16>
    %cst_139 = arith.constant dense<0.000000e+00> : vector<8x128xf32>
    %228 = tpu.matmul %226, %227, %cst_139 {dimension_numbers = #tpu.dot_dimension_numbers<[1], [0], [0], [1], [0, 0, 1, 1], [], []>} : vector<8x128xbf16>, vector<128x128xbf16>, vector<8x128xf32> -> vector<8x128xf32>
    %229 = arith.addf %223, %228 : vector<8x128xf32>
    %c16 = arith.constant 16 : index
    %c0_140 = arith.constant 0 : index
    %230 = vector.load %arg4[%c16, %c0_140] : memref<72x32xbf16, #tpu.memory_space<vmem>>, vector<8x32xbf16>
    %cst_141 = arith.constant dense<0.000000e+00> : vector<8x128xf32>
    %231 = tpu.matmul %230, %216, %cst_141 {dimension_numbers = #tpu.dot_dimension_numbers<[1], [0], [0], [1], [0, 0, 1, 1], [], []>} : vector<8x32xbf16>, vector<32x128xbf16>, vector<8x128xf32> -> vector<8x128xf32>
    %232 = arith.truncf %231 : vector<8x128xf32> to vector<8x128xbf16>
    %c256_142 = arith.constant 256 : index
    %c0_143 = arith.constant 0 : index
    %233 = vector.load %arg5[%c256_142, %c0_143] : memref<1152x128xbf16, #tpu.memory_space<vmem>>, vector<128x128xbf16>
    %cst_144 = arith.constant dense<0.000000e+00> : vector<8x128xf32>
    %234 = tpu.matmul %232, %233, %cst_144 {dimension_numbers = #tpu.dot_dimension_numbers<[1], [0], [0], [1], [0, 0, 1, 1], [], []>} : vector<8x128xbf16>, vector<128x128xbf16>, vector<8x128xf32> -> vector<8x128xf32>
    %235 = arith.addf %229, %234 : vector<8x128xf32>
    %c24 = arith.constant 24 : index
    %c0_145 = arith.constant 0 : index
    %236 = vector.load %arg4[%c24, %c0_145] : memref<72x32xbf16, #tpu.memory_space<vmem>>, vector<8x32xbf16>
    %cst_146 = arith.constant dense<0.000000e+00> : vector<8x128xf32>
    %237 = tpu.matmul %236, %216, %cst_146 {dimension_numbers = #tpu.dot_dimension_numbers<[1], [0], [0], [1], [0, 0, 1, 1], [], []>} : vector<8x32xbf16>, vector<32x128xbf16>, vector<8x128xf32> -> vector<8x128xf32>
    %238 = arith.truncf %237 : vector<8x128xf32> to vector<8x128xbf16>
    %c384_147 = arith.constant 384 : index
    %c0_148 = arith.constant 0 : index
    %239 = vector.load %arg5[%c384_147, %c0_148] : memref<1152x128xbf16, #tpu.memory_space<vmem>>, vector<128x128xbf16>
    %cst_149 = arith.constant dense<0.000000e+00> : vector<8x128xf32>
    %240 = tpu.matmul %238, %239, %cst_149 {dimension_numbers = #tpu.dot_dimension_numbers<[1], [0], [0], [1], [0, 0, 1, 1], [], []>} : vector<8x128xbf16>, vector<128x128xbf16>, vector<8x128xf32> -> vector<8x128xf32>
    %241 = arith.addf %235, %240 : vector<8x128xf32>
    %c32_150 = arith.constant 32 : index
    %c0_151 = arith.constant 0 : index
    %242 = vector.load %arg4[%c32_150, %c0_151] : memref<72x32xbf16, #tpu.memory_space<vmem>>, vector<8x32xbf16>
    %cst_152 = arith.constant dense<0.000000e+00> : vector<8x128xf32>
    %243 = tpu.matmul %242, %216, %cst_152 {dimension_numbers = #tpu.dot_dimension_numbers<[1], [0], [0], [1], [0, 0, 1, 1], [], []>} : vector<8x32xbf16>, vector<32x128xbf16>, vector<8x128xf32> -> vector<8x128xf32>
    %244 = arith.truncf %243 : vector<8x128xf32> to vector<8x128xbf16>
    %c512_153 = arith.constant 512 : index
    %c0_154 = arith.constant 0 : index
    %245 = vector.load %arg5[%c512_153, %c0_154] : memref<1152x128xbf16, #tpu.memory_space<vmem>>, vector<128x128xbf16>
    %cst_155 = arith.constant dense<0.000000e+00> : vector<8x128xf32>
    %246 = tpu.matmul %244, %245, %cst_155 {dimension_numbers = #tpu.dot_dimension_numbers<[1], [0], [0], [1], [0, 0, 1, 1], [], []>} : vector<8x128xbf16>, vector<128x128xbf16>, vector<8x128xf32> -> vector<8x128xf32>
    %247 = arith.addf %241, %246 : vector<8x128xf32>
    %c40 = arith.constant 40 : index
    %c0_156 = arith.constant 0 : index
    %248 = vector.load %arg4[%c40, %c0_156] : memref<72x32xbf16, #tpu.memory_space<vmem>>, vector<8x32xbf16>
    %cst_157 = arith.constant dense<0.000000e+00> : vector<8x128xf32>
    %249 = tpu.matmul %248, %216, %cst_157 {dimension_numbers = #tpu.dot_dimension_numbers<[1], [0], [0], [1], [0, 0, 1, 1], [], []>} : vector<8x32xbf16>, vector<32x128xbf16>, vector<8x128xf32> -> vector<8x128xf32>
    %250 = arith.truncf %249 : vector<8x128xf32> to vector<8x128xbf16>
    %c640_158 = arith.constant 640 : index
    %c0_159 = arith.constant 0 : index
    %251 = vector.load %arg5[%c640_158, %c0_159] : memref<1152x128xbf16, #tpu.memory_space<vmem>>, vector<128x128xbf16>
    %cst_160 = arith.constant dense<0.000000e+00> : vector<8x128xf32>
    %252 = tpu.matmul %250, %251, %cst_160 {dimension_numbers = #tpu.dot_dimension_numbers<[1], [0], [0], [1], [0, 0, 1, 1], [], []>} : vector<8x128xbf16>, vector<128x128xbf16>, vector<8x128xf32> -> vector<8x128xf32>
    %253 = arith.addf %247, %252 : vector<8x128xf32>
    %c48 = arith.constant 48 : index
    %c0_161 = arith.constant 0 : index
    %254 = vector.load %arg4[%c48, %c0_161] : memref<72x32xbf16, #tpu.memory_space<vmem>>, vector<8x32xbf16>
    %cst_162 = arith.constant dense<0.000000e+00> : vector<8x128xf32>
    %255 = tpu.matmul %254, %216, %cst_162 {dimension_numbers = #tpu.dot_dimension_numbers<[1], [0], [0], [1], [0, 0, 1, 1], [], []>} : vector<8x32xbf16>, vector<32x128xbf16>, vector<8x128xf32> -> vector<8x128xf32>
    %256 = arith.truncf %255 : vector<8x128xf32> to vector<8x128xbf16>
    %c768_163 = arith.constant 768 : index
    %c0_164 = arith.constant 0 : index
    %257 = vector.load %arg5[%c768_163, %c0_164] : memref<1152x128xbf16, #tpu.memory_space<vmem>>, vector<128x128xbf16>
    %cst_165 = arith.constant dense<0.000000e+00> : vector<8x128xf32>
    %258 = tpu.matmul %256, %257, %cst_165 {dimension_numbers = #tpu.dot_dimension_numbers<[1], [0], [0], [1], [0, 0, 1, 1], [], []>} : vector<8x128xbf16>, vector<128x128xbf16>, vector<8x128xf32> -> vector<8x128xf32>
    %259 = arith.addf %253, %258 : vector<8x128xf32>
    %c56 = arith.constant 56 : index
    %c0_166 = arith.constant 0 : index
    %260 = vector.load %arg4[%c56, %c0_166] : memref<72x32xbf16, #tpu.memory_space<vmem>>, vector<8x32xbf16>
    %cst_167 = arith.constant dense<0.000000e+00> : vector<8x128xf32>
    %261 = tpu.matmul %260, %216, %cst_167 {dimension_numbers = #tpu.dot_dimension_numbers<[1], [0], [0], [1], [0, 0, 1, 1], [], []>} : vector<8x32xbf16>, vector<32x128xbf16>, vector<8x128xf32> -> vector<8x128xf32>
    %262 = arith.truncf %261 : vector<8x128xf32> to vector<8x128xbf16>
    %c896_168 = arith.constant 896 : index
    %c0_169 = arith.constant 0 : index
    %263 = vector.load %arg5[%c896_168, %c0_169] : memref<1152x128xbf16, #tpu.memory_space<vmem>>, vector<128x128xbf16>
    %cst_170 = arith.constant dense<0.000000e+00> : vector<8x128xf32>
    %264 = tpu.matmul %262, %263, %cst_170 {dimension_numbers = #tpu.dot_dimension_numbers<[1], [0], [0], [1], [0, 0, 1, 1], [], []>} : vector<8x128xbf16>, vector<128x128xbf16>, vector<8x128xf32> -> vector<8x128xf32>
    %265 = arith.addf %259, %264 : vector<8x128xf32>
    %c64_171 = arith.constant 64 : index
    %c0_172 = arith.constant 0 : index
    %266 = vector.load %arg4[%c64_171, %c0_172] : memref<72x32xbf16, #tpu.memory_space<vmem>>, vector<8x32xbf16>
    %cst_173 = arith.constant dense<0.000000e+00> : vector<8x128xf32>
    %267 = tpu.matmul %266, %216, %cst_173 {dimension_numbers = #tpu.dot_dimension_numbers<[1], [0], [0], [1], [0, 0, 1, 1], [], []>} : vector<8x32xbf16>, vector<32x128xbf16>, vector<8x128xf32> -> vector<8x128xf32>
    %268 = arith.truncf %267 : vector<8x128xf32> to vector<8x128xbf16>
    %c1024_174 = arith.constant 1024 : index
    %c0_175 = arith.constant 0 : index
    %269 = vector.load %arg5[%c1024_174, %c0_175] : memref<1152x128xbf16, #tpu.memory_space<vmem>>, vector<128x128xbf16>
    %cst_176 = arith.constant dense<0.000000e+00> : vector<8x128xf32>
    %270 = tpu.matmul %268, %269, %cst_176 {dimension_numbers = #tpu.dot_dimension_numbers<[1], [0], [0], [1], [0, 0, 1, 1], [], []>} : vector<8x128xbf16>, vector<128x128xbf16>, vector<8x128xf32> -> vector<8x128xf32>
    %271 = arith.addf %265, %270 : vector<8x128xf32>
    %272 = vector.extract_strided_slice %0 {offsets = [6, 0], sizes = [1, 128], strides = [1, 1]} : vector<16x128xf32> to vector<1x128xf32>
    %273 = vector.extract_strided_slice %0 {offsets = [7, 0], sizes = [1, 128], strides = [1, 1]} : vector<16x128xf32> to vector<1x128xf32>
    %274 = vector.extract_strided_slice %0 {offsets = [8, 0], sizes = [1, 128], strides = [1, 1]} : vector<16x128xf32> to vector<1x128xf32>
    %275 = vector.broadcast %272 : vector<1x128xf32> to vector<8x128xf32>
    %276 = arith.addf %271, %275 : vector<8x128xf32>
    %cst_177 = arith.constant 0.000000e+00 : f32
    %277 = vector.broadcast %cst_177 : f32 to vector<8x128xf32>
    %278 = arith.maximumf %276, %277 : vector<8x128xf32>
    %279 = tpu.iota {dimensions = array<i32: 0>} : vector<8x128xi32>
    %c2_i32 = arith.constant 2 : i32
    %280 = vector.broadcast %c2_i32 : i32 to vector<8x128xi32>
    %281 = arith.cmpi slt, %279, %280 : vector<8x128xi32>
    %cst_178 = arith.constant 0.000000e+00 : f32
    %282 = vector.broadcast %cst_178 : f32 to vector<8x128xf32>
    %283 = arith.select %281, %278, %282 : vector<8x128xi1>, vector<8x128xf32>
    %cst_179 = arith.constant dense<0.000000e+00> : vector<128xf32>
    %284 = vector.multi_reduction <add>, %283, %cst_179 [0] : vector<8x128xf32> to vector<128xf32>
    %285 = vector.shape_cast %284 : vector<128xf32> to vector<1x128xf32>
    %cst_180 = arith.constant 5.000000e-01 : f32
    %286 = vector.broadcast %cst_180 : f32 to vector<1x128xf32>
    %287 = arith.mulf %285, %286 : vector<1x128xf32>
    %288 = arith.mulf %283, %283 : vector<8x128xf32>
    %cst_181 = arith.constant dense<0.000000e+00> : vector<128xf32>
    %289 = vector.multi_reduction <add>, %288, %cst_181 [0] : vector<8x128xf32> to vector<128xf32>
    %290 = vector.shape_cast %289 : vector<128xf32> to vector<1x128xf32>
    %cst_182 = arith.constant 5.000000e-01 : f32
    %291 = vector.broadcast %cst_182 : f32 to vector<1x128xf32>
    %292 = arith.mulf %290, %291 : vector<1x128xf32>
    %293 = arith.mulf %287, %287 : vector<1x128xf32>
    %294 = arith.subf %292, %293 : vector<1x128xf32>
    %cst_183 = arith.constant 0.000000e+00 : f32
    %295 = vector.broadcast %cst_183 : f32 to vector<1x128xf32>
    %296 = arith.maximumf %294, %295 : vector<1x128xf32>
    %cst_184 = arith.constant 9.99999974E-6 : f32
    %297 = vector.broadcast %cst_184 : f32 to vector<1x128xf32>
    %298 = arith.addf %296, %297 : vector<1x128xf32>
    %299 = math.rsqrt %298 : vector<1x128xf32>
    %300 = arith.mulf %273, %299 : vector<1x128xf32>
    %301 = arith.mulf %287, %300 : vector<1x128xf32>
    %302 = arith.subf %274, %301 : vector<1x128xf32>
    %303 = vector.broadcast %300 : vector<1x128xf32> to vector<8x128xf32>
    %304 = arith.mulf %278, %303 : vector<8x128xf32>
    %305 = vector.broadcast %302 : vector<1x128xf32> to vector<8x128xf32>
    %306 = arith.addf %304, %305 : vector<8x128xf32>
    %c0_185 = arith.constant 0 : index
    %c0_186 = arith.constant 0 : index
    %307 = vector.load %arg7[%c0_185, %c0_186] : memref<8x128xf32, #tpu.memory_space<vmem>>, vector<8x128xf32>
    tpu.vector_store %arg7[%c0_185, %c0_186], %306 {strides = array<i32>} : memref<8x128xf32, #tpu.memory_space<vmem>>, vector<8x128xf32>,
    return
  }
}

</mosaic_0001>

<bundles_post_ra>
// kernel: forward.1
= control target key start
LH: loop header
LB: loop body
LE: loop exit
PB: predicated region body
PF: predicated region fallthrough
CT: control target
= control target key end

     0   :  { %12 = vsyncpa [#allocation3], 0  ;;  %s10779_s0 = inlined_call_operand.vmem [shape: bf16[128,128], index: 0, kind: input, shape index: {}]   ;;  %s10780_s1 = inlined_call_operand.hbm [shape: bf16[128,128], index: 1, kind: input, shape index: {}]   ;;  %s10781_s2 = inlined_call_operand.hbm [shape: bf16[800,128], index: 2, kind: input, shape index: {}]   ;;  %s10782_s3 = inlined_call_operand.vmem [shape: bf16[3200,128], index: 3, kind: input, shape index: {}]   ;;  %s10783_s4 = inlined_call_operand.vmem [shape: bf16[72,32], index: 4, kind: input, shape index: {}]   ;;  %s10784_s5 = inlined_call_operand.hbm [shape: bf16[1152,128], index: 5, kind: input, shape index: {}]   ;;  %s10785_s6 = inlined_call_operand.vmem [shape: f32[16,128], index: 6, kind: input, shape index: {}]   ;;  %s10786_s7 = inlined_call_operand.vmem [shape: f32[8,128], index: 7, kind: output, shape index: {}]  }
   0x1   :  { %13 = vsyncpa [#allocation5], 0  ;;  %s9266_s24 = smov [#allocation4]   ;;  %s9267_s26 = smov [#allocation2]  }
   0x2   :  { %s33_s25 = sshll.u32 %s9266_s24, 4  ;;  %s21_s27 = sshll.u32 %s9267_s26, 4  ;;  %s34_s25 = int_to_ptr.vmem [resolvable:$true] %s33_s25  ;;  %s9313_s27 = int_to_ptr.vmem [resolvable:$true] %s21_s27 }
   0x3   :  { %s9196_s30 = scalar_lea.hbm %s10781_s2, 6400 }
   0x4   :  { %p9197_p0 = scmp.ne.s32.totalorder %s10781_s2, %s9196_s30  ;;  %p9200_p1 = scmp.lt.u32.totalorder %s9196_s30, %s10781_s2 }
   0x6   :  { %p9202_p2 = pnand %p9200_p1, %p9197_p0 }
   0x8   :  { %9205 = shalt.err (!%p9202_p2)
}
   0x9   :  { %s9206_s12 = scalar_lea.vmem %s34_s25, 6400  ;;  %p9211_p4 = scmp.lt.s32.totalorder %s34_s25, %s34_s25 }
   0xa   :  { %p9207_p3 = scmp.ne.s32.totalorder %s34_s25, %s9206_s12  ;;  %p9212_p5 = scmp.lt.s32.totalorder %s9206_s12, %s9206_s12 }
   0xc   :  { %p9213_p6 = por %p9212_p5, %p9211_p4 }
   0xe   :  { %p9214_p7 = pnand %p9213_p6, %p9207_p3 }
  0x10   :  { %9217 = shalt.err (!%p9214_p7)
}
  0x11   :  { %s9268_s13 = smov 64   ;;  %s9269_s14 = smov 4  }
  0x12   :  { %39 = dma.hbm_to_vmem [thread:$0]  %s10781_s2, 6400, %s34_s25, [#allocation5], %s9268_s13, %s9268_s13, %s9269_s14  }
  0x13   :  { %s9218_s19 = scalar_lea.hbm %s10780_s1, 1024 }
  0x14   :  { %p9219_p8 = scmp.ne.s32.totalorder %s10780_s1, %s9218_s19  ;;  %p9222_p9 = scmp.lt.u32.totalorder %s9218_s19, %s10780_s1 }
  0x16   :  { %p9224_p10 = pnand %p9222_p9, %p9219_p8 }
  0x18   :  { %9227 = shalt.err (!%p9224_p10)
}
  0x19   :  { %s9228_s24 = scalar_lea.vmem %s9313_s27, 1024  ;;  %p9233_p12 = scmp.lt.s32.totalorder %s9313_s27, %s9313_s27 }
  0x1a   :  { %p9229_p11 = scmp.ne.s32.totalorder %s9313_s27, %s9228_s24  ;;  %p9234_p13 = scmp.lt.s32.totalorder %s9228_s24, %s9228_s24 }
  0x1c   :  { %p9235_p0 = por %p9234_p13, %p9233_p12 }
  0x1e   :  { %p9236_p1 = pnand %p9235_p0, %p9229_p11 }
  0x20   :  { %9239 = shalt.err (!%p9236_p1)
}
  0x21   :  { %27 = dma.hbm_to_vmem [thread:$0]  %s10780_s1, 1024, %s9313_s27, [#allocation3], %s9268_s13, %s9268_s13, %s9269_s14  }
  0x22   :  { %s9270_s26 = smov [#allocation6]   ;;  %s9240_s8 = scalar_lea.hbm %s10784_s5, 9216 }
  0x23   :  { %s49_s28 = sshll.u32 %s9270_s26, 4  ;;  %p9241_p2 = scmp.ne.s32.totalorder %s10784_s5, %s9240_s8  ;;  %s50_s28 = int_to_ptr.vmem [resolvable:$true] %s49_s28 }
  0x24   :  { %p9244_p3 = scmp.lt.u32.totalorder %s9240_s8, %s10784_s5 }
  0x26   :  { %p9246_p4 = pnand %p9244_p3, %p9241_p2 }
  0x28   :  { %9249 = shalt.err (!%p9246_p4)
}
  0x29   :  { %s9250_s15 = scalar_lea.vmem %s50_s28, 9216  ;;  %p9255_p6 = scmp.lt.s32.totalorder %s50_s28, %s50_s28 }
  0x2a   :  { %p9251_p5 = scmp.ne.s32.totalorder %s50_s28, %s9250_s15  ;;  %p9256_p7 = scmp.lt.s32.totalorder %s9250_s15, %s9250_s15 }
  0x2c   :  { %p9257_p8 = por %p9256_p7, %p9255_p6 }
  0x2e   :  { %p9258_p9 = pnand %p9257_p8, %p9251_p5 }
  0x30   :  { %9261 = shalt.err (!%p9258_p9)
}
  0x31   :  { %55 = dma.hbm_to_vmem [thread:$0]  %s10784_s5, 9216, %s50_s28, [#allocation5], %s9268_s13, %s9268_s13, %s9269_s14  }
  0x32   :  { %9262 = dma.done.wait [#allocation3], 1024  }
  0x33   :  { %9263 = vsyncadd [#allocation3], 4294966272 }
  0x34   :  { %9264 = dma.done.wait [#allocation5], 15616  }
  0x35   :  { %9265 = vsyncadd [#allocation5], 4294951680  ;;  %v8851_v0 = vld [vmem:[#allocation2] sm:$0xff]   ;;  %v8852_v1 = vld [vmem:[#allocation2 + $0x8] sm:$0xff]   ;;  %v102_v16 = vlaneseq  ;;  %vm9272_vm0 = vmmov 0   ;;  %vm5092_vm1 = vcmask 261120  }
  0x36   :  { %7464 = vmatprep.subr.bf16.mxu0 %v8851_v0  ;;  %v8853_v2 = vld [vmem:[#allocation2 + $0x10] sm:$0xff]   ;;  %v8854_v3 = vld [vmem:[#allocation2 + $0x18] sm:$0xff]   ;;  %v8859_v4 = vld [vmem:[%s10779_s0] sm:$0xff]  }
  0x37   :  { %7465 = vmatpush3.bf16.msra.mxu0 %v8851_v0  ;;  %7480 = vmatprep.mubr.bf16.mxu0 %v8859_v4  ;;  %v8855_v5 = vld [vmem:[#allocation2 + $0x20] sm:$0xff]   ;;  %v8856_v6 = vld [vmem:[#allocation2 + $0x28] sm:$0xff]   ;;  %v8857_v7 = vld [vmem:[#allocation2 + $0x30] sm:$0xff]   ;;  %v9389_v18 = vshrl.u32 %v102_v16, 7 }
  0x38   :  { %7466 = vmatprep.subr.bf16.mxu0 %v8852_v1  ;;  %v8858_v8 = vld [vmem:[#allocation2 + $0x38] sm:$0xff]   ;;  %v8860_v9 = vld [vmem:[%s10779_s0 + $0x8] sm:$0xff]   ;;  %v8861_v10 = vld [vmem:[%s10779_s0 + $0x10] sm:$0xff]  }
  0x39   :  { %v8862_v11 = vld [vmem:[%s10779_s0 + $0x18] sm:$0xff]   ;;  %v8863_v12 = vld [vmem:[%s10779_s0 + $0x20] sm:$0xff]   ;;  %v8864_v13 = vld [vmem:[%s10779_s0 + $0x28] sm:$0xff]   ;;  %v104_v19 = vsub.s32 0, %v9389_v18  ;;  %vm6448_vm2 = vcmp.lt.s32.totalorder %v9389_v18, 2 }
  0x3a   :  { %v8865_v14 = vld [vmem:[%s10779_s0 + $0x30] sm:$0xff]   ;;  %v8866_v15 = vld [vmem:[%s10779_s0 + $0x38] sm:$0xff]   ;;  %v9395_v20 = vld [vmem:[%s10785_s6] sm:$0xff] }
  0x3b   :  { %7467 = vmatpush3.bf16.msra.mxu0 %v8852_v1  ;;  %v8867_v17 = vld [vmem:[#allocation4 + $0x10] sm:$0xff]   ;;  %v9400_v21 = vrot.slane %v9395_v20, %v104_v19  ;;  %v8869_v0 = vld [vmem:[#allocation4] sm:$0xff]  }
  0x3c   :  { %7468 = vmatprep.subr.bf16.mxu0 %v8853_v2  ;;  %7512 = vmatprep.mubr.bf16.mxu1 %v8869_v0 }
  0x3f   :  { %7469 = vmatpush3.bf16.msra.mxu0 %v8853_v2 }
  0x40   :  { %7470 = vmatprep.subr.bf16.mxu0 %v8854_v3 }
  0x43   :  { %7471 = vmatpush3.bf16.msra.mxu0 %v8854_v3 }
  0x44   :  { %7472 = vmatprep.subr.bf16.mxu0 %v8855_v5 }
  0x47   :  { %7473 = vmatpush3.bf16.msra.mxu0 %v8855_v5 }
  0x48   :  { %7474 = vmatprep.subr.bf16.mxu0 %v8856_v6 }
  0x4b   :  { %7475 = vmatpush3.bf16.msra.mxu0 %v8856_v6 }
  0x4c   :  { %7476 = vmatprep.subr.bf16.mxu0 %v8857_v7 }
  0x4f   :  { %7477 = vmatpush3.bf16.msra.mxu0 %v8857_v7 }
  0x50   :  { %7478 = vmatprep.subr.bf16.mxu0 %v8858_v8 }
  0x53   :  { %7479 = vmatpush3.bf16.msra.mxu0 %v8858_v8 }
  0x56   :  { %7481 = vmatmul.mubr.bf16.vlgmr.msra.gmra.mrb[0].mxu0 %v8860_v9 }
  0x57   :  { %7484 = vmatprep.mubr.bf16.mxu0 %v8861_v10 }
  0x5e   :  { %7485 = vmatmul.mubr.bf16.gmra.mrb[4].mxu0 %v8862_v11 }
  0x5f   :  { %7488 = vmatprep.mubr.bf16.mxu0 %v8863_v12 }
  0x66   :  { %7489 = vmatmul.mubr.bf16.gmra.mrb[8].mxu0 %v8864_v13 }
  0x67   :  { %7492 = vmatprep.mubr.bf16.mxu0 %v8865_v14 }
  0x6e   :  { %7493 = vmatmul.mubr.bf16.gmra.mrb[12].mxu0 %v8866_v15 }
  0x6f   :  { %7532 = vmatprep.mubr.bf16.mxu0 %v8867_v17 }
 0x129   :  { %v7482_v22 = vpop.f32.mrb[0].mxu0 }
 0x12a   :  { %v236_v23 = vpop.f32.mrb[1].mxu0  ;;  %v245_v24 = vadd.f32 %v7482_v22, %v9400_v21 }
 0x12b   :  { %v237_v25 = vadd.f32 %v236_v23, %v9400_v21  ;;  %v7483_v26 = vpop.f32.mrb[2].mxu0 }
 0x12c   :  { %v248_v27 = vadd.f32 %v7483_v26, %v9400_v21  ;;  %v239_v28 = vpop.f32.mrb[3].mxu0  ;;  %v9408_v31 = vmax.f32 %v245_v24, 0.0 }
 0x12d   :  { %v9405_v29 = vmax.f32 %v237_v25, 0.0  ;;  %v240_v30 = vadd.f32 %v239_v28, %v9400_v21 }
 0x12e   :  { %v9412_v33 = vmax.f32 %v248_v27, 0.0  ;;  %v339_v40 = vmul.f32 %v9408_v31, %v9408_v31 }
 0x12f   :  { %v9410_v32 = vmax.f32 %v240_v30, 0.0  ;;  %v337_v34 = vmul.f32 %v9405_v29, %v9405_v29 }
 0x130   :  { %v340_v45 = vmul.f32 %v9412_v33, %v9412_v33 }
 0x131   :  { %v315_v35 = vadd.f32 %v9410_v32, %v9405_v29  ;;  %v338_v36 = vmul.f32 %v9410_v32, %v9410_v32  ;;  %v7486_v37 = vpop.f32.mrb[4].mxu0 }
 0x132   :  { %v261_v38 = vadd.f32 %v7486_v37, %v9400_v21  ;;  %v252_v39 = vpop.f32.mrb[5].mxu0 }
 0x133   :  { %v316_v41 = vadd.f32 %v315_v35, %v9408_v31  ;;  %v353_v42 = vadd.f32 %v338_v36, %v337_v34  ;;  %v253_v43 = vadd.f32 %v252_v39, %v9400_v21  ;;  %v7487_v44 = vpop.f32.mrb[6].mxu0 }
 0x134   :  { %v264_v46 = vadd.f32 %v7487_v44, %v9400_v21  ;;  %v255_v47 = vpop.f32.mrb[7].mxu0  ;;  %v9432_v52 = vmax.f32 %v261_v38, 0.0 }
 0x135   :  { %v354_v48 = vadd.f32 %v353_v42, %v339_v40  ;;  %v9428_v49 = vmax.f32 %v253_v43, 0.0  ;;  %v317_v50 = vadd.f32 %v316_v41, %v9412_v33  ;;  %v256_v51 = vadd.f32 %v255_v47, %v9400_v21 }
 0x136   :  { %v9439_v57 = vmax.f32 %v264_v46, 0.0  ;;  %v343_v1 = vmul.f32 %v9432_v52, %v9432_v52 }
 0x137   :  { %v318_v53 = vadd.f32 %v317_v50, %v9428_v49  ;;  %v341_v54 = vmul.f32 %v9428_v49, %v9428_v49  ;;  %v355_v55 = vadd.f32 %v354_v48, %v340_v45  ;;  %v9437_v56 = vmax.f32 %v256_v51, 0.0 }
 0x138   :  { %v344_v6 = vmul.f32 %v9439_v57, %v9439_v57 }
 0x139   :  { %v356_v58 = vadd.f32 %v355_v55, %v341_v54  ;;  %v319_v59 = vadd.f32 %v318_v53, %v9437_v56  ;;  %v342_v60 = vmul.f32 %v9437_v56, %v9437_v56  ;;  %v7490_v61 = vpop.f32.mrb[8].mxu0 }
 0x13a   :  { %v277_v62 = vadd.f32 %v7490_v61, %v9400_v21  ;;  %v268_v63 = vpop.f32.mrb[9].mxu0 }
 0x13b   :  { %v320_v2 = vadd.f32 %v319_v59, %v9432_v52  ;;  %v357_v3 = vadd.f32 %v356_v58, %v342_v60  ;;  %v269_v4 = vadd.f32 %v268_v63, %v9400_v21  ;;  %v7491_v5 = vpop.f32.mrb[10].mxu0 }
 0x13c   :  { %v280_v7 = vadd.f32 %v7491_v5, %v9400_v21  ;;  %v271_v8 = vpop.f32.mrb[11].mxu0  ;;  %v9456_v13 = vmax.f32 %v277_v62, 0.0 }
 0x13d   :  { %v358_v9 = vadd.f32 %v357_v3, %v343_v1  ;;  %v9452_v10 = vmax.f32 %v269_v4, 0.0  ;;  %v321_v11 = vadd.f32 %v320_v2, %v9439_v57  ;;  %v272_v12 = vadd.f32 %v271_v8, %v9400_v21 }
 0x13e   :  { %v9463_v22 = vmax.f32 %v280_v7, 0.0  ;;  %v347_v30 = vmul.f32 %v9456_v13, %v9456_v13 }
 0x13f   :  { %v322_v14 = vadd.f32 %v321_v11, %v9452_v10  ;;  %v345_v15 = vmul.f32 %v9452_v10, %v9452_v10  ;;  %v359_v16 = vadd.f32 %v358_v9, %v344_v6  ;;  %v9461_v17 = vmax.f32 %v272_v12, 0.0 }
 0x140   :  { %v348_v38 = vmul.f32 %v9463_v22, %v9463_v22 }
 0x141   :  { %v360_v23 = vadd.f32 %v359_v16, %v345_v15  ;;  %v323_v24 = vadd.f32 %v322_v14, %v9461_v17  ;;  %v346_v25 = vmul.f32 %v9461_v17, %v9461_v17  ;;  %v7494_v26 = vpop.f32.mrb[12].mxu0 }
 0x142   :  { %v293_v27 = vadd.f32 %v7494_v26, %v9400_v21  ;;  %v284_v28 = vpop.f32.mrb[13].mxu0  ;;  %v388_v26 = vsub.s32 1, %v9389_v18 }
 0x143   :  { %v324_v34 = vadd.f32 %v323_v24, %v9456_v13  ;;  %v361_v35 = vadd.f32 %v360_v23, %v346_v25  ;;  %v285_v36 = vadd.f32 %v284_v28, %v9400_v21  ;;  %v7495_v37 = vpop.f32.mrb[14].mxu0 }
 0x144   :  { %v296_v39 = vadd.f32 %v7495_v37, %v9400_v21  ;;  %v287_v40 = vpop.f32.mrb[15].mxu0  ;;  %v313_v45 = vmax.f32 %v293_v27, 0.0 }
 0x145   :  { %v362_v41 = vadd.f32 %v361_v35, %v347_v30  ;;  %v311_v42 = vmax.f32 %v285_v36, 0.0  ;;  %v325_v43 = vadd.f32 %v324_v34, %v9463_v22  ;;  %v288_v44 = vadd.f32 %v287_v40, %v9400_v21 }
 0x146   :  { %v314_v53 = vmax.f32 %v296_v39, 0.0  ;;  %v351_v58 = vmul.f32 %v313_v45, %v313_v45 }
 0x147   :  { %v326_v46 = vadd.f32 %v325_v43, %v311_v42  ;;  %v349_v47 = vmul.f32 %v311_v42, %v311_v42  ;;  %v363_v48 = vadd.f32 %v362_v41, %v348_v38  ;;  %v312_v50 = vmax.f32 %v288_v44, 0.0 }
 0x148   :  { %v352_v61 = vmul.f32 %v314_v53, %v314_v53  ;;  %v408_v38 = vsub.s32 2, %v9389_v18 }
 0x149   :  { %v364_v51 = vadd.f32 %v363_v48, %v349_v47  ;;  %v327_v54 = vadd.f32 %v326_v46, %v312_v50  ;;  %v350_v55 = vmul.f32 %v312_v50, %v312_v50 }
 0x14b   :  { %v328_v59 = vadd.f32 %v327_v54, %v313_v45  ;;  %v365_v60 = vadd.f32 %v364_v51, %v350_v55 }
 0x14d   :  { %v329_v62 = vadd.f32 %v328_v59, %v314_v53  ;;  %v366_v63 = vadd.f32 %v365_v60, %v351_v58 }
 0x14f   :  { %v330_v0 = vrot.slane %v329_v62, 4  ;;  %v367_v1 = vadd.f32 %v366_v63, %v352_v61 }
 0x151   :  { %v331_v2 = vadd.f32 %v330_v0, %v329_v62  ;;  %v368_v3 = vrot.slane %v367_v1, 4 }
 0x153   :  { %v332_v21 = vrot.slane %v331_v2, 2  ;;  %v369_v4 = vadd.f32 %v368_v3, %v367_v1 }
 0x155   :  { %v333_v5 = vadd.f32 %v332_v21, %v331_v2  ;;  %v370_v6 = vrot.slane %v369_v4, 2 }
 0x157   :  { %v334_v7 = vrot.slane %v333_v5, 1  ;;  %v371_v8 = vadd.f32 %v370_v6, %v369_v4  ;;  %v8870_v6 = vld [vmem:[#allocation4 + $0x8] sm:$0xff]  }
 0x159   :  { %v335_v9 = vadd.f32 %v334_v7, %v333_v5  ;;  %v372_v11 = vrot.slane %v371_v8, 1  ;;  %v8868_v5 = vld [vmem:[#allocation4 + $0x18] sm:$0xff]   ;;  %v8871_v7 = vld [vmem:[#allocation4 + $0x20] sm:$0xff]  }
 0x15b   :  { %v336_v12 = vmul.f32 0.0078125, %v335_v9  ;;  %v373_v14 = vadd.f32 %v372_v11, %v371_v8  ;;  %v8872_v8 = vld [vmem:[#allocation4 + $0x28] sm:$0xff]   ;;  %v8873_v9 = vld [vmem:[#allocation4 + $0x30] sm:$0xff]   ;;  %v8881_v11 = vld [vmem:[%s10782_s3 + $0x40] sm:$0xff]  }
 0x15d   :  { %v374_v15 = vmul.f32 0.0078125, %v373_v14  ;;  %v375_v16 = vmul.f32 %v336_v12, %v336_v12  ;;  %v8874_v14 = vld [vmem:[#allocation4 + $0x38] sm:$0xff]  }
 0x15f   :  { %v376_v23 = vsub.f32 %v374_v15, %v375_v16  ;;  %v8875_v15 = vld [vmem:[#allocation4 + $0x40] sm:$0xff]   ;;  %v8884_v16 = vld [vmem:[%s10782_s3 + $0x50] sm:$0xff]  }
 0x161   :  { %v377_v24 = vmax.f32 %v376_v23, 0.0  ;;  %v8886_v23 = vld [vmem:[%s10782_s3 + $0x58] sm:$0xff]  }
 0x163   :  { %v378_v25 = vadd.f32 1e-05, %v377_v24  ;;  %v8887_v24 = vld [vmem:[%s10782_s3 + $0x60] sm:$0xff]  }
 0x165   :  { %9189 = vrsqrt.f32 %v378_v25  ;;  %v8888_v25 = vld [vmem:[%s10782_s3 + $0x68] sm:$0xff]  }
 0x16f   :  { %v9190_v27 = vpop.eup %9189 }
 0x170   :  { %v380_v28 = vmul.f32 %v9190_v27, %v9395_v20  ;;  %v8890_v27 = vld [vmem:[%s10782_s3 + $0x78] sm:$0xff]  }
 0x172   :  { %v381_v30 = vmul.f32 %v380_v28, %v336_v12  ;;  %v389_v34 = vrot.slane %v380_v28, %v388_v26  ;;  %v8882_v12 = vld [vmem:[%s10782_s3 + $0x48] sm:$0xff]   ;;  %v8889_v26 = vld [vmem:[%s10782_s3 + $0x70] sm:$0xff]   ;;  %v9615_v28 = vld [vmem:[%s10782_s3] sm:$0xff]  }
 0x174   :  { %v383_v35 = vrot.slane %v381_v30, 7  ;;  %v390_v36 = vmul.f32 %v389_v34, %v9405_v29  ;;  %v391_v37 = vmul.f32 %v389_v34, %v9410_v32  ;;  %v392_v39 = vmul.f32 %v389_v34, %v9408_v31  ;;  %v8876_v30 = vld [vmem:[#allocation4 + $0x48] sm:$0xff]  }
 0x175   :  { %v394_v40 = vmul.f32 %v389_v34, %v9428_v49  ;;  %v395_v41 = vmul.f32 %v389_v34, %v9437_v56  ;;  %v396_v43 = vmul.f32 %v389_v34, %v9432_v52  ;;  %v397_v46 = vmul.f32 %v389_v34, %v9439_v57 }
 0x176   :  { %v385_v44 = vsub.f32 %v9395_v20, %v383_v35  ;;  %v398_v47 = vmul.f32 %v389_v34, %v9452_v10  ;;  %v399_v29 = vmul.f32 %v389_v34, %v9461_v17  ;;  %v400_v32 = vmul.f32 %v389_v34, %v9456_v13  ;;  %v8878_v35 = vld [vmem:[#allocation4 + $0x58] sm:$0xff]  }
 0x177   :  { %v401_v48 = vmul.f32 %v389_v34, %v9463_v22  ;;  %v402_v51 = vmul.f32 %v389_v34, %v311_v42  ;;  %v403_v31 = vmul.f32 %v389_v34, %v312_v50  ;;  %v393_v49 = vmul.f32 %v389_v34, %v9412_v33 }
 0x178   :  { %v404_v54 = vmul.f32 %v389_v34, %v313_v45  ;;  %v405_v56 = vmul.f32 %v389_v34, %v314_v53  ;;  %v409_v55 = vrot.slane %v385_v44, %v408_v38  ;;  %v8877_v34 = vld [vmem:[#allocation4 + $0x50] sm:$0xff]  }
 0x179   :  { %v8883_v38 = vld [vmem:[#allocation4 + $0x70] sm:$0xff]  }
 0x17a   :  { %v410_v52 = vadd.f32 %v409_v55, %v390_v36  ;;  %v411_v58 = vadd.f32 %v409_v55, %v391_v37  ;;  %v412_v20 = vadd.f32 %v409_v55, %v392_v39  ;;  %v413_v59 = vadd.f32 %v409_v55, %v393_v49  ;;  %v8879_v36 = vld [vmem:[#allocation4 + $0x60] sm:$0xff]   ;;  %v8880_v37 = vld [vmem:[#allocation4 + $0x68] sm:$0xff]   ;;  %v8885_v39 = vld [vmem:[#allocation4 + $0x78] sm:$0xff]  }
 0x17b   :  { %v414_v57 = vadd.f32 %v409_v55, %v394_v40  ;;  %v415_v60 = vadd.f32 %v409_v55, %v395_v41  ;;  %v416_v10 = vadd.f32 %v409_v55, %v396_v43  ;;  %v417_v61 = vadd.f32 %v409_v55, %v397_v46  ;;  %v8893_v40 = vld [vmem:[#allocation4 + $0x80] sm:$0xff]  }
 0x17c   :  { %v418_v17 = vadd.f32 %v409_v55, %v398_v47  ;;  %v419_v62 = vadd.f32 %v409_v55, %v399_v29  ;;  %v420_v13 = vadd.f32 %v409_v55, %v400_v32  ;;  %v421_v63 = vadd.f32 %v409_v55, %v401_v48 }
 0x17d   :  { %v422_v22 = vadd.f32 %v409_v55, %v402_v51  ;;  %v423_v42 = vadd.f32 %v409_v55, %v403_v31  ;;  %v424_v50 = vadd.f32 %v409_v55, %v404_v54  ;;  %v425_v0 = vadd.f32 %v409_v55, %v405_v56  ;;  %v8892_v56 = vld [vmem:[%s10782_s3 + $0x8] sm:$0xff]   ;;  %v8894_v55 = vld [vmem:[%s10782_s3 + $0x10] sm:$0xff]  }
 0x17e   :  { %v9494_v33 = vpack.c.bf16 %v411_v58, %v410_v52  ;;  %v9496_v45 = vpack.c.bf16 %v413_v59, %v412_v20  ;;  %v9498_v53 = vpack.c.bf16 %v415_v60, %v414_v57  ;;  %v9500_v1 = vpack.c.bf16 %v417_v61, %v416_v10  ;;  %v8895_v52 = vld [vmem:[#allocation4 + $0x88] sm:$0xff]   ;;  %v8903_v58 = vld [vmem:[#allocation4 + $0x90] sm:$0xff]   ;;  %v8896_v20 = vld [vmem:[%s10782_s3 + $0x18] sm:$0xff]  }
 0x17f   :  { %v9502_v2 = vpack.c.bf16 %v419_v62, %v418_v17  ;;  %v9504_v3 = vpack.c.bf16 %v421_v63, %v420_v13  ;;  %v9506_v21 = vpack.c.bf16 %v423_v42, %v422_v22  ;;  %v9508_v4 = vpack.c.bf16 %v425_v0, %v424_v50  ;;  %v8897_v59 = vld [vmem:[%s10782_s3 + $0x20] sm:$0xff]   ;;  %v8898_v57 = vld [vmem:[%s10782_s3 + $0x28] sm:$0xff]   ;;  %v8899_v60 = vld [vmem:[%s10782_s3 + $0x30] sm:$0xff]  }
 0x180   :  { %7496 = vmatprep.subr.bf16.mxu1 %v9494_v33  ;;  %7516 = vmatprep.subr.bf16.mxu0 %v9494_v33  ;;  %v8900_v10 = vld [vmem:[%s10782_s3 + $0x38] sm:$0xff]   ;;  %v8901_v17 = vld [vmem:[%s10782_s3 + $0x80] sm:$0xff]   ;;  %v8902_v50 = vld [vmem:[%s10782_s3 + $0x88] sm:$0xff]  }
 0x181   :  { %7497 = vmatpush3.bf16.msra.mxu1 %v9494_v33  ;;  %7517 = vmatpush3.bf16.msra.mxu0 %v9494_v33  ;;  %v8904_v0 = vld [vmem:[%s10782_s3 + $0x90] sm:$0xff]  }
 0x182   :  { %7498 = vmatprep.subr.bf16.mxu1 %v9496_v45  ;;  %7518 = vmatprep.subr.bf16.mxu0 %v9496_v45 }
 0x185   :  { %7499 = vmatpush3.bf16.msra.mxu1 %v9496_v45  ;;  %7519 = vmatpush3.bf16.msra.mxu0 %v9496_v45 }
 0x186   :  { %7500 = vmatprep.subr.bf16.mxu1 %v9498_v53  ;;  %7520 = vmatprep.subr.bf16.mxu0 %v9498_v53 }
 0x189   :  { %7501 = vmatpush3.bf16.msra.mxu1 %v9498_v53  ;;  %7521 = vmatpush3.bf16.msra.mxu0 %v9498_v53 }
 0x18a   :  { %7502 = vmatprep.subr.bf16.mxu1 %v9500_v1  ;;  %7522 = vmatprep.subr.bf16.mxu0 %v9500_v1 }
 0x18d   :  { %7503 = vmatpush3.bf16.msra.mxu1 %v9500_v1  ;;  %7523 = vmatpush3.bf16.msra.mxu0 %v9500_v1 }
 0x18e   :  { %7504 = vmatprep.subr.bf16.mxu1 %v9502_v2  ;;  %7524 = vmatprep.subr.bf16.mxu0 %v9502_v2 }
 0x191   :  { %7505 = vmatpush3.bf16.msra.mxu1 %v9502_v2  ;;  %7525 = vmatpush3.bf16.msra.mxu0 %v9502_v2 }
 0x192   :  { %7506 = vmatprep.subr.bf16.mxu1 %v9504_v3  ;;  %7526 = vmatprep.subr.bf16.mxu0 %v9504_v3 }
 0x195   :  { %7507 = vmatpush3.bf16.msra.mxu1 %v9504_v3  ;;  %7527 = vmatpush3.bf16.msra.mxu0 %v9504_v3 }
 0x196   :  { %7508 = vmatprep.subr.bf16.mxu1 %v9506_v21  ;;  %7528 = vmatprep.subr.bf16.mxu0 %v9506_v21 }
 0x199   :  { %7509 = vmatpush3.bf16.msra.mxu1 %v9506_v21  ;;  %7529 = vmatpush3.bf16.msra.mxu0 %v9506_v21 }
 0x19a   :  { %7510 = vmatprep.subr.bf16.mxu1 %v9508_v4  ;;  %7530 = vmatprep.subr.bf16.mxu0 %v9508_v4 }
 0x19d   :  { %7511 = vmatpush3.bf16.msra.mxu1 %v9508_v4  ;;  %7531 = vmatpush3.bf16.msra.mxu0 %v9508_v4 }
 0x19e   :  { %7576 = vmatprep.subr.bf16.mxu0 %v9494_v33  ;;  %7536 = vmatprep.subr.bf16.mxu1 %v8881_v11 }
 0x1a0   :  { %7533 = vmatmul.mubr.bf16.vlgmr.msra.gmra.mrb[16].mxu0 %v8868_v5  ;;  %7513 = vmatmul.mubr.bf16.vlgmr.msra.gmra.mrb[0].mxu1 %v8870_v6  ;;  %v8905_v5 = vld [vmem:[#allocation4 + $0x98] sm:$0xff]   ;;  %v8913_v6 = vld [vmem:[#allocation4 + $0xa0] sm:$0xff]  }
 0x1a1   :  { %7577 = vmatpush3.bf16.msra.mxu0 %v9494_v33  ;;  %7592 = vmatprep.mubr.bf16.mxu0 %v8871_v7  ;;  %v8906_v7 = vld [vmem:[%s10782_s3 + $0x98] sm:$0xff]  }
 0x1a2   :  { %7578 = vmatprep.subr.bf16.mxu0 %v9496_v45  ;;  %7537 = vmatpush3.bf16.msra.mxu1 %v8881_v11  ;;  %v8909_v11 = vld [vmem:[%s10782_s3 + $0xb0] sm:$0xff]  }
 0x1a3   :  { %7538 = vmatprep.subr.bf16.mxu1 %v8882_v12 }
 0x1a5   :  { %7579 = vmatpush3.bf16.msra.mxu0 %v9496_v45 }
 0x1a6   :  { %7580 = vmatprep.subr.bf16.mxu0 %v9498_v53  ;;  %7539 = vmatpush3.bf16.msra.mxu1 %v8882_v12  ;;  %v8910_v12 = vld [vmem:[%s10782_s3 + $0xb8] sm:$0xff]  }
 0x1a7   :  { %7540 = vmatprep.subr.bf16.mxu1 %v8884_v16 }
 0x1a9   :  { %7581 = vmatpush3.bf16.msra.mxu0 %v9498_v53 }
 0x1aa   :  { %7582 = vmatprep.subr.bf16.mxu0 %v9500_v1  ;;  %7541 = vmatpush3.bf16.msra.mxu1 %v8884_v16 }
 0x1ab   :  { %7542 = vmatprep.subr.bf16.mxu1 %v8886_v23 }
 0x1ad   :  { %7583 = vmatpush3.bf16.msra.mxu0 %v9500_v1 }
 0x1ae   :  { %7584 = vmatprep.subr.bf16.mxu0 %v9502_v2  ;;  %7543 = vmatpush3.bf16.msra.mxu1 %v8886_v23 }
 0x1af   :  { %7544 = vmatprep.subr.bf16.mxu1 %v8887_v24 }
 0x1b1   :  { %7585 = vmatpush3.bf16.msra.mxu0 %v9502_v2 }
 0x1b2   :  { %7586 = vmatprep.subr.bf16.mxu0 %v9504_v3  ;;  %7545 = vmatpush3.bf16.msra.mxu1 %v8887_v24 }
 0x1b3   :  { %7546 = vmatprep.subr.bf16.mxu1 %v8888_v25 }
 0x1b5   :  { %7587 = vmatpush3.bf16.msra.mxu0 %v9504_v3 }
 0x1b6   :  { %7588 = vmatprep.subr.bf16.mxu0 %v9506_v21  ;;  %7547 = vmatpush3.bf16.msra.mxu1 %v8888_v25 }
 0x1b7   :  { %7548 = vmatprep.subr.bf16.mxu1 %v8889_v26 }
 0x1b9   :  { %7589 = vmatpush3.bf16.msra.mxu0 %v9506_v21 }
 0x1ba   :  { %7590 = vmatprep.subr.bf16.mxu0 %v9508_v4  ;;  %7549 = vmatpush3.bf16.msra.mxu1 %v8889_v26 }
 0x1bb   :  { %7550 = vmatprep.subr.bf16.mxu1 %v8890_v27 }
 0x1bd   :  { %7591 = vmatpush3.bf16.msra.mxu0 %v9508_v4 }
 0x1be   :  { %7616 = vmatprep.subr.bf16.mxu0 %v9494_v33  ;;  %7551 = vmatpush3.bf16.msra.mxu1 %v8890_v27  ;;  %v8912_v27 = vld [vmem:[%s10782_s3 + $0xc8] sm:$0xff]  }
 0x1bf   :  { %7556 = vmatprep.subr.bf16.mxu1 %v9615_v28 }
 0x1c0   :  { %7593 = vmatmul.mubr.bf16.vlgmr.msra.gmra.mrb[20].mxu0 %v8872_v8  ;;  %v8907_v8 = vld [vmem:[%s10782_s3 + $0xa0] sm:$0xff]  }
 0x1c1   :  { %7617 = vmatpush3.bf16.msra.mxu0 %v9494_v33  ;;  %7632 = vmatprep.mubr.bf16.mxu0 %v8873_v9  ;;  %v8908_v9 = vld [vmem:[%s10782_s3 + $0xa8] sm:$0xff]  }
 0x1c2   :  { %7618 = vmatprep.subr.bf16.mxu0 %v9496_v45 }
 0x1c5   :  { %7619 = vmatpush3.bf16.msra.mxu0 %v9496_v45 }
 0x1c6   :  { %7620 = vmatprep.subr.bf16.mxu0 %v9498_v53 }
 0x1c9   :  { %7621 = vmatpush3.bf16.msra.mxu0 %v9498_v53 }
 0x1ca   :  { %7622 = vmatprep.subr.bf16.mxu0 %v9500_v1 }
 0x1cd   :  { %7623 = vmatpush3.bf16.msra.mxu0 %v9500_v1 }
 0x1ce   :  { %7624 = vmatprep.subr.bf16.mxu0 %v9502_v2 }
 0x1d1   :  { %7625 = vmatpush3.bf16.msra.mxu0 %v9502_v2 }
 0x1d2   :  { %7626 = vmatprep.subr.bf16.mxu0 %v9504_v3 }
 0x1d5   :  { %7627 = vmatpush3.bf16.msra.mxu0 %v9504_v3 }
 0x1d6   :  { %7628 = vmatprep.subr.bf16.mxu0 %v9506_v21 }
 0x1d9   :  { %7629 = vmatpush3.bf16.msra.mxu0 %v9506_v21 }
 0x1da   :  { %7630 = vmatprep.subr.bf16.mxu0 %v9508_v4 }
 0x1dd   :  { %7631 = vmatpush3.bf16.msra.mxu0 %v9508_v4 }
 0x1de   :  { %7656 = vmatprep.subr.bf16.mxu0 %v9494_v33 }
 0x1e0   :  { %7633 = vmatmul.mubr.bf16.vlgmr.msra.gmra.mrb[24].mxu0 %v8874_v14 }
 0x1e1   :  { %7657 = vmatpush3.bf16.msra.mxu0 %v9494_v33  ;;  %7672 = vmatprep.mubr.bf16.mxu0 %v8875_v15  ;;  %v8911_v15 = vld [vmem:[%s10782_s3 + $0xc0] sm:$0xff]  }
 0x1e2   :  { %7658 = vmatprep.subr.bf16.mxu0 %v9496_v45 }
 0x1e5   :  { %7659 = vmatpush3.bf16.msra.mxu0 %v9496_v45 }
 0x1e6   :  { %7660 = vmatprep.subr.bf16.mxu0 %v9498_v53 }
 0x1e9   :  { %7661 = vmatpush3.bf16.msra.mxu0 %v9498_v53 }
 0x1ea   :  { %7662 = vmatprep.subr.bf16.mxu0 %v9500_v1 }
 0x1ed   :  { %7663 = vmatpush3.bf16.msra.mxu0 %v9500_v1 }
 0x1ee   :  { %7664 = vmatprep.subr.bf16.mxu0 %v9502_v2 }
 0x1f1   :  { %7665 = vmatpush3.bf16.msra.mxu0 %v9502_v2 }
 0x1f2   :  { %7666 = vmatprep.subr.bf16.mxu0 %v9504_v3 }
 0x1f5   :  { %7667 = vmatpush3.bf16.msra.mxu0 %v9504_v3 }
 0x1f6   :  { %7668 = vmatprep.subr.bf16.mxu0 %v9506_v21 }
 0x1f9   :  { %7669 = vmatpush3.bf16.msra.mxu0 %v9506_v21 }
 0x1fa   :  { %7670 = vmatprep.subr.bf16.mxu0 %v9508_v4 }
 0x1fd   :  { %7671 = vmatpush3.bf16.msra.mxu0 %v9508_v4 }
 0x1fe   :  { %7696 = vmatprep.subr.bf16.mxu0 %v9494_v33 }
 0x200   :  { %7673 = vmatmul.mubr.bf16.vlgmr.msra.gmra.mrb[28].mxu0 %v8876_v30  ;;  %v8915_v30 = vld [vmem:[#allocation4 + $0xa8] sm:$0xff]  }
 0x201   :  { %7697 = vmatpush3.bf16.msra.mxu0 %v9494_v33  ;;  %7712 = vmatprep.mubr.bf16.mxu0 %v8877_v34  ;;  %v8923_v34 = vld [vmem:[#allocation4 + $0xb0] sm:$0xff]  }
 0x202   :  { %7698 = vmatprep.subr.bf16.mxu0 %v9496_v45 }
 0x205   :  { %7699 = vmatpush3.bf16.msra.mxu0 %v9496_v45 }
 0x206   :  { %7700 = vmatprep.subr.bf16.mxu0 %v9498_v53 }
 0x209   :  { %7701 = vmatpush3.bf16.msra.mxu0 %v9498_v53 }
 0x20a   :  { %7702 = vmatprep.subr.bf16.mxu0 %v9500_v1 }
 0x20d   :  { %7703 = vmatpush3.bf16.msra.mxu0 %v9500_v1 }
 0x20e   :  { %7704 = vmatprep.subr.bf16.mxu0 %v9502_v2 }
 0x211   :  { %7705 = vmatpush3.bf16.msra.mxu0 %v9502_v2 }
 0x212   :  { %7706 = vmatprep.subr.bf16.mxu0 %v9504_v3 }
 0x215   :  { %7707 = vmatpush3.bf16.msra.mxu0 %v9504_v3 }
 0x216   :  { %7708 = vmatprep.subr.bf16.mxu0 %v9506_v21 }
 0x219   :  { %7709 = vmatpush3.bf16.msra.mxu0 %v9506_v21 }
 0x21a   :  { %7710 = vmatprep.subr.bf16.mxu0 %v9508_v4 }
 0x21d   :  { %7711 = vmatpush3.bf16.msra.mxu0 %v9508_v4 }
 0x21e   :  { %7736 = vmatprep.subr.bf16.mxu0 %v9494_v33 }
 0x220   :  { %7713 = vmatmul.mubr.bf16.vlgmr.msra.gmra.mrb[32].mxu0 %v8878_v35  ;;  %v8916_v35 = vld [vmem:[%s10782_s3 + $0xd8] sm:$0xff]  }
 0x221   :  { %7737 = vmatpush3.bf16.msra.mxu0 %v9494_v33  ;;  %7752 = vmatprep.mubr.bf16.mxu0 %v8879_v36  ;;  %v8917_v36 = vld [vmem:[%s10782_s3 + $0xe0] sm:$0xff]  }
 0x222   :  { %7738 = vmatprep.subr.bf16.mxu0 %v9496_v45 }
 0x225   :  { %7739 = vmatpush3.bf16.msra.mxu0 %v9496_v45 }
 0x226   :  { %7740 = vmatprep.subr.bf16.mxu0 %v9498_v53 }
 0x229   :  { %7741 = vmatpush3.bf16.msra.mxu0 %v9498_v53 }
 0x22a   :  { %7742 = vmatprep.subr.bf16.mxu0 %v9500_v1 }
 0x22d   :  { %7743 = vmatpush3.bf16.msra.mxu0 %v9500_v1 }
 0x22e   :  { %7744 = vmatprep.subr.bf16.mxu0 %v9502_v2 }
 0x231   :  { %7745 = vmatpush3.bf16.msra.mxu0 %v9502_v2 }
 0x232   :  { %7746 = vmatprep.subr.bf16.mxu0 %v9504_v3 }
 0x235   :  { %7747 = vmatpush3.bf16.msra.mxu0 %v9504_v3 }
 0x236   :  { %7748 = vmatprep.subr.bf16.mxu0 %v9506_v21 }
 0x239   :  { %7749 = vmatpush3.bf16.msra.mxu0 %v9506_v21 }
 0x23a   :  { %7750 = vmatprep.subr.bf16.mxu0 %v9508_v4 }
 0x23d   :  { %7751 = vmatpush3.bf16.msra.mxu0 %v9508_v4 }
 0x23e   :  { %7776 = vmatprep.subr.bf16.mxu0 %v9494_v33 }
 0x240   :  { %7753 = vmatmul.mubr.bf16.vlgmr.msra.gmra.mrb[36].mxu0 %v8880_v37  ;;  %v8918_v37 = vld [vmem:[%s10782_s3 + $0xe8] sm:$0xff]  }
 0x241   :  { %7777 = vmatpush3.bf16.msra.mxu0 %v9494_v33  ;;  %7792 = vmatprep.mubr.bf16.mxu0 %v8883_v38  ;;  %v8919_v38 = vld [vmem:[%s10782_s3 + $0xf0] sm:$0xff]  }
 0x242   :  { %7778 = vmatprep.subr.bf16.mxu0 %v9496_v45 }
 0x245   :  { %7779 = vmatpush3.bf16.msra.mxu0 %v9496_v45 }
 0x246   :  { %7780 = vmatprep.subr.bf16.mxu0 %v9498_v53 }
 0x249   :  { %7781 = vmatpush3.bf16.msra.mxu0 %v9498_v53 }
 0x24a   :  { %7782 = vmatprep.subr.bf16.mxu0 %v9500_v1 }
 0x24d   :  { %7783 = vmatpush3.bf16.msra.mxu0 %v9500_v1 }
 0x24e   :  { %7784 = vmatprep.subr.bf16.mxu0 %v9502_v2 }
 0x251   :  { %7785 = vmatpush3.bf16.msra.mxu0 %v9502_v2 }
 0x252   :  { %7786 = vmatprep.subr.bf16.mxu0 %v9504_v3 }
 0x255   :  { %7787 = vmatpush3.bf16.msra.mxu0 %v9504_v3 }
 0x256   :  { %7788 = vmatprep.subr.bf16.mxu0 %v9506_v21 }
 0x259   :  { %7789 = vmatpush3.bf16.msra.mxu0 %v9506_v21 }
 0x25a   :  { %7790 = vmatprep.subr.bf16.mxu0 %v9508_v4 }
 0x25d   :  { %7791 = vmatpush3.bf16.msra.mxu0 %v9508_v4 }
 0x25e   :  { %7816 = vmatprep.subr.bf16.mxu0 %v9494_v33 }
 0x260   :  { %7793 = vmatmul.mubr.bf16.vlgmr.msra.gmra.mrb[40].mxu0 %v8885_v39  ;;  %v8920_v39 = vld [vmem:[%s10782_s3 + $0xf8] sm:$0xff]  }
 0x261   :  { %7817 = vmatpush3.bf16.msra.mxu0 %v9494_v33  ;;  %7832 = vmatprep.mubr.bf16.mxu0 %v8893_v40 }
 0x262   :  { %7818 = vmatprep.subr.bf16.mxu0 %v9496_v45 }
 0x265   :  { %7819 = vmatpush3.bf16.msra.mxu0 %v9496_v45 }
 0x266   :  { %7820 = vmatprep.subr.bf16.mxu0 %v9498_v53 }
 0x269   :  { %7821 = vmatpush3.bf16.msra.mxu0 %v9498_v53 }
 0x26a   :  { %7822 = vmatprep.subr.bf16.mxu0 %v9500_v1 }
 0x26d   :  { %7823 = vmatpush3.bf16.msra.mxu0 %v9500_v1 }
 0x26e   :  { %7824 = vmatprep.subr.bf16.mxu0 %v9502_v2 }
 0x271   :  { %7825 = vmatpush3.bf16.msra.mxu0 %v9502_v2 }
 0x272   :  { %7826 = vmatprep.subr.bf16.mxu0 %v9504_v3 }
 0x273   :  { %v7534_v41 = vpop.f32.mrb[16].mxu0  ;;  %v9679_v43 = vpop.f32.mrb[0].mxu1 }
 0x274   :  { %v567_v44 = vpop.f32.mrb[17].mxu0  ;;  %v484_v46 = vpop.f32.mrb[1].mxu1 }
 0x275   :  { %v7535_v47 = vpop.f32.mrb[18].mxu0  ;;  %7827 = vmatpush3.bf16.msra.mxu0 %v9504_v3  ;;  %v9682_v29 = vpop.f32.mrb[2].mxu1 }
 0x276   :  { %v583_v32 = vpack.c.bf16 %v7535_v47, %v7534_v41  ;;  %v570_v48 = vpop.f32.mrb[19].mxu0  ;;  %7828 = vmatprep.subr.bf16.mxu0 %v9506_v21  ;;  %v500_v51 = vpack.c.bf16 %v9682_v29, %v9679_v43  ;;  %v487_v31 = vpop.f32.mrb[3].mxu1  ;;  %v8921_v41 = vld [vmem:[%s10782_s3 + $0x100] sm:$0xff]  }
 0x277   :  { %v582_v49 = vpack.c.bf16 %v570_v48, %v567_v44  ;;  %v499_v54 = vpack.c.bf16 %v487_v31, %v484_v46  ;;  %v8924_v48 = vld [vmem:[%s10782_s3 + $0x110] sm:$0xff]   ;;  %v8933_v31 = vld [vmem:[#allocation4 + $0xc0] sm:$0xff]  }
 0x279   :  { %7552 = vmatprep.mubr.bf16.mxu1 %v582_v49  ;;  %7829 = vmatpush3.bf16.msra.mxu0 %v9506_v21  ;;  %v8926_v49 = vld [vmem:[%s10782_s3 + $0x118] sm:$0xff]  }
 0x27a   :  { %7553 = vmatmul.mubr.bf16.vlgmr.msra.gmra.mrb[4].mxu1 %v583_v32  ;;  %7830 = vmatprep.subr.bf16.mxu0 %v9508_v4  ;;  %v8922_v32 = vld [vmem:[%s10782_s3 + $0x108] sm:$0xff]  }
 0x27b   :  { %7557 = vmatpush3.bf16.msra.mxu1 %v9615_v28  ;;  %7572 = vmatprep.mubr.bf16.mxu1 %v499_v54  ;;  %v8914_v28 = vld [vmem:[%s10782_s3 + $0xd0] sm:$0xff]   ;;  %v8927_v54 = vld [vmem:[%s10782_s3 + $0x120] sm:$0xff]  }
 0x27c   :  { %7558 = vmatprep.subr.bf16.mxu1 %v8892_v56 }
 0x27d   :  { %7831 = vmatpush3.bf16.msra.mxu0 %v9508_v4 }
 0x27e   :  { %7856 = vmatprep.subr.bf16.mxu0 %v9494_v33 }
 0x27f   :  { %7559 = vmatpush3.bf16.msra.mxu1 %v8892_v56  ;;  %v8928_v56 = vld [vmem:[%s10782_s3 + $0x128] sm:$0xff]  }
 0x280   :  { %7560 = vmatprep.subr.bf16.mxu1 %v8894_v55  ;;  %7833 = vmatmul.mubr.bf16.vlgmr.msra.gmra.mrb[44].mxu0 %v8895_v52  ;;  %v8930_v52 = vld [vmem:[%s10782_s3 + $0x138] sm:$0xff]  }
 0x281   :  { %7857 = vmatpush3.bf16.msra.mxu0 %v9494_v33  ;;  %7872 = vmatprep.mubr.bf16.mxu0 %v8903_v58 }
 0x282   :  { %7858 = vmatprep.subr.bf16.mxu0 %v9496_v45 }
 0x283   :  { %7561 = vmatpush3.bf16.msra.mxu1 %v8894_v55  ;;  %v8929_v55 = vld [vmem:[%s10782_s3 + $0x130] sm:$0xff]  }
 0x284   :  { %7562 = vmatprep.subr.bf16.mxu1 %v8896_v20 }
 0x285   :  { %7859 = vmatpush3.bf16.msra.mxu0 %v9496_v45 }
 0x286   :  { %7860 = vmatprep.subr.bf16.mxu0 %v9498_v53 }
 0x287   :  { %7563 = vmatpush3.bf16.msra.mxu1 %v8896_v20  ;;  %v8931_v20 = vld [vmem:[%s10782_s3 + $0x140] sm:$0xff]  }
 0x288   :  { %7564 = vmatprep.subr.bf16.mxu1 %v8897_v59 }
 0x289   :  { %7861 = vmatpush3.bf16.msra.mxu0 %v9498_v53 }
 0x28a   :  { %7862 = vmatprep.subr.bf16.mxu0 %v9500_v1 }
 0x28b   :  { %7565 = vmatpush3.bf16.msra.mxu1 %v8897_v59 }
 0x28c   :  { %7566 = vmatprep.subr.bf16.mxu1 %v8898_v57 }
 0x28d   :  { %7863 = vmatpush3.bf16.msra.mxu0 %v9500_v1 }
 0x28e   :  { %7864 = vmatprep.subr.bf16.mxu0 %v9502_v2 }
 0x28f   :  { %7567 = vmatpush3.bf16.msra.mxu1 %v8898_v57 }
 0x290   :  { %7568 = vmatprep.subr.bf16.mxu1 %v8899_v60 }
 0x291   :  { %7865 = vmatpush3.bf16.msra.mxu0 %v9502_v2 }
 0x292   :  { %7866 = vmatprep.subr.bf16.mxu0 %v9504_v3 }
 0x293   :  { %7569 = vmatpush3.bf16.msra.mxu1 %v8899_v60  ;;  %v9723_v61 = vpop.f32.mrb[20].mxu0 }
 0x294   :  { %7570 = vmatprep.subr.bf16.mxu1 %v8900_v10  ;;  %v844_v62 = vpop.f32.mrb[21].mxu0 }
 0x295   :  { %7867 = vmatpush3.bf16.msra.mxu0 %v9504_v3  ;;  %v7595_v13 = vpop.f32.mrb[22].mxu0 }
 0x296   :  { %7868 = vmatprep.subr.bf16.mxu0 %v9506_v21  ;;  %v860_v63 = vpack.c.bf16 %v7595_v13, %v9723_v61  ;;  %v847_v22 = vpop.f32.mrb[23].mxu0  ;;  %v8935_v13 = vld [vmem:[#allocation4 + $0xc8] sm:$0xff]  }
 0x297   :  { %7571 = vmatpush3.bf16.msra.mxu1 %v8900_v10  ;;  %v859_v42 = vpack.c.bf16 %v847_v22, %v844_v62  ;;  %v8934_v62 = vld [vmem:[%s10782_s3 + $0x150] sm:$0xff]   ;;  %v8936_v22 = vld [vmem:[%s10782_s3 + $0x158] sm:$0xff]  }
 0x298   :  { %7596 = vmatprep.subr.bf16.mxu1 %v8901_v17 }
 0x299   :  { %7869 = vmatpush3.bf16.msra.mxu0 %v9506_v21 }
 0x29a   :  { %7573 = vmatmul.mubr.bf16.vlgmr.msra.gmra.mrb[4].mxu1 %v500_v51  ;;  %7870 = vmatprep.subr.bf16.mxu0 %v9508_v4  ;;  %v8925_v51 = vld [vmem:[#allocation4 + $0xb8] sm:$0xff]  }
 0x29b   :  { %7597 = vmatpush3.bf16.msra.mxu1 %v8901_v17  ;;  %7612 = vmatprep.mubr.bf16.mxu1 %v859_v42  ;;  %v8932_v17 = vld [vmem:[%s10782_s3 + $0x148] sm:$0xff]   ;;  %v8937_v42 = vld [vmem:[%s10782_s3 + $0x160] sm:$0xff]  }
 0x29c   :  { %7598 = vmatprep.subr.bf16.mxu1 %v8902_v50 }
 0x29d   :  { %7871 = vmatpush3.bf16.msra.mxu0 %v9508_v4 }
 0x29e   :  { %7896 = vmatprep.subr.bf16.mxu0 %v9494_v33 }
 0x29f   :  { %7599 = vmatpush3.bf16.msra.mxu1 %v8902_v50  ;;  %v8938_v50 = vld [vmem:[%s10782_s3 + $0x168] sm:$0xff]  }
 0x2a0   :  { %7600 = vmatprep.subr.bf16.mxu1 %v8904_v0  ;;  %7873 = vmatmul.mubr.bf16.vlgmr.msra.gmra.mrb[48].mxu0 %v8905_v5  ;;  %v8940_v5 = vld [vmem:[%s10782_s3 + $0x178] sm:$0xff]  }
 0x2a1   :  { %7897 = vmatpush3.bf16.msra.mxu0 %v9494_v33  ;;  %7912 = vmatprep.mubr.bf16.mxu0 %v8913_v6 }
 0x2a2   :  { %7898 = vmatprep.subr.bf16.mxu0 %v9496_v45 }
 0x2a3   :  { %7601 = vmatpush3.bf16.msra.mxu1 %v8904_v0  ;;  %v8939_v0 = vld [vmem:[%s10782_s3 + $0x170] sm:$0xff]  }
 0x2a4   :  { %7602 = vmatprep.subr.bf16.mxu1 %v8906_v7 }
 0x2a5   :  { %7899 = vmatpush3.bf16.msra.mxu0 %v9496_v45 }
 0x2a6   :  { %7900 = vmatprep.subr.bf16.mxu0 %v9498_v53 }
 0x2a7   :  { %7603 = vmatpush3.bf16.msra.mxu1 %v8906_v7  ;;  %v8941_v7 = vld [vmem:[%s10782_s3 + $0x180] sm:$0xff]  }
 0x2a8   :  { %7604 = vmatprep.subr.bf16.mxu1 %v8907_v8 }
 0x2a9   :  { %7901 = vmatpush3.bf16.msra.mxu0 %v9498_v53 }
 0x2aa   :  { %7902 = vmatprep.subr.bf16.mxu0 %v9500_v1 }
 0x2ab   :  { %7605 = vmatpush3.bf16.msra.mxu1 %v8907_v8 }
 0x2ac   :  { %7606 = vmatprep.subr.bf16.mxu1 %v8908_v9 }
 0x2ad   :  { %7903 = vmatpush3.bf16.msra.mxu0 %v9500_v1 }
 0x2ae   :  { %7904 = vmatprep.subr.bf16.mxu0 %v9502_v2 }
 0x2af   :  { %7607 = vmatpush3.bf16.msra.mxu1 %v8908_v9 }
 0x2b0   :  { %7608 = vmatprep.subr.bf16.mxu1 %v8909_v11 }
 0x2b1   :  { %7905 = vmatpush3.bf16.msra.mxu0 %v9502_v2 }
 0x2b2   :  { %7906 = vmatprep.subr.bf16.mxu0 %v9504_v3 }
 0x2b3   :  { %7609 = vmatpush3.bf16.msra.mxu1 %v8909_v11  ;;  %v9766_v14 = vpop.f32.mrb[24].mxu0 }
 0x2b4   :  { %7610 = vmatprep.subr.bf16.mxu1 %v8910_v12  ;;  %v1028_v16 = vpop.f32.mrb[25].mxu0 }
 0x2b5   :  { %7907 = vmatpush3.bf16.msra.mxu0 %v9504_v3  ;;  %v7635_v23 = vpop.f32.mrb[26].mxu0 }
 0x2b6   :  { %7908 = vmatprep.subr.bf16.mxu0 %v9506_v21  ;;  %v1044_v24 = vpack.c.bf16 %v7635_v23, %v9766_v14  ;;  %v1031_v25 = vpop.f32.mrb[27].mxu0  ;;  %v8945_v23 = vld [vmem:[#allocation4 + $0xd8] sm:$0xff]  }
 0x2b7   :  { %7611 = vmatpush3.bf16.msra.mxu1 %v8910_v12  ;;  %v1043_v26 = vpack.c.bf16 %v1031_v25, %v1028_v16  ;;  %v8944_v16 = vld [vmem:[%s10782_s3 + $0x190] sm:$0xff]   ;;  %v8946_v25 = vld [vmem:[%s10782_s3 + $0x198] sm:$0xff]  }
 0x2b8   :  { %7636 = vmatprep.subr.bf16.mxu1 %v8911_v15 }
 0x2b9   :  { %7909 = vmatpush3.bf16.msra.mxu0 %v9506_v21 }
 0x2ba   :  { %7613 = vmatmul.mubr.bf16.vlgmr.msra.gmra.mrb[4].mxu1 %v860_v63  ;;  %7910 = vmatprep.subr.bf16.mxu0 %v9508_v4  ;;  %v8943_v63 = vld [vmem:[#allocation4 + $0xd0] sm:$0xff]  }
 0x2bb   :  { %7637 = vmatpush3.bf16.msra.mxu1 %v8911_v15  ;;  %7652 = vmatprep.mubr.bf16.mxu1 %v1043_v26  ;;  %v8942_v15 = vld [vmem:[%s10782_s3 + $0x188] sm:$0xff]   ;;  %v8947_v26 = vld [vmem:[%s10782_s3 + $0x1a0] sm:$0xff]  }
 0x2bc   :  { %7638 = vmatprep.subr.bf16.mxu1 %v8912_v27 }
 0x2bd   :  { %7911 = vmatpush3.bf16.msra.mxu0 %v9508_v4 }
 0x2be   :  { %7936 = vmatprep.subr.bf16.mxu0 %v9494_v33 }
 0x2bf   :  { %7639 = vmatpush3.bf16.msra.mxu1 %v8912_v27  ;;  %v8948_v27 = vld [vmem:[%s10782_s3 + $0x1a8] sm:$0xff]  }
 0x2c0   :  { %7640 = vmatprep.subr.bf16.mxu1 %v8914_v28  ;;  %7913 = vmatmul.mubr.bf16.vlgmr.msra.gmra.mrb[52].mxu0 %v8915_v30  ;;  %v8950_v30 = vld [vmem:[%s10782_s3 + $0x1b8] sm:$0xff]  }
 0x2c1   :  { %7937 = vmatpush3.bf16.msra.mxu0 %v9494_v33  ;;  %7952 = vmatprep.mubr.bf16.mxu0 %v8923_v34 }
 0x2c2   :  { %7938 = vmatprep.subr.bf16.mxu0 %v9496_v45 }
 0x2c3   :  { %7641 = vmatpush3.bf16.msra.mxu1 %v8914_v28  ;;  %v8949_v28 = vld [vmem:[%s10782_s3 + $0x1b0] sm:$0xff]  }
 0x2c4   :  { %7642 = vmatprep.subr.bf16.mxu1 %v8916_v35 }
 0x2c5   :  { %7939 = vmatpush3.bf16.msra.mxu0 %v9496_v45 }
 0x2c6   :  { %7940 = vmatprep.subr.bf16.mxu0 %v9498_v53 }
 0x2c7   :  { %7643 = vmatpush3.bf16.msra.mxu1 %v8916_v35  ;;  %v8951_v35 = vld [vmem:[%s10782_s3 + $0x1c0] sm:$0xff]  }
 0x2c8   :  { %7644 = vmatprep.subr.bf16.mxu1 %v8917_v36 }
 0x2c9   :  { %7941 = vmatpush3.bf16.msra.mxu0 %v9498_v53 }
 0x2ca   :  { %7942 = vmatprep.subr.bf16.mxu0 %v9500_v1 }
 0x2cb   :  { %7645 = vmatpush3.bf16.msra.mxu1 %v8917_v36 }
 0x2cc   :  { %7646 = vmatprep.subr.bf16.mxu1 %v8918_v37 }
 0x2cd   :  { %7943 = vmatpush3.bf16.msra.mxu0 %v9500_v1 }
 0x2ce   :  { %7944 = vmatprep.subr.bf16.mxu0 %v9502_v2 }
 0x2cf   :  { %7647 = vmatpush3.bf16.msra.mxu1 %v8918_v37 }
 0x2d0   :  { %7648 = vmatprep.subr.bf16.mxu1 %v8919_v38 }
 0x2d1   :  { %7945 = vmatpush3.bf16.msra.mxu0 %v9502_v2 }
 0x2d2   :  { %7946 = vmatprep.subr.bf16.mxu0 %v9504_v3 }
 0x2d3   :  { %7649 = vmatpush3.bf16.msra.mxu1 %v8919_v38  ;;  %v9809_v40 = vpop.f32.mrb[28].mxu0 }
 0x2d4   :  { %7650 = vmatprep.subr.bf16.mxu1 %v8920_v39  ;;  %v1212_v43 = vpop.f32.mrb[29].mxu0 }
 0x2d5   :  { %7947 = vmatpush3.bf16.msra.mxu0 %v9504_v3  ;;  %v7675_v44 = vpop.f32.mrb[30].mxu0 }
 0x2d6   :  { %7948 = vmatprep.subr.bf16.mxu0 %v9506_v21  ;;  %v1228_v46 = vpack.c.bf16 %v7675_v44, %v9809_v40  ;;  %v1215_v47 = vpop.f32.mrb[31].mxu0  ;;  %v8955_v44 = vld [vmem:[#allocation4 + $0xe8] sm:$0xff]  }
 0x2d7   :  { %7651 = vmatpush3.bf16.msra.mxu1 %v8920_v39  ;;  %v1227_v29 = vpack.c.bf16 %v1215_v47, %v1212_v43  ;;  %v8954_v43 = vld [vmem:[%s10782_s3 + $0x1d0] sm:$0xff]   ;;  %v8956_v47 = vld [vmem:[%s10782_s3 + $0x1d8] sm:$0xff]  }
 0x2d8   :  { %7676 = vmatprep.subr.bf16.mxu1 %v8921_v41 }
 0x2d9   :  { %7949 = vmatpush3.bf16.msra.mxu0 %v9506_v21 }
 0x2da   :  { %7653 = vmatmul.mubr.bf16.vlgmr.msra.gmra.mrb[4].mxu1 %v1044_v24  ;;  %7950 = vmatprep.subr.bf16.mxu0 %v9508_v4  ;;  %v8953_v24 = vld [vmem:[#allocation4 + $0xe0] sm:$0xff]  }
 0x2db   :  { %7677 = vmatpush3.bf16.msra.mxu1 %v8921_v41  ;;  %7692 = vmatprep.mubr.bf16.mxu1 %v1227_v29  ;;  %v8952_v41 = vld [vmem:[%s10782_s3 + $0x1c8] sm:$0xff]   ;;  %v8957_v29 = vld [vmem:[%s10782_s3 + $0x1e0] sm:$0xff]  }
 0x2dc   :  { %7678 = vmatprep.subr.bf16.mxu1 %v8922_v32 }
 0x2dd   :  { %7951 = vmatpush3.bf16.msra.mxu0 %v9508_v4 }
 0x2de   :  { %7976 = vmatprep.subr.bf16.mxu0 %v9494_v33 }
 0x2df   :  { %7679 = vmatpush3.bf16.msra.mxu1 %v8922_v32  ;;  %v8958_v32 = vld [vmem:[%s10782_s3 + $0x1e8] sm:$0xff]  }
 0x2e0   :  { %7680 = vmatprep.subr.bf16.mxu1 %v8924_v48  ;;  %7953 = vmatmul.mubr.bf16.vlgmr.msra.gmra.mrb[56].mxu0 %v8925_v51  ;;  %v8960_v51 = vld [vmem:[%s10782_s3 + $0x1f8] sm:$0xff]  }
 0x2e1   :  { %7977 = vmatpush3.bf16.msra.mxu0 %v9494_v33  ;;  %7992 = vmatprep.mubr.bf16.mxu0 %v8933_v31 }
 0x2e2   :  { %7978 = vmatprep.subr.bf16.mxu0 %v9496_v45 }
 0x2e3   :  { %7681 = vmatpush3.bf16.msra.mxu1 %v8924_v48  ;;  %v8959_v48 = vld [vmem:[%s10782_s3 + $0x1f0] sm:$0xff]  }
 0x2e4   :  { %7682 = vmatprep.subr.bf16.mxu1 %v8926_v49 }
 0x2e5   :  { %7979 = vmatpush3.bf16.msra.mxu0 %v9496_v45 }
 0x2e6   :  { %7980 = vmatprep.subr.bf16.mxu0 %v9498_v53 }
 0x2e7   :  { %7683 = vmatpush3.bf16.msra.mxu1 %v8926_v49  ;;  %v8961_v49 = vld [vmem:[%s10782_s3 + $0x200] sm:$0xff]  }
 0x2e8   :  { %7684 = vmatprep.subr.bf16.mxu1 %v8927_v54 }
 0x2e9   :  { %7981 = vmatpush3.bf16.msra.mxu0 %v9498_v53 }
 0x2ea   :  { %7982 = vmatprep.subr.bf16.mxu0 %v9500_v1 }
 0x2eb   :  { %7685 = vmatpush3.bf16.msra.mxu1 %v8927_v54 }
 0x2ec   :  { %7686 = vmatprep.subr.bf16.mxu1 %v8928_v56 }
 0x2ed   :  { %7983 = vmatpush3.bf16.msra.mxu0 %v9500_v1 }
 0x2ee   :  { %7984 = vmatprep.subr.bf16.mxu0 %v9502_v2 }
 0x2ef   :  { %7687 = vmatpush3.bf16.msra.mxu1 %v8928_v56 }
 0x2f0   :  { %7688 = vmatprep.subr.bf16.mxu1 %v8929_v55 }
 0x2f1   :  { %7985 = vmatpush3.bf16.msra.mxu0 %v9502_v2 }
 0x2f2   :  { %7986 = vmatprep.subr.bf16.mxu0 %v9504_v3 }
 0x2f3   :  { %7689 = vmatpush3.bf16.msra.mxu1 %v8929_v55  ;;  %v9852_v58 = vpop.f32.mrb[32].mxu0 }
 0x2f4   :  { %7690 = vmatprep.subr.bf16.mxu1 %v8930_v52  ;;  %v1396_v59 = vpop.f32.mrb[33].mxu0 }
 0x2f5   :  { %7987 = vmatpush3.bf16.msra.mxu0 %v9504_v3  ;;  %v7715_v57 = vpop.f32.mrb[34].mxu0 }
 0x2f6   :  { %7988 = vmatprep.subr.bf16.mxu0 %v9506_v21  ;;  %v1412_v60 = vpack.c.bf16 %v7715_v57, %v9852_v58  ;;  %v1399_v10 = vpop.f32.mrb[35].mxu0  ;;  %v8965_v57 = vld [vmem:[#allocation4 + $0xf8] sm:$0xff]  }
 0x2f7   :  { %7691 = vmatpush3.bf16.msra.mxu1 %v8930_v52  ;;  %v1411_v61 = vpack.c.bf16 %v1399_v10, %v1396_v59  ;;  %v8964_v59 = vld [vmem:[%s10782_s3 + $0x210] sm:$0xff]   ;;  %v8966_v10 = vld [vmem:[%s10782_s3 + $0x218] sm:$0xff]  }
 0x2f8   :  { %7716 = vmatprep.subr.bf16.mxu1 %v8931_v20 }
 0x2f9   :  { %7989 = vmatpush3.bf16.msra.mxu0 %v9506_v21 }
 0x2fa   :  { %7693 = vmatmul.mubr.bf16.vlgmr.msra.gmra.mrb[4].mxu1 %v1228_v46  ;;  %7990 = vmatprep.subr.bf16.mxu0 %v9508_v4  ;;  %v8963_v46 = vld [vmem:[#allocation4 + $0xf0] sm:$0xff]  }
 0x2fb   :  { %7717 = vmatpush3.bf16.msra.mxu1 %v8931_v20  ;;  %7732 = vmatprep.mubr.bf16.mxu1 %v1411_v61  ;;  %v8962_v20 = vld [vmem:[%s10782_s3 + $0x208] sm:$0xff]   ;;  %v8967_v61 = vld [vmem:[%s10782_s3 + $0x220] sm:$0xff]  }
 0x2fc   :  { %7718 = vmatprep.subr.bf16.mxu1 %v8932_v17 }
 0x2fd   :  { %7991 = vmatpush3.bf16.msra.mxu0 %v9508_v4 }
 0x2fe   :  { %8016 = vmatprep.subr.bf16.mxu0 %v9494_v33 }
 0x2ff   :  { %7719 = vmatpush3.bf16.msra.mxu1 %v8932_v17  ;;  %v8968_v17 = vld [vmem:[%s10782_s3 + $0x228] sm:$0xff]  }
 0x300   :  { %7720 = vmatprep.subr.bf16.mxu1 %v8934_v62  ;;  %7993 = vmatmul.mubr.bf16.vlgmr.msra.gmra.mrb[60].mxu0 %v8935_v13  ;;  %v8970_v13 = vld [vmem:[%s10782_s3 + $0x238] sm:$0xff]  }
 0x301   :  { %8017 = vmatpush3.bf16.msra.mxu0 %v9494_v33  ;;  %8032 = vmatprep.mubr.bf16.mxu0 %v8943_v63 }
 0x302   :  { %8018 = vmatprep.subr.bf16.mxu0 %v9496_v45 }
 0x303   :  { %7721 = vmatpush3.bf16.msra.mxu1 %v8934_v62  ;;  %v8969_v62 = vld [vmem:[%s10782_s3 + $0x230] sm:$0xff]  }
 0x304   :  { %7722 = vmatprep.subr.bf16.mxu1 %v8936_v22 }
 0x305   :  { %8019 = vmatpush3.bf16.msra.mxu0 %v9496_v45 }
 0x306   :  { %8020 = vmatprep.subr.bf16.mxu0 %v9498_v53 }
 0x307   :  { %7723 = vmatpush3.bf16.msra.mxu1 %v8936_v22  ;;  %v8971_v22 = vld [vmem:[%s10782_s3 + $0x240] sm:$0xff]  }
 0x308   :  { %7724 = vmatprep.subr.bf16.mxu1 %v8937_v42 }
 0x309   :  { %8021 = vmatpush3.bf16.msra.mxu0 %v9498_v53 }
 0x30a   :  { %8022 = vmatprep.subr.bf16.mxu0 %v9500_v1 }
 0x30b   :  { %7725 = vmatpush3.bf16.msra.mxu1 %v8937_v42 }
 0x30c   :  { %7726 = vmatprep.subr.bf16.mxu1 %v8938_v50 }
 0x30d   :  { %8023 = vmatpush3.bf16.msra.mxu0 %v9500_v1 }
 0x30e   :  { %8024 = vmatprep.subr.bf16.mxu0 %v9502_v2 }
 0x30f   :  { %7727 = vmatpush3.bf16.msra.mxu1 %v8938_v50 }
 0x310   :  { %7728 = vmatprep.subr.bf16.mxu1 %v8939_v0 }
 0x311   :  { %8025 = vmatpush3.bf16.msra.mxu0 %v9502_v2 }
 0x312   :  { %8026 = vmatprep.subr.bf16.mxu0 %v9504_v3 }
 0x313   :  { %7729 = vmatpush3.bf16.msra.mxu1 %v8939_v0  ;;  %v9895_v6 = vpop.f32.mrb[36].mxu0 }
 0x314   :  { %7730 = vmatprep.subr.bf16.mxu1 %v8940_v5  ;;  %v1580_v8 = vpop.f32.mrb[37].mxu0 }
 0x315   :  { %8027 = vmatpush3.bf16.msra.mxu0 %v9504_v3  ;;  %v7755_v9 = vpop.f32.mrb[38].mxu0 }
 0x316   :  { %8028 = vmatprep.subr.bf16.mxu0 %v9506_v21  ;;  %v1596_v11 = vpack.c.bf16 %v7755_v9, %v9895_v6  ;;  %v1583_v12 = vpop.f32.mrb[39].mxu0  ;;  %v8975_v9 = vld [vmem:[#allocation4 + $0x108] sm:$0xff]  }
 0x317   :  { %7731 = vmatpush3.bf16.msra.mxu1 %v8940_v5  ;;  %v1595_v14 = vpack.c.bf16 %v1583_v12, %v1580_v8  ;;  %v8974_v8 = vld [vmem:[%s10782_s3 + $0x250] sm:$0xff]   ;;  %v8976_v12 = vld [vmem:[%s10782_s3 + $0x258] sm:$0xff]  }
 0x318   :  { %7756 = vmatprep.subr.bf16.mxu1 %v8941_v7 }
 0x319   :  { %8029 = vmatpush3.bf16.msra.mxu0 %v9506_v21 }
 0x31a   :  { %7733 = vmatmul.mubr.bf16.vlgmr.msra.gmra.mrb[4].mxu1 %v1412_v60  ;;  %8030 = vmatprep.subr.bf16.mxu0 %v9508_v4  ;;  %v8973_v60 = vld [vmem:[#allocation4 + $0x100] sm:$0xff]  }
 0x31b   :  { %7757 = vmatpush3.bf16.msra.mxu1 %v8941_v7  ;;  %7772 = vmatprep.mubr.bf16.mxu1 %v1595_v14  ;;  %v8972_v7 = vld [vmem:[%s10782_s3 + $0x248] sm:$0xff]   ;;  %v8977_v14 = vld [vmem:[%s10782_s3 + $0x260] sm:$0xff]  }
 0x31c   :  { %7758 = vmatprep.subr.bf16.mxu1 %v8942_v15 }
 0x31d   :  { %8031 = vmatpush3.bf16.msra.mxu0 %v9508_v4 }
 0x31e   :  { %8056 = vmatprep.subr.bf16.mxu0 %v9494_v33 }
 0x31f   :  { %7759 = vmatpush3.bf16.msra.mxu1 %v8942_v15  ;;  %v8978_v15 = vld [vmem:[%s10782_s3 + $0x268] sm:$0xff]  }
 0x320   :  { %7760 = vmatprep.subr.bf16.mxu1 %v8944_v16  ;;  %8033 = vmatmul.mubr.bf16.vlgmr.msra.gmra.mrb[64].mxu0 %v8945_v23  ;;  %v8980_v23 = vld [vmem:[%s10782_s3 + $0x278] sm:$0xff]  }
 0x321   :  { %8057 = vmatpush3.bf16.msra.mxu0 %v9494_v33  ;;  %8072 = vmatprep.mubr.bf16.mxu0 %v8953_v24 }
 0x322   :  { %8058 = vmatprep.subr.bf16.mxu0 %v9496_v45 }
 0x323   :  { %7761 = vmatpush3.bf16.msra.mxu1 %v8944_v16  ;;  %v8979_v16 = vld [vmem:[%s10782_s3 + $0x270] sm:$0xff]  }
 0x324   :  { %7762 = vmatprep.subr.bf16.mxu1 %v8946_v25 }
 0x325   :  { %8059 = vmatpush3.bf16.msra.mxu0 %v9496_v45 }
 0x326   :  { %8060 = vmatprep.subr.bf16.mxu0 %v9498_v53 }
 0x327   :  { %7763 = vmatpush3.bf16.msra.mxu1 %v8946_v25  ;;  %v8981_v25 = vld [vmem:[%s10782_s3 + $0x280] sm:$0xff]  }
 0x328   :  { %7764 = vmatprep.subr.bf16.mxu1 %v8947_v26 }
 0x329   :  { %8061 = vmatpush3.bf16.msra.mxu0 %v9498_v53 }
 0x32a   :  { %8062 = vmatprep.subr.bf16.mxu0 %v9500_v1 }
 0x32b   :  { %7765 = vmatpush3.bf16.msra.mxu1 %v8947_v26 }
 0x32c   :  { %7766 = vmatprep.subr.bf16.mxu1 %v8948_v27 }
 0x32d   :  { %8063 = vmatpush3.bf16.msra.mxu0 %v9500_v1 }
 0x32e   :  { %8064 = vmatprep.subr.bf16.mxu0 %v9502_v2 }
 0x32f   :  { %7767 = vmatpush3.bf16.msra.mxu1 %v8948_v27 }
 0x330   :  { %7768 = vmatprep.subr.bf16.mxu1 %v8949_v28 }
 0x331   :  { %8065 = vmatpush3.bf16.msra.mxu0 %v9502_v2 }
 0x332   :  { %8066 = vmatprep.subr.bf16.mxu0 %v9504_v3 }
 0x333   :  { %7769 = vmatpush3.bf16.msra.mxu1 %v8949_v28  ;;  %v9938_v34 = vpop.f32.mrb[40].mxu0 }
 0x334   :  { %7770 = vmatprep.subr.bf16.mxu1 %v8950_v30  ;;  %v1764_v36 = vpop.f32.mrb[41].mxu0 }
 0x335   :  { %8067 = vmatpush3.bf16.msra.mxu0 %v9504_v3  ;;  %v7795_v37 = vpop.f32.mrb[42].mxu0 }
 0x336   :  { %8068 = vmatprep.subr.bf16.mxu0 %v9506_v21  ;;  %v1780_v38 = vpack.c.bf16 %v7795_v37, %v9938_v34  ;;  %v1767_v39 = vpop.f32.mrb[43].mxu0  ;;  %v8985_v37 = vld [vmem:[#allocation4 + $0x118] sm:$0xff]  }
 0x337   :  { %7771 = vmatpush3.bf16.msra.mxu1 %v8950_v30  ;;  %v1779_v40 = vpack.c.bf16 %v1767_v39, %v1764_v36  ;;  %v8984_v36 = vld [vmem:[%s10782_s3 + $0x290] sm:$0xff]   ;;  %v8986_v39 = vld [vmem:[%s10782_s3 + $0x298] sm:$0xff]  }
 0x338   :  { %7796 = vmatprep.subr.bf16.mxu1 %v8951_v35 }
 0x339   :  { %8069 = vmatpush3.bf16.msra.mxu0 %v9506_v21 }
 0x33a   :  { %7773 = vmatmul.mubr.bf16.vlgmr.msra.gmra.mrb[4].mxu1 %v1596_v11  ;;  %8070 = vmatprep.subr.bf16.mxu0 %v9508_v4  ;;  %v8983_v11 = vld [vmem:[#allocation4 + $0x110] sm:$0xff]  }
 0x33b   :  { %7797 = vmatpush3.bf16.msra.mxu1 %v8951_v35  ;;  %7812 = vmatprep.mubr.bf16.mxu1 %v1779_v40  ;;  %v8982_v35 = vld [vmem:[%s10782_s3 + $0x288] sm:$0xff]   ;;  %v8987_v40 = vld [vmem:[%s10782_s3 + $0x2a0] sm:$0xff]  }
 0x33c   :  { %7798 = vmatprep.subr.bf16.mxu1 %v8952_v41 }
 0x33d   :  { %8071 = vmatpush3.bf16.msra.mxu0 %v9508_v4 }
 0x33e   :  { %8096 = vmatprep.subr.bf16.mxu0 %v9494_v33 }
 0x33f   :  { %7799 = vmatpush3.bf16.msra.mxu1 %v8952_v41  ;;  %v8988_v41 = vld [vmem:[%s10782_s3 + $0x2a8] sm:$0xff]  }
 0x340   :  { %7800 = vmatprep.subr.bf16.mxu1 %v8954_v43  ;;  %8073 = vmatmul.mubr.bf16.vlgmr.msra.gmra.mrb[68].mxu0 %v8955_v44  ;;  %v8990_v44 = vld [vmem:[%s10782_s3 + $0x2b8] sm:$0xff]  }
 0x341   :  { %8097 = vmatpush3.bf16.msra.mxu0 %v9494_v33  ;;  %8112 = vmatprep.mubr.bf16.mxu0 %v8963_v46 }
 0x342   :  { %8098 = vmatprep.subr.bf16.mxu0 %v9496_v45 }
 0x343   :  { %7801 = vmatpush3.bf16.msra.mxu1 %v8954_v43  ;;  %v8989_v43 = vld [vmem:[%s10782_s3 + $0x2b0] sm:$0xff]  }
 0x344   :  { %7802 = vmatprep.subr.bf16.mxu1 %v8956_v47 }
 0x345   :  { %8099 = vmatpush3.bf16.msra.mxu0 %v9496_v45 }
 0x346   :  { %8100 = vmatprep.subr.bf16.mxu0 %v9498_v53 }
 0x347   :  { %7803 = vmatpush3.bf16.msra.mxu1 %v8956_v47  ;;  %v8991_v47 = vld [vmem:[%s10782_s3 + $0x2c0] sm:$0xff]  }
 0x348   :  { %7804 = vmatprep.subr.bf16.mxu1 %v8957_v29 }
 0x349   :  { %8101 = vmatpush3.bf16.msra.mxu0 %v9498_v53 }
 0x34a   :  { %8102 = vmatprep.subr.bf16.mxu0 %v9500_v1 }
 0x34b   :  { %7805 = vmatpush3.bf16.msra.mxu1 %v8957_v29 }
 0x34c   :  { %7806 = vmatprep.subr.bf16.mxu1 %v8958_v32 }
 0x34d   :  { %8103 = vmatpush3.bf16.msra.mxu0 %v9500_v1 }
 0x34e   :  { %8104 = vmatprep.subr.bf16.mxu0 %v9502_v2 }
 0x34f   :  { %7807 = vmatpush3.bf16.msra.mxu1 %v8958_v32 }
 0x350   :  { %7808 = vmatprep.subr.bf16.mxu1 %v8959_v48 }
 0x351   :  { %8105 = vmatpush3.bf16.msra.mxu0 %v9502_v2 }
 0x352   :  { %8106 = vmatprep.subr.bf16.mxu0 %v9504_v3 }
 0x353   :  { %7809 = vmatpush3.bf16.msra.mxu1 %v8959_v48  ;;  %v9981_v31 = vpop.f32.mrb[44].mxu0 }
 0x354   :  { %7810 = vmatprep.subr.bf16.mxu1 %v8960_v51  ;;  %v1948_v54 = vpop.f32.mrb[45].mxu0 }
 0x355   :  { %8107 = vmatpush3.bf16.msra.mxu0 %v9504_v3  ;;  %v7835_v56 = vpop.f32.mrb[46].mxu0 }
 0x356   :  { %8108 = vmatprep.subr.bf16.mxu0 %v9506_v21  ;;  %v1964_v55 = vpack.c.bf16 %v7835_v56, %v9981_v31  ;;  %v1951_v52 = vpop.f32.mrb[47].mxu0  ;;  %v8995_v56 = vld [vmem:[#allocation4 + $0x128] sm:$0xff]  }
 0x357   :  { %7811 = vmatpush3.bf16.msra.mxu1 %v8960_v51  ;;  %v1963_v58 = vpack.c.bf16 %v1951_v52, %v1948_v54  ;;  %v8994_v54 = vld [vmem:[%s10782_s3 + $0x2d0] sm:$0xff]   ;;  %v8996_v52 = vld [vmem:[%s10782_s3 + $0x2d8] sm:$0xff]  }
 0x358   :  { %7836 = vmatprep.subr.bf16.mxu1 %v8961_v49 }
 0x359   :  { %8109 = vmatpush3.bf16.msra.mxu0 %v9506_v21 }
 0x35a   :  { %7813 = vmatmul.mubr.bf16.vlgmr.msra.gmra.mrb[4].mxu1 %v1780_v38  ;;  %8110 = vmatprep.subr.bf16.mxu0 %v9508_v4  ;;  %v8993_v38 = vld [vmem:[#allocation4 + $0x120] sm:$0xff]  }
 0x35b   :  { %7837 = vmatpush3.bf16.msra.mxu1 %v8961_v49  ;;  %7852 = vmatprep.mubr.bf16.mxu1 %v1963_v58  ;;  %v8992_v49 = vld [vmem:[%s10782_s3 + $0x2c8] sm:$0xff]   ;;  %v8997_v58 = vld [vmem:[%s10782_s3 + $0x2e0] sm:$0xff]  }
 0x35c   :  { %7838 = vmatprep.subr.bf16.mxu1 %v8962_v20 }
 0x35d   :  { %8111 = vmatpush3.bf16.msra.mxu0 %v9508_v4 }
 0x35e   :  { %8136 = vmatprep.subr.bf16.mxu0 %v9494_v33 }
 0x35f   :  { %7839 = vmatpush3.bf16.msra.mxu1 %v8962_v20  ;;  %v8998_v20 = vld [vmem:[%s10782_s3 + $0x2e8] sm:$0xff]  }
 0x360   :  { %7840 = vmatprep.subr.bf16.mxu1 %v8964_v59  ;;  %8113 = vmatmul.mubr.bf16.vlgmr.msra.gmra.mrb[72].mxu0 %v8965_v57  ;;  %v9000_v57 = vld [vmem:[%s10782_s3 + $0x2f8] sm:$0xff]  }
 0x361   :  { %8137 = vmatpush3.bf16.msra.mxu0 %v9494_v33  ;;  %8152 = vmatprep.mubr.bf16.mxu0 %v8973_v60 }
 0x362   :  { %8138 = vmatprep.subr.bf16.mxu0 %v9496_v45 }
 0x363   :  { %7841 = vmatpush3.bf16.msra.mxu1 %v8964_v59  ;;  %v8999_v59 = vld [vmem:[%s10782_s3 + $0x2f0] sm:$0xff]  }
 0x364   :  { %7842 = vmatprep.subr.bf16.mxu1 %v8966_v10 }
 0x365   :  { %8139 = vmatpush3.bf16.msra.mxu0 %v9496_v45 }
 0x366   :  { %8140 = vmatprep.subr.bf16.mxu0 %v9498_v53 }
 0x367   :  { %7843 = vmatpush3.bf16.msra.mxu1 %v8966_v10  ;;  %v9001_v10 = vld [vmem:[%s10782_s3 + $0x300] sm:$0xff]  }
 0x368   :  { %7844 = vmatprep.subr.bf16.mxu1 %v8967_v61 }
 0x369   :  { %8141 = vmatpush3.bf16.msra.mxu0 %v9498_v53 }
 0x36a   :  { %8142 = vmatprep.subr.bf16.mxu0 %v9500_v1 }
 0x36b   :  { %7845 = vmatpush3.bf16.msra.mxu1 %v8967_v61 }
 0x36c   :  { %7846 = vmatprep.subr.bf16.mxu1 %v8968_v17 }
 0x36d   :  { %8143 = vmatpush3.bf16.msra.mxu0 %v9500_v1 }
 0x36e   :  { %8144 = vmatprep.subr.bf16.mxu0 %v9502_v2 }
 0x36f   :  { %7847 = vmatpush3.bf16.msra.mxu1 %v8968_v17 }
 0x370   :  { %7848 = vmatprep.subr.bf16.mxu1 %v8969_v62 }
 0x371   :  { %8145 = vmatpush3.bf16.msra.mxu0 %v9502_v2 }
 0x372   :  { %8146 = vmatprep.subr.bf16.mxu0 %v9504_v3 }
 0x373   :  { %7849 = vmatpush3.bf16.msra.mxu1 %v8969_v62  ;;  %v10024_v63 = vpop.f32.mrb[48].mxu0 }
 0x374   :  { %7850 = vmatprep.subr.bf16.mxu1 %v8970_v13  ;;  %v2132_v42 = vpop.f32.mrb[49].mxu0 }
 0x375   :  { %8147 = vmatpush3.bf16.msra.mxu0 %v9504_v3  ;;  %v7875_v50 = vpop.f32.mrb[50].mxu0 }
 0x376   :  { %8148 = vmatprep.subr.bf16.mxu0 %v9506_v21  ;;  %v2148_v0 = vpack.c.bf16 %v7875_v50, %v10024_v63  ;;  %v2135_v5 = vpop.f32.mrb[51].mxu0  ;;  %v9005_v50 = vld [vmem:[#allocation4 + $0x138] sm:$0xff]  }
 0x377   :  { %7851 = vmatpush3.bf16.msra.mxu1 %v8970_v13  ;;  %v2147_v6 = vpack.c.bf16 %v2135_v5, %v2132_v42  ;;  %v9004_v42 = vld [vmem:[%s10782_s3 + $0x310] sm:$0xff]   ;;  %v9006_v5 = vld [vmem:[%s10782_s3 + $0x318] sm:$0xff]  }
 0x378   :  { %7876 = vmatprep.subr.bf16.mxu1 %v8971_v22 }
 0x379   :  { %8149 = vmatpush3.bf16.msra.mxu0 %v9506_v21 }
 0x37a   :  { %7853 = vmatmul.mubr.bf16.vlgmr.msra.gmra.mrb[4].mxu1 %v1964_v55  ;;  %8150 = vmatprep.subr.bf16.mxu0 %v9508_v4  ;;  %v9003_v55 = vld [vmem:[#allocation4 + $0x130] sm:$0xff]  }
 0x37b   :  { %7877 = vmatpush3.bf16.msra.mxu1 %v8971_v22  ;;  %7892 = vmatprep.mubr.bf16.mxu1 %v2147_v6  ;;  %v9002_v22 = vld [vmem:[%s10782_s3 + $0x308] sm:$0xff]   ;;  %v9007_v6 = vld [vmem:[%s10782_s3 + $0x320] sm:$0xff]  }
 0x37c   :  { %7878 = vmatprep.subr.bf16.mxu1 %v8972_v7 }
 0x37d   :  { %8151 = vmatpush3.bf16.msra.mxu0 %v9508_v4 }
 0x37e   :  { %8176 = vmatprep.subr.bf16.mxu0 %v9494_v33 }
 0x37f   :  { %7879 = vmatpush3.bf16.msra.mxu1 %v8972_v7  ;;  %v9008_v7 = vld [vmem:[%s10782_s3 + $0x328] sm:$0xff]  }
 0x380   :  { %7880 = vmatprep.subr.bf16.mxu1 %v8974_v8  ;;  %8153 = vmatmul.mubr.bf16.vlgmr.msra.gmra.mrb[76].mxu0 %v8975_v9  ;;  %v9010_v9 = vld [vmem:[%s10782_s3 + $0x338] sm:$0xff]  }
 0x381   :  { %8177 = vmatpush3.bf16.msra.mxu0 %v9494_v33  ;;  %8192 = vmatprep.mubr.bf16.mxu0 %v8983_v11 }
 0x382   :  { %8178 = vmatprep.subr.bf16.mxu0 %v9496_v45 }
 0x383   :  { %7881 = vmatpush3.bf16.msra.mxu1 %v8974_v8  ;;  %v9009_v8 = vld [vmem:[%s10782_s3 + $0x330] sm:$0xff]  }
 0x384   :  { %7882 = vmatprep.subr.bf16.mxu1 %v8976_v12 }
 0x385   :  { %8179 = vmatpush3.bf16.msra.mxu0 %v9496_v45 }
 0x386   :  { %8180 = vmatprep.subr.bf16.mxu0 %v9498_v53 }
 0x387   :  { %7883 = vmatpush3.bf16.msra.mxu1 %v8976_v12  ;;  %v9011_v12 = vld [vmem:[%s10782_s3 + $0x340] sm:$0xff]  }
 0x388   :  { %7884 = vmatprep.subr.bf16.mxu1 %v8977_v14 }
 0x389   :  { %8181 = vmatpush3.bf16.msra.mxu0 %v9498_v53 }
 0x38a   :  { %8182 = vmatprep.subr.bf16.mxu0 %v9500_v1 }
 0x38b   :  { %7885 = vmatpush3.bf16.msra.mxu1 %v8977_v14 }
 0x38c   :  { %7886 = vmatprep.subr.bf16.mxu1 %v8978_v15 }
 0x38d   :  { %8183 = vmatpush3.bf16.msra.mxu0 %v9500_v1 }
 0x38e   :  { %8184 = vmatprep.subr.bf16.mxu0 %v9502_v2 }
 0x38f   :  { %7887 = vmatpush3.bf16.msra.mxu1 %v8978_v15 }
 0x390   :  { %7888 = vmatprep.subr.bf16.mxu1 %v8979_v16 }
 0x391   :  { %8185 = vmatpush3.bf16.msra.mxu0 %v9502_v2 }
 0x392   :  { %8186 = vmatprep.subr.bf16.mxu0 %v9504_v3 }
 0x393   :  { %7889 = vmatpush3.bf16.msra.mxu1 %v8979_v16  ;;  %v10067_v24 = vpop.f32.mrb[52].mxu0 }
 0x394   :  { %7890 = vmatprep.subr.bf16.mxu1 %v8980_v23  ;;  %v2316_v26 = vpop.f32.mrb[53].mxu0 }
 0x395   :  { %8187 = vmatpush3.bf16.msra.mxu0 %v9504_v3  ;;  %v7915_v27 = vpop.f32.mrb[54].mxu0 }
 0x396   :  { %8188 = vmatprep.subr.bf16.mxu0 %v9506_v21  ;;  %v2332_v28 = vpack.c.bf16 %v7915_v27, %v10067_v24  ;;  %v2319_v30 = vpop.f32.mrb[55].mxu0  ;;  %v9015_v27 = vld [vmem:[#allocation4 + $0x148] sm:$0xff]  }
 0x397   :  { %7891 = vmatpush3.bf16.msra.mxu1 %v8980_v23  ;;  %v2331_v34 = vpack.c.bf16 %v2319_v30, %v2316_v26  ;;  %v9014_v26 = vld [vmem:[%s10782_s3 + $0x350] sm:$0xff]   ;;  %v9016_v30 = vld [vmem:[%s10782_s3 + $0x358] sm:$0xff]  }
 0x398   :  { %7916 = vmatprep.subr.bf16.mxu1 %v8981_v25 }
 0x399   :  { %8189 = vmatpush3.bf16.msra.mxu0 %v9506_v21 }
 0x39a   :  { %7893 = vmatmul.mubr.bf16.vlgmr.msra.gmra.mrb[4].mxu1 %v2148_v0  ;;  %8190 = vmatprep.subr.bf16.mxu0 %v9508_v4  ;;  %v9013_v0 = vld [vmem:[#allocation4 + $0x140] sm:$0xff]  }
 0x39b   :  { %7917 = vmatpush3.bf16.msra.mxu1 %v8981_v25  ;;  %7932 = vmatprep.mubr.bf16.mxu1 %v2331_v34  ;;  %v9012_v25 = vld [vmem:[%s10782_s3 + $0x348] sm:$0xff]   ;;  %v9017_v34 = vld [vmem:[%s10782_s3 + $0x360] sm:$0xff]  }
 0x39c   :  { %7918 = vmatprep.subr.bf16.mxu1 %v8982_v35 }
 0x39d   :  { %8191 = vmatpush3.bf16.msra.mxu0 %v9508_v4 }
 0x39e   :  { %8216 = vmatprep.subr.bf16.mxu0 %v9494_v33 }
 0x39f   :  { %7919 = vmatpush3.bf16.msra.mxu1 %v8982_v35  ;;  %v9018_v35 = vld [vmem:[%s10782_s3 + $0x368] sm:$0xff]  }
 0x3a0   :  { %7920 = vmatprep.subr.bf16.mxu1 %v8984_v36  ;;  %8193 = vmatmul.mubr.bf16.vlgmr.msra.gmra.mrb[80].mxu0 %v8985_v37  ;;  %v9020_v37 = vld [vmem:[%s10782_s3 + $0x378] sm:$0xff]  }
 0x3a1   :  { %8217 = vmatpush3.bf16.msra.mxu0 %v9494_v33  ;;  %8232 = vmatprep.mubr.bf16.mxu0 %v8993_v38 }
 0x3a2   :  { %8218 = vmatprep.subr.bf16.mxu0 %v9496_v45 }
 0x3a3   :  { %7921 = vmatpush3.bf16.msra.mxu1 %v8984_v36  ;;  %v9019_v36 = vld [vmem:[%s10782_s3 + $0x370] sm:$0xff]  }
 0x3a4   :  { %7922 = vmatprep.subr.bf16.mxu1 %v8986_v39 }
 0x3a5   :  { %8219 = vmatpush3.bf16.msra.mxu0 %v9496_v45 }
 0x3a6   :  { %8220 = vmatprep.subr.bf16.mxu0 %v9498_v53 }
 0x3a7   :  { %7923 = vmatpush3.bf16.msra.mxu1 %v8986_v39  ;;  %v9021_v39 = vld [vmem:[%s10782_s3 + $0x380] sm:$0xff]  }
 0x3a8   :  { %7924 = vmatprep.subr.bf16.mxu1 %v8987_v40 }
 0x3a9   :  { %8221 = vmatpush3.bf16.msra.mxu0 %v9498_v53 }
 0x3aa   :  { %8222 = vmatprep.subr.bf16.mxu0 %v9500_v1 }
 0x3ab   :  { %7925 = vmatpush3.bf16.msra.mxu1 %v8987_v40 }
 0x3ac   :  { %7926 = vmatprep.subr.bf16.mxu1 %v8988_v41 }
 0x3ad   :  { %8223 = vmatpush3.bf16.msra.mxu0 %v9500_v1 }
 0x3ae   :  { %8224 = vmatprep.subr.bf16.mxu0 %v9502_v2 }
 0x3af   :  { %7927 = vmatpush3.bf16.msra.mxu1 %v8988_v41 }
 0x3b0   :  { %7928 = vmatprep.subr.bf16.mxu1 %v8989_v43 }
 0x3b1   :  { %8225 = vmatpush3.bf16.msra.mxu0 %v9502_v2 }
 0x3b2   :  { %8226 = vmatprep.subr.bf16.mxu0 %v9504_v3 }
 0x3b3   :  { %7929 = vmatpush3.bf16.msra.mxu1 %v8989_v43  ;;  %v10110_v46 = vpop.f32.mrb[56].mxu0 }
 0x3b4   :  { %7930 = vmatprep.subr.bf16.mxu1 %v8990_v44  ;;  %v2500_v29 = vpop.f32.mrb[57].mxu0 }
 0x3b5   :  { %8227 = vmatpush3.bf16.msra.mxu0 %v9504_v3  ;;  %v7955_v32 = vpop.f32.mrb[58].mxu0 }
 0x3b6   :  { %8228 = vmatprep.subr.bf16.mxu0 %v9506_v21  ;;  %v2516_v48 = vpack.c.bf16 %v7955_v32, %v10110_v46  ;;  %v2503_v51 = vpop.f32.mrb[59].mxu0  ;;  %v9025_v32 = vld [vmem:[#allocation4 + $0x158] sm:$0xff]  }
 0x3b7   :  { %7931 = vmatpush3.bf16.msra.mxu1 %v8990_v44  ;;  %v2515_v31 = vpack.c.bf16 %v2503_v51, %v2500_v29  ;;  %v9024_v29 = vld [vmem:[%s10782_s3 + $0x390] sm:$0xff]   ;;  %v9026_v51 = vld [vmem:[%s10782_s3 + $0x398] sm:$0xff]  }
 0x3b8   :  { %7956 = vmatprep.subr.bf16.mxu1 %v8991_v47 }
 0x3b9   :  { %8229 = vmatpush3.bf16.msra.mxu0 %v9506_v21 }
 0x3ba   :  { %7933 = vmatmul.mubr.bf16.vlgmr.msra.gmra.mrb[4].mxu1 %v2332_v28  ;;  %8230 = vmatprep.subr.bf16.mxu0 %v9508_v4  ;;  %v9023_v28 = vld [vmem:[#allocation4 + $0x150] sm:$0xff]  }
 0x3bb   :  { %7957 = vmatpush3.bf16.msra.mxu1 %v8991_v47  ;;  %7972 = vmatprep.mubr.bf16.mxu1 %v2515_v31  ;;  %v9022_v47 = vld [vmem:[%s10782_s3 + $0x388] sm:$0xff]   ;;  %v9027_v31 = vld [vmem:[%s10782_s3 + $0x3a0] sm:$0xff]  }
 0x3bc   :  { %7958 = vmatprep.subr.bf16.mxu1 %v8992_v49 }
 0x3bd   :  { %8231 = vmatpush3.bf16.msra.mxu0 %v9508_v4 }
 0x3be   :  { %8256 = vmatprep.subr.bf16.mxu0 %v9494_v33 }
 0x3bf   :  { %7959 = vmatpush3.bf16.msra.mxu1 %v8992_v49  ;;  %v9028_v49 = vld [vmem:[%s10782_s3 + $0x3a8] sm:$0xff]  }
 0x3c0   :  { %7960 = vmatprep.subr.bf16.mxu1 %v8994_v54  ;;  %8233 = vmatmul.mubr.bf16.vlgmr.msra.gmra.mrb[84].mxu0 %v8995_v56  ;;  %v9030_v56 = vld [vmem:[%s10782_s3 + $0x3b8] sm:$0xff]  }
 0x3c1   :  { %8257 = vmatpush3.bf16.msra.mxu0 %v9494_v33  ;;  %8272 = vmatprep.mubr.bf16.mxu0 %v9003_v55 }
 0x3c2   :  { %8258 = vmatprep.subr.bf16.mxu0 %v9496_v45 }
 0x3c3   :  { %7961 = vmatpush3.bf16.msra.mxu1 %v8994_v54  ;;  %v9029_v54 = vld [vmem:[%s10782_s3 + $0x3b0] sm:$0xff]  }
 0x3c4   :  { %7962 = vmatprep.subr.bf16.mxu1 %v8996_v52 }
 0x3c5   :  { %8259 = vmatpush3.bf16.msra.mxu0 %v9496_v45 }
 0x3c6   :  { %8260 = vmatprep.subr.bf16.mxu0 %v9498_v53 }
 0x3c7   :  { %7963 = vmatpush3.bf16.msra.mxu1 %v8996_v52  ;;  %v9031_v52 = vld [vmem:[%s10782_s3 + $0x3c0] sm:$0xff]  }
 0x3c8   :  { %7964 = vmatprep.subr.bf16.mxu1 %v8997_v58 }
 0x3c9   :  { %8261 = vmatpush3.bf16.msra.mxu0 %v9498_v53 }
 0x3ca   :  { %8262 = vmatprep.subr.bf16.mxu0 %v9500_v1 }
 0x3cb   :  { %7965 = vmatpush3.bf16.msra.mxu1 %v8997_v58 }
 0x3cc   :  { %7966 = vmatprep.subr.bf16.mxu1 %v8998_v20 }
 0x3cd   :  { %8263 = vmatpush3.bf16.msra.mxu0 %v9500_v1 }
 0x3ce   :  { %8264 = vmatprep.subr.bf16.mxu0 %v9502_v2 }
 0x3cf   :  { %7967 = vmatpush3.bf16.msra.mxu1 %v8998_v20 }
 0x3d0   :  { %7968 = vmatprep.subr.bf16.mxu1 %v8999_v59 }
 0x3d1   :  { %8265 = vmatpush3.bf16.msra.mxu0 %v9502_v2 }
 0x3d2   :  { %8266 = vmatprep.subr.bf16.mxu0 %v9504_v3 }
 0x3d3   :  { %7969 = vmatpush3.bf16.msra.mxu1 %v8999_v59  ;;  %v10153_v60 = vpop.f32.mrb[60].mxu0 }
 0x3d4   :  { %7970 = vmatprep.subr.bf16.mxu1 %v9000_v57  ;;  %v2684_v61 = vpop.f32.mrb[61].mxu0 }
 0x3d5   :  { %8267 = vmatpush3.bf16.msra.mxu0 %v9504_v3  ;;  %v7995_v17 = vpop.f32.mrb[62].mxu0 }
 0x3d6   :  { %8268 = vmatprep.subr.bf16.mxu0 %v9506_v21  ;;  %v2700_v62 = vpack.c.bf16 %v7995_v17, %v10153_v60  ;;  %v2687_v13 = vpop.f32.mrb[63].mxu0  ;;  %v9035_v17 = vld [vmem:[#allocation4 + $0x168] sm:$0xff]  }
 0x3d7   :  { %7971 = vmatpush3.bf16.msra.mxu1 %v9000_v57  ;;  %v2699_v63 = vpack.c.bf16 %v2687_v13, %v2684_v61  ;;  %v9034_v61 = vld [vmem:[%s10782_s3 + $0x3d0] sm:$0xff]   ;;  %v9036_v13 = vld [vmem:[%s10782_s3 + $0x3d8] sm:$0xff]  }
 0x3d8   :  { %7996 = vmatprep.subr.bf16.mxu1 %v9001_v10 }
 0x3d9   :  { %8269 = vmatpush3.bf16.msra.mxu0 %v9506_v21 }
 0x3da   :  { %7973 = vmatmul.mubr.bf16.vlgmr.msra.gmra.mrb[4].mxu1 %v2516_v48  ;;  %8270 = vmatprep.subr.bf16.mxu0 %v9508_v4  ;;  %v9033_v48 = vld [vmem:[#allocation4 + $0x160] sm:$0xff]  }
 0x3db   :  { %7997 = vmatpush3.bf16.msra.mxu1 %v9001_v10  ;;  %8012 = vmatprep.mubr.bf16.mxu1 %v2699_v63  ;;  %v9032_v10 = vld [vmem:[%s10782_s3 + $0x3c8] sm:$0xff]   ;;  %v9037_v63 = vld [vmem:[%s10782_s3 + $0x3e0] sm:$0xff]  }
 0x3dc   :  { %7998 = vmatprep.subr.bf16.mxu1 %v9002_v22 }
 0x3dd   :  { %8271 = vmatpush3.bf16.msra.mxu0 %v9508_v4 }
 0x3de   :  { %8296 = vmatprep.subr.bf16.mxu0 %v9494_v33 }
 0x3df   :  { %7999 = vmatpush3.bf16.msra.mxu1 %v9002_v22  ;;  %v9038_v22 = vld [vmem:[%s10782_s3 + $0x3e8] sm:$0xff]  }
 0x3e0   :  { %8000 = vmatprep.subr.bf16.mxu1 %v9004_v42  ;;  %8273 = vmatmul.mubr.bf16.vlgmr.msra.gmra.mrb[88].mxu0 %v9005_v50  ;;  %v9040_v50 = vld [vmem:[%s10782_s3 + $0x3f8] sm:$0xff]  }
 0x3e1   :  { %8297 = vmatpush3.bf16.msra.mxu0 %v9494_v33  ;;  %8312 = vmatprep.mubr.bf16.mxu0 %v9013_v0 }
 0x3e2   :  { %8298 = vmatprep.subr.bf16.mxu0 %v9496_v45 }
 0x3e3   :  { %8001 = vmatpush3.bf16.msra.mxu1 %v9004_v42  ;;  %v9039_v42 = vld [vmem:[%s10782_s3 + $0x3f0] sm:$0xff]  }
 0x3e4   :  { %8002 = vmatprep.subr.bf16.mxu1 %v9006_v5 }
 0x3e5   :  { %8299 = vmatpush3.bf16.msra.mxu0 %v9496_v45 }
 0x3e6   :  { %8300 = vmatprep.subr.bf16.mxu0 %v9498_v53 }
 0x3e7   :  { %8003 = vmatpush3.bf16.msra.mxu1 %v9006_v5  ;;  %v9041_v5 = vld [vmem:[%s10782_s3 + $0x400] sm:$0xff]  }
 0x3e8   :  { %8004 = vmatprep.subr.bf16.mxu1 %v9007_v6 }
 0x3e9   :  { %8301 = vmatpush3.bf16.msra.mxu0 %v9498_v53 }
 0x3ea   :  { %8302 = vmatprep.subr.bf16.mxu0 %v9500_v1 }
 0x3eb   :  { %8005 = vmatpush3.bf16.msra.mxu1 %v9007_v6 }
 0x3ec   :  { %8006 = vmatprep.subr.bf16.mxu1 %v9008_v7 }
 0x3ed   :  { %8303 = vmatpush3.bf16.msra.mxu0 %v9500_v1 }
 0x3ee   :  { %8304 = vmatprep.subr.bf16.mxu0 %v9502_v2 }
 0x3ef   :  { %8007 = vmatpush3.bf16.msra.mxu1 %v9008_v7 }
 0x3f0   :  { %8008 = vmatprep.subr.bf16.mxu1 %v9009_v8 }
 0x3f1   :  { %8305 = vmatpush3.bf16.msra.mxu0 %v9502_v2 }
 0x3f2   :  { %8306 = vmatprep.subr.bf16.mxu0 %v9504_v3 }
 0x3f3   :  { %8009 = vmatpush3.bf16.msra.mxu1 %v9009_v8  ;;  %v10196_v11 = vpop.f32.mrb[64].mxu0 }
 0x3f4   :  { %8010 = vmatprep.subr.bf16.mxu1 %v9010_v9  ;;  %v2868_v14 = vpop.f32.mrb[65].mxu0 }
 0x3f5   :  { %8307 = vmatpush3.bf16.msra.mxu0 %v9504_v3  ;;  %v8035_v15 = vpop.f32.mrb[66].mxu0 }
 0x3f6   :  { %8308 = vmatprep.subr.bf16.mxu0 %v9506_v21  ;;  %v2884_v16 = vpack.c.bf16 %v8035_v15, %v10196_v11  ;;  %v2871_v23 = vpop.f32.mrb[67].mxu0  ;;  %v9045_v15 = vld [vmem:[#allocation4 + $0x178] sm:$0xff]  }
 0x3f7   :  { %8011 = vmatpush3.bf16.msra.mxu1 %v9010_v9  ;;  %v2883_v24 = vpack.c.bf16 %v2871_v23, %v2868_v14  ;;  %v9044_v14 = vld [vmem:[%s10782_s3 + $0x410] sm:$0xff]   ;;  %v9046_v23 = vld [vmem:[%s10782_s3 + $0x418] sm:$0xff]  }
 0x3f8   :  { %8036 = vmatprep.subr.bf16.mxu1 %v9011_v12 }
 0x3f9   :  { %8309 = vmatpush3.bf16.msra.mxu0 %v9506_v21 }
 0x3fa   :  { %8013 = vmatmul.mubr.bf16.vlgmr.msra.gmra.mrb[4].mxu1 %v2700_v62  ;;  %8310 = vmatprep.subr.bf16.mxu0 %v9508_v4  ;;  %v9043_v62 = vld [vmem:[#allocation4 + $0x170] sm:$0xff]  }
 0x3fb   :  { %8037 = vmatpush3.bf16.msra.mxu1 %v9011_v12  ;;  %8052 = vmatprep.mubr.bf16.mxu1 %v2883_v24  ;;  %v9042_v12 = vld [vmem:[%s10782_s3 + $0x408] sm:$0xff]   ;;  %v9047_v24 = vld [vmem:[%s10782_s3 + $0x420] sm:$0xff]  }
 0x3fc   :  { %8038 = vmatprep.subr.bf16.mxu1 %v9012_v25 }
 0x3fd   :  { %8311 = vmatpush3.bf16.msra.mxu0 %v9508_v4 }
 0x3fe   :  { %8336 = vmatprep.subr.bf16.mxu0 %v9494_v33 }
 0x3ff   :  { %8039 = vmatpush3.bf16.msra.mxu1 %v9012_v25  ;;  %v9048_v25 = vld [vmem:[%s10782_s3 + $0x428] sm:$0xff]  }
 0x400   :  { %8040 = vmatprep.subr.bf16.mxu1 %v9014_v26  ;;  %8313 = vmatmul.mubr.bf16.vlgmr.msra.gmra.mrb[92].mxu0 %v9015_v27 }
 0x401   :  { %8337 = vmatpush3.bf16.msra.mxu0 %v9494_v33  ;;  %8352 = vmatprep.mubr.bf16.mxu0 %v9023_v28 }
 0x402   :  { %8338 = vmatprep.subr.bf16.mxu0 %v9496_v45 }
 0x403   :  { %8041 = vmatpush3.bf16.msra.mxu1 %v9014_v26  ;;  %v9051_v26 = vld [vmem:[%s10782_s3 + $0x440] sm:$0xff]  }
 0x404   :  { %8042 = vmatprep.subr.bf16.mxu1 %v9016_v30 }
 0x405   :  { %8339 = vmatpush3.bf16.msra.mxu0 %v9496_v45 }
 0x406   :  { %8340 = vmatprep.subr.bf16.mxu0 %v9498_v53 }
 0x407   :  { %8043 = vmatpush3.bf16.msra.mxu1 %v9016_v30 }
 0x408   :  { %8044 = vmatprep.subr.bf16.mxu1 %v9017_v34 }
 0x409   :  { %8341 = vmatpush3.bf16.msra.mxu0 %v9498_v53 }
 0x40a   :  { %8342 = vmatprep.subr.bf16.mxu0 %v9500_v1 }
 0x40b   :  { %8045 = vmatpush3.bf16.msra.mxu1 %v9017_v34 }
 0x40c   :  { %8046 = vmatprep.subr.bf16.mxu1 %v9018_v35 }
 0x40d   :  { %8343 = vmatpush3.bf16.msra.mxu0 %v9500_v1 }
 0x40e   :  { %8344 = vmatprep.subr.bf16.mxu0 %v9502_v2 }
 0x40f   :  { %8047 = vmatpush3.bf16.msra.mxu1 %v9018_v35  ;;  %v9061_v35 = vld [vmem:[#allocation4 + $0x188] sm:$0xff]  }
 0x410   :  { %8048 = vmatprep.subr.bf16.mxu1 %v9019_v36 }
 0x411   :  { %8345 = vmatpush3.bf16.msra.mxu0 %v9502_v2 }
 0x412   :  { %8346 = vmatprep.subr.bf16.mxu0 %v9504_v3 }
 0x413   :  { %8049 = vmatpush3.bf16.msra.mxu1 %v9019_v36  ;;  %v10239_v38 = vpop.f32.mrb[68].mxu0  ;;  %v9054_v36 = vld [vmem:[%s10782_s3 + $0x458] sm:$0xff]  }
 0x414   :  { %8050 = vmatprep.subr.bf16.mxu1 %v9020_v37  ;;  %v3052_v40 = vpop.f32.mrb[69].mxu0 }
 0x415   :  { %8347 = vmatpush3.bf16.msra.mxu0 %v9504_v3  ;;  %v8075_v41 = vpop.f32.mrb[70].mxu0 }
 0x416   :  { %8348 = vmatprep.subr.bf16.mxu0 %v9506_v21  ;;  %v3068_v43 = vpack.c.bf16 %v8075_v41, %v10239_v38  ;;  %v3055_v44 = vpop.f32.mrb[71].mxu0  ;;  %v9058_v38 = vld [vmem:[%s10782_s3 + $0x478] sm:$0xff]  }
 0x417   :  { %8051 = vmatpush3.bf16.msra.mxu1 %v9020_v37  ;;  %v3067_v46 = vpack.c.bf16 %v3055_v44, %v3052_v40  ;;  %v9056_v37 = vld [vmem:[%s10782_s3 + $0x468] sm:$0xff]   ;;  %v9059_v40 = vld [vmem:[%s10782_s3 + $0x480] sm:$0xff]  }
 0x418   :  { %8076 = vmatprep.subr.bf16.mxu1 %v9021_v39 }
 0x419   :  { %8349 = vmatpush3.bf16.msra.mxu0 %v9506_v21 }
 0x41a   :  { %8053 = vmatmul.mubr.bf16.vlgmr.msra.gmra.mrb[4].mxu1 %v2884_v16  ;;  %8350 = vmatprep.subr.bf16.mxu0 %v9508_v4  ;;  %v9060_v16 = vld [vmem:[#allocation4 + $0x180] sm:$0xff]  }
 0x41b   :  { %8077 = vmatpush3.bf16.msra.mxu1 %v9021_v39  ;;  %8092 = vmatprep.mubr.bf16.mxu1 %v3067_v46 }
 0x41c   :  { %8078 = vmatprep.subr.bf16.mxu1 %v9022_v47 }
 0x41d   :  { %8351 = vmatpush3.bf16.msra.mxu0 %v9508_v4 }
 0x41e   :  { %8376 = vmatprep.subr.bf16.mxu0 %v9494_v33 }
 0x41f   :  { %8079 = vmatpush3.bf16.msra.mxu1 %v9022_v47 }
 0x420   :  { %8080 = vmatprep.subr.bf16.mxu1 %v9024_v29  ;;  %8353 = vmatmul.mubr.bf16.vlgmr.msra.gmra.mrb[96].mxu0 %v9025_v32  ;;  %v9063_v32 = vld [vmem:[%s10782_s3 + $0x490] sm:$0xff]  }
 0x421   :  { %8377 = vmatpush3.bf16.msra.mxu0 %v9494_v33  ;;  %8392 = vmatprep.mubr.bf16.mxu0 %v9033_v48  ;;  %v9064_v48 = vld [vmem:[%s10782_s3 + $0x498] sm:$0xff]  }
 0x422   :  { %8378 = vmatprep.subr.bf16.mxu0 %v9496_v45 }
 0x423   :  { %8081 = vmatpush3.bf16.msra.mxu1 %v9024_v29  ;;  %v9062_v29 = vld [vmem:[%s10782_s3 + $0x488] sm:$0xff]  }
 0x424   :  { %8082 = vmatprep.subr.bf16.mxu1 %v9026_v51 }
 0x425   :  { %8379 = vmatpush3.bf16.msra.mxu0 %v9496_v45 }
 0x426   :  { %8380 = vmatprep.subr.bf16.mxu0 %v9498_v53 }
 0x427   :  { %8083 = vmatpush3.bf16.msra.mxu1 %v9026_v51  ;;  %v9065_v51 = vld [vmem:[%s10782_s3 + $0x4a0] sm:$0xff]  }
 0x428   :  { %8084 = vmatprep.subr.bf16.mxu1 %v9027_v31 }
 0x429   :  { %8381 = vmatpush3.bf16.msra.mxu0 %v9498_v53 }
 0x42a   :  { %8382 = vmatprep.subr.bf16.mxu0 %v9500_v1 }
 0x42b   :  { %8085 = vmatpush3.bf16.msra.mxu1 %v9027_v31  ;;  %v9066_v31 = vld [vmem:[%s10782_s3 + $0x4a8] sm:$0xff]  }
 0x42c   :  { %8086 = vmatprep.subr.bf16.mxu1 %v9028_v49 }
 0x42d   :  { %8383 = vmatpush3.bf16.msra.mxu0 %v9500_v1 }
 0x42e   :  { %8384 = vmatprep.subr.bf16.mxu0 %v9502_v2 }
 0x42f   :  { %8087 = vmatpush3.bf16.msra.mxu1 %v9028_v49  ;;  %v9067_v49 = vld [vmem:[%s10782_s3 + $0x4b0] sm:$0xff]  }
 0x430   :  { %8088 = vmatprep.subr.bf16.mxu1 %v9029_v54 }
 0x431   :  { %8385 = vmatpush3.bf16.msra.mxu0 %v9502_v2 }
 0x432   :  { %8386 = vmatprep.subr.bf16.mxu0 %v9504_v3 }
 0x433   :  { %8089 = vmatpush3.bf16.msra.mxu1 %v9029_v54  ;;  %v10282_v55 = vpop.f32.mrb[72].mxu0  ;;  %v9068_v54 = vld [vmem:[%s10782_s3 + $0x4b8] sm:$0xff]  }
 0x434   :  { %8090 = vmatprep.subr.bf16.mxu1 %v9030_v56  ;;  %v3236_v58 = vpop.f32.mrb[73].mxu0 }
 0x435   :  { %8387 = vmatpush3.bf16.msra.mxu0 %v9504_v3  ;;  %v8115_v20 = vpop.f32.mrb[74].mxu0 }
 0x436   :  { %8388 = vmatprep.subr.bf16.mxu0 %v9506_v21  ;;  %v3252_v59 = vpack.c.bf16 %v8115_v20, %v10282_v55  ;;  %v3239_v57 = vpop.f32.mrb[75].mxu0  ;;  %v9069_v55 = vld [vmem:[%s10782_s3 + $0x4c0] sm:$0xff]  }
 0x437   :  { %8091 = vmatpush3.bf16.msra.mxu1 %v9030_v56  ;;  %v3251_v60 = vpack.c.bf16 %v3239_v57, %v3236_v58 }
 0x438   :  { %8116 = vmatprep.subr.bf16.mxu1 %v9031_v52 }
 0x439   :  { %8389 = vmatpush3.bf16.msra.mxu0 %v9506_v21 }
 0x43a   :  { %8093 = vmatmul.mubr.bf16.vlgmr.msra.gmra.mrb[4].mxu1 %v3068_v43  ;;  %8390 = vmatprep.subr.bf16.mxu0 %v9508_v4 }
 0x43b   :  { %8117 = vmatpush3.bf16.msra.mxu1 %v9031_v52  ;;  %8132 = vmatprep.mubr.bf16.mxu1 %v3251_v60  ;;  %v9070_v60 = vld [vmem:[%s10782_s3 + $0x4c8] sm:$0xff]  }
 0x43c   :  { %8118 = vmatprep.subr.bf16.mxu1 %v9032_v10 }
 0x43d   :  { %8391 = vmatpush3.bf16.msra.mxu0 %v9508_v4 }
 0x43e   :  { %8416 = vmatprep.subr.bf16.mxu0 %v9494_v33 }
 0x43f   :  { %8119 = vmatpush3.bf16.msra.mxu1 %v9032_v10  ;;  %v9071_v10 = vld [vmem:[%s10782_s3 + $0x4d0] sm:$0xff]  }
 0x440   :  { %8120 = vmatprep.subr.bf16.mxu1 %v9034_v61  ;;  %8393 = vmatmul.mubr.bf16.vlgmr.msra.gmra.mrb[100].mxu0 %v9035_v17  ;;  %v9073_v17 = vld [vmem:[%s10782_s3 + $0x4e0] sm:$0xff]  }
 0x441   :  { %8417 = vmatpush3.bf16.msra.mxu0 %v9494_v33  ;;  %8432 = vmatprep.mubr.bf16.mxu0 %v9043_v62  ;;  %v9074_v62 = vld [vmem:[%s10782_s3 + $0x4e8] sm:$0xff]  }
 0x442   :  { %8418 = vmatprep.subr.bf16.mxu0 %v9496_v45 }
 0x443   :  { %8121 = vmatpush3.bf16.msra.mxu1 %v9034_v61  ;;  %v9072_v61 = vld [vmem:[%s10782_s3 + $0x4d8] sm:$0xff]  }
 0x444   :  { %8122 = vmatprep.subr.bf16.mxu1 %v9036_v13 }
 0x445   :  { %8419 = vmatpush3.bf16.msra.mxu0 %v9496_v45 }
 0x446   :  { %8420 = vmatprep.subr.bf16.mxu0 %v9498_v53 }
 0x447   :  { %8123 = vmatpush3.bf16.msra.mxu1 %v9036_v13  ;;  %v9075_v13 = vld [vmem:[%s10782_s3 + $0x4f0] sm:$0xff]  }
 0x448   :  { %8124 = vmatprep.subr.bf16.mxu1 %v9037_v63 }
 0x449   :  { %8421 = vmatpush3.bf16.msra.mxu0 %v9498_v53 }
 0x44a   :  { %8422 = vmatprep.subr.bf16.mxu0 %v9500_v1 }
 0x44b   :  { %8125 = vmatpush3.bf16.msra.mxu1 %v9037_v63  ;;  %v9076_v63 = vld [vmem:[%s10782_s3 + $0x4f8] sm:$0xff]  }
 0x44c   :  { %8126 = vmatprep.subr.bf16.mxu1 %v9038_v22 }
 0x44d   :  { %8423 = vmatpush3.bf16.msra.mxu0 %v9500_v1 }
 0x44e   :  { %8424 = vmatprep.subr.bf16.mxu0 %v9502_v2 }
 0x44f   :  { %8127 = vmatpush3.bf16.msra.mxu1 %v9038_v22 }
 0x450   :  { %8128 = vmatprep.subr.bf16.mxu1 %v9039_v42 }
 0x451   :  { %8425 = vmatpush3.bf16.msra.mxu0 %v9502_v2 }
 0x452   :  { %8426 = vmatprep.subr.bf16.mxu0 %v9504_v3 }
 0x453   :  { %8129 = vmatpush3.bf16.msra.mxu1 %v9039_v42  ;;  %v10325_v0 = vpop.f32.mrb[76].mxu0  ;;  %v9077_v42 = vld [vmem:[%s10782_s3 + $0x500] sm:$0xff]  }
 0x454   :  { %8130 = vmatprep.subr.bf16.mxu1 %v9040_v50  ;;  %v3420_v6 = vpop.f32.mrb[77].mxu0 }
 0x455   :  { %8427 = vmatpush3.bf16.msra.mxu0 %v9504_v3  ;;  %v8155_v7 = vpop.f32.mrb[78].mxu0 }
 0x456   :  { %8428 = vmatprep.subr.bf16.mxu0 %v9506_v21  ;;  %v3436_v8 = vpack.c.bf16 %v8155_v7, %v10325_v0  ;;  %v3423_v9 = vpop.f32.mrb[79].mxu0 }
 0x457   :  { %8131 = vmatpush3.bf16.msra.mxu1 %v9040_v50  ;;  %v3435_v11 = vpack.c.bf16 %v3423_v9, %v3420_v6  ;;  %v9079_v9 = vld [vmem:[%s10782_s3 + $0x510] sm:$0xff]  }
 0x458   :  { %8156 = vmatprep.subr.bf16.mxu1 %v9041_v5 }
 0x459   :  { %8429 = vmatpush3.bf16.msra.mxu0 %v9506_v21 }
 0x45a   :  { %8133 = vmatmul.mubr.bf16.vlgmr.msra.gmra.mrb[4].mxu1 %v3252_v59  ;;  %8430 = vmatprep.subr.bf16.mxu0 %v9508_v4 }
 0x45b   :  { %8157 = vmatpush3.bf16.msra.mxu1 %v9041_v5  ;;  %8172 = vmatprep.mubr.bf16.mxu1 %v3435_v11  ;;  %v9080_v11 = vld [vmem:[%s10782_s3 + $0x518] sm:$0xff]  }
 0x45c   :  { %8158 = vmatprep.subr.bf16.mxu1 %v9042_v12 }
 0x45d   :  { %8431 = vmatpush3.bf16.msra.mxu0 %v9508_v4 }
 0x45e   :  { %8456 = vmatprep.subr.bf16.mxu0 %v9494_v33 }
 0x45f   :  { %8159 = vmatpush3.bf16.msra.mxu1 %v9042_v12  ;;  %v9081_v12 = vld [vmem:[%s10782_s3 + $0x520] sm:$0xff]  }
 0x460   :  { %8160 = vmatprep.subr.bf16.mxu1 %v9044_v14  ;;  %8433 = vmatmul.mubr.bf16.vlgmr.msra.gmra.mrb[104].mxu0 %v9045_v15  ;;  %v9083_v15 = vld [vmem:[%s10782_s3 + $0x530] sm:$0xff]  }
 0x461   :  { %8457 = vmatpush3.bf16.msra.mxu0 %v9494_v33  ;;  %8472 = vmatprep.mubr.bf16.mxu0 %v9060_v16  ;;  %v9049_v33 = vld [vmem:[%s10782_s3 + $0x430] sm:$0xff]   ;;  %v9084_v16 = vld [vmem:[%s10782_s3 + $0x538] sm:$0xff]  }
 0x462   :  { %8458 = vmatprep.subr.bf16.mxu0 %v9496_v45 }
 0x463   :  { %8161 = vmatpush3.bf16.msra.mxu1 %v9044_v14  ;;  %v9082_v14 = vld [vmem:[%s10782_s3 + $0x528] sm:$0xff]  }
 0x464   :  { %8162 = vmatprep.subr.bf16.mxu1 %v9046_v23 }
 0x465   :  { %8459 = vmatpush3.bf16.msra.mxu0 %v9496_v45  ;;  %v9050_v45 = vld [vmem:[%s10782_s3 + $0x438] sm:$0xff]  }
 0x466   :  { %8460 = vmatprep.subr.bf16.mxu0 %v9498_v53 }
 0x467   :  { %8163 = vmatpush3.bf16.msra.mxu1 %v9046_v23 }
 0x468   :  { %8164 = vmatprep.subr.bf16.mxu1 %v9047_v24 }
 0x469   :  { %8461 = vmatpush3.bf16.msra.mxu0 %v9498_v53 }
 0x46a   :  { %8462 = vmatprep.subr.bf16.mxu0 %v9500_v1 }
 0x46b   :  { %8165 = vmatpush3.bf16.msra.mxu1 %v9047_v24  ;;  %v9085_v24 = vld [vmem:[%s10782_s3 + $0x540] sm:$0xff]  }
 0x46c   :  { %8166 = vmatprep.subr.bf16.mxu1 %v9048_v25 }
 0x46d   :  { %8463 = vmatpush3.bf16.msra.mxu0 %v9500_v1 }
 0x46e   :  { %8464 = vmatprep.subr.bf16.mxu0 %v9502_v2 }
 0x46f   :  { %8167 = vmatpush3.bf16.msra.mxu1 %v9048_v25 }
 0x470   :  { %8168 = vmatprep.subr.bf16.mxu1 %v9049_v33 }
 0x471   :  { %8465 = vmatpush3.bf16.msra.mxu0 %v9502_v2  ;;  %v9052_v2 = vld [vmem:[%s10782_s3 + $0x448] sm:$0xff]  }
 0x472   :  { %8466 = vmatprep.subr.bf16.mxu0 %v9504_v3 }
 0x473   :  { %8169 = vmatpush3.bf16.msra.mxu1 %v9049_v33  ;;  %v8194_v53 = vpop.f32.mrb[80].mxu0 }
 0x474   :  { %8170 = vmatprep.subr.bf16.mxu1 %v9050_v45  ;;  %v3604_v1 = vpop.f32.mrb[81].mxu0 }
 0x475   :  { %8467 = vmatpush3.bf16.msra.mxu0 %v9504_v3  ;;  %v8195_v27 = vpop.f32.mrb[82].mxu0  ;;  %v9053_v3 = vld [vmem:[%s10782_s3 + $0x450] sm:$0xff]  }
 0x476   :  { %8468 = vmatprep.subr.bf16.mxu0 %v9506_v21  ;;  %v3620_v28 = vpack.c.bf16 %v8195_v27, %v8194_v53  ;;  %v3607_v30 = vpop.f32.mrb[83].mxu0  ;;  %v9087_v27 = vld [vmem:[%s10782_s3 + $0x550] sm:$0xff]  }
 0x477   :  { %8171 = vmatpush3.bf16.msra.mxu1 %v9050_v45  ;;  %v3619_v34 = vpack.c.bf16 %v3607_v30, %v3604_v1  ;;  %v9086_v1 = vld [vmem:[%s10782_s3 + $0x548] sm:$0xff]   ;;  %v9089_v30 = vld [vmem:[%s10782_s3 + $0x560] sm:$0xff]  }
 0x478   :  { %8196 = vmatprep.subr.bf16.mxu1 %v9051_v26 }
 0x479   :  { %8469 = vmatpush3.bf16.msra.mxu0 %v9506_v21  ;;  %v9055_v21 = vld [vmem:[%s10782_s3 + $0x460] sm:$0xff]  }
 0x47a   :  { %8173 = vmatmul.mubr.bf16.vlgmr.msra.gmra.mrb[4].mxu1 %v3436_v8  ;;  %8470 = vmatprep.subr.bf16.mxu0 %v9508_v4  ;;  %v9078_v8 = vld [vmem:[%s10782_s3 + $0x508] sm:$0xff]  }
 0x47b   :  { %8197 = vmatpush3.bf16.msra.mxu1 %v9051_v26  ;;  %8212 = vmatprep.mubr.bf16.mxu1 %v3619_v34  ;;  %v9090_v34 = vld [vmem:[%s10782_s3 + $0x568] sm:$0xff]  }
 0x47c   :  { %8198 = vmatprep.subr.bf16.mxu1 %v9052_v2 }
 0x47d   :  { %8471 = vmatpush3.bf16.msra.mxu0 %v9508_v4  ;;  %v9057_v4 = vld [vmem:[%s10782_s3 + $0x470] sm:$0xff]  }
 0x47f   :  { %8199 = vmatpush3.bf16.msra.mxu1 %v9052_v2  ;;  %v9091_v2 = vld [vmem:[%s10782_s3 + $0x570] sm:$0xff]  }
 0x480   :  { %8200 = vmatprep.subr.bf16.mxu1 %v9053_v3  ;;  %8473 = vmatmul.mubr.bf16.vlgmr.msra.gmra.mrb[108].mxu0 %v9061_v35 }
 0x483   :  { %8201 = vmatpush3.bf16.msra.mxu1 %v9053_v3  ;;  %v9092_v3 = vld [vmem:[%s10782_s3 + $0x578] sm:$0xff]  }
 0x484   :  { %8202 = vmatprep.subr.bf16.mxu1 %v9054_v36 }
 0x487   :  { %8203 = vmatpush3.bf16.msra.mxu1 %v9054_v36  ;;  %v9093_v36 = vld [vmem:[%s10782_s3 + $0x580] sm:$0xff]  }
 0x488   :  { %8204 = vmatprep.subr.bf16.mxu1 %v9055_v21 }
 0x48b   :  { %8205 = vmatpush3.bf16.msra.mxu1 %v9055_v21 }
 0x48c   :  { %8206 = vmatprep.subr.bf16.mxu1 %v9056_v37 }
 0x48f   :  { %8207 = vmatpush3.bf16.msra.mxu1 %v9056_v37 }
 0x490   :  { %8208 = vmatprep.subr.bf16.mxu1 %v9057_v4 }
 0x493   :  { %8209 = vmatpush3.bf16.msra.mxu1 %v9057_v4  ;;  %v8234_v39 = vpop.f32.mrb[84].mxu0 }
 0x494   :  { %8210 = vmatprep.subr.bf16.mxu1 %v9058_v38  ;;  %v3788_v41 = vpop.f32.mrb[85].mxu0 }
 0x495   :  { %v8235_v43 = vpop.f32.mrb[86].mxu0 }
 0x496   :  { %v3804_v44 = vpack.c.bf16 %v8235_v43, %v8234_v39  ;;  %v3791_v46 = vpop.f32.mrb[87].mxu0  ;;  %v9096_v43 = vld [vmem:[%s10782_s3 + $0x598] sm:$0xff]  }
 0x497   :  { %8211 = vmatpush3.bf16.msra.mxu1 %v9058_v38  ;;  %v3803_v47 = vpack.c.bf16 %v3791_v46, %v3788_v41  ;;  %v9095_v41 = vld [vmem:[%s10782_s3 + $0x590] sm:$0xff]   ;;  %v9098_v46 = vld [vmem:[%s10782_s3 + $0x5a8] sm:$0xff]  }
 0x498   :  { %8236 = vmatprep.subr.bf16.mxu1 %v9059_v40 }
 0x49a   :  { %8213 = vmatmul.mubr.bf16.vlgmr.msra.gmra.mrb[4].mxu1 %v3620_v28  ;;  %v9088_v28 = vld [vmem:[%s10782_s3 + $0x558] sm:$0xff]  }
 0x49b   :  { %8237 = vmatpush3.bf16.msra.mxu1 %v9059_v40  ;;  %8252 = vmatprep.mubr.bf16.mxu1 %v3803_v47  ;;  %v9094_v40 = vld [vmem:[%s10782_s3 + $0x588] sm:$0xff]   ;;  %v9099_v47 = vld [vmem:[%s10782_s3 + $0x5b0] sm:$0xff]  }
 0x49c   :  { %8238 = vmatprep.subr.bf16.mxu1 %v9062_v29 }
 0x49f   :  { %8239 = vmatpush3.bf16.msra.mxu1 %v9062_v29  ;;  %v9100_v29 = vld [vmem:[%s10782_s3 + $0x5b8] sm:$0xff]  }
 0x4a0   :  { %8240 = vmatprep.subr.bf16.mxu1 %v9063_v32 }
 0x4a3   :  { %8241 = vmatpush3.bf16.msra.mxu1 %v9063_v32 }
 0x4a4   :  { %8242 = vmatprep.subr.bf16.mxu1 %v9064_v48 }
 0x4a7   :  { %8243 = vmatpush3.bf16.msra.mxu1 %v9064_v48  ;;  %v9101_v48 = vld [vmem:[%s10782_s3 + $0x5c0] sm:$0xff]  }
 0x4a8   :  { %8244 = vmatprep.subr.bf16.mxu1 %v9065_v51 }
 0x4ab   :  { %8245 = vmatpush3.bf16.msra.mxu1 %v9065_v51 }
 0x4ac   :  { %8246 = vmatprep.subr.bf16.mxu1 %v9066_v31 }
 0x4af   :  { %8247 = vmatpush3.bf16.msra.mxu1 %v9066_v31 }
 0x4b0   :  { %8248 = vmatprep.subr.bf16.mxu1 %v9067_v49 }
 0x4b3   :  { %8249 = vmatpush3.bf16.msra.mxu1 %v9067_v49  ;;  %v8274_v56 = vpop.f32.mrb[88].mxu0 }
 0x4b4   :  { %8250 = vmatprep.subr.bf16.mxu1 %v9068_v54  ;;  %v3972_v52 = vpop.f32.mrb[89].mxu0 }
 0x4b5   :  { %v8275_v58 = vpop.f32.mrb[90].mxu0 }
 0x4b6   :  { %v3988_v20 = vpack.c.bf16 %v8275_v58, %v8274_v56  ;;  %v3975_v59 = vpop.f32.mrb[91].mxu0  ;;  %v9104_v58 = vld [vmem:[%s10782_s3 + $0x5d8] sm:$0xff]  }
 0x4b7   :  { %8251 = vmatpush3.bf16.msra.mxu1 %v9068_v54  ;;  %v3987_v57 = vpack.c.bf16 %v3975_v59, %v3972_v52  ;;  %v9103_v52 = vld [vmem:[%s10782_s3 + $0x5d0] sm:$0xff]   ;;  %v9106_v59 = vld [vmem:[%s10782_s3 + $0x5e8] sm:$0xff]  }
 0x4b8   :  { %8276 = vmatprep.subr.bf16.mxu1 %v9069_v55 }
 0x4ba   :  { %8253 = vmatmul.mubr.bf16.vlgmr.msra.gmra.mrb[4].mxu1 %v3804_v44  ;;  %v9097_v44 = vld [vmem:[%s10782_s3 + $0x5a0] sm:$0xff]  }
 0x4bb   :  { %8277 = vmatpush3.bf16.msra.mxu1 %v9069_v55  ;;  %8292 = vmatprep.mubr.bf16.mxu1 %v3987_v57  ;;  %v9102_v55 = vld [vmem:[%s10782_s3 + $0x5c8] sm:$0xff]   ;;  %v9107_v57 = vld [vmem:[%s10782_s3 + $0x5f0] sm:$0xff]  }
 0x4bc   :  { %8278 = vmatprep.subr.bf16.mxu1 %v9070_v60 }
 0x4bf   :  { %8279 = vmatpush3.bf16.msra.mxu1 %v9070_v60  ;;  %v9108_v60 = vld [vmem:[%s10782_s3 + $0x5f8] sm:$0xff]  }
 0x4c0   :  { %8280 = vmatprep.subr.bf16.mxu1 %v9071_v10 }
 0x4c3   :  { %8281 = vmatpush3.bf16.msra.mxu1 %v9071_v10 }
 0x4c4   :  { %8282 = vmatprep.subr.bf16.mxu1 %v9072_v61 }
 0x4c7   :  { %8283 = vmatpush3.bf16.msra.mxu1 %v9072_v61  ;;  %v9109_v61 = vld [vmem:[%s10782_s3 + $0x600] sm:$0xff]  }
 0x4c8   :  { %8284 = vmatprep.subr.bf16.mxu1 %v9073_v17 }
 0x4cb   :  { %8285 = vmatpush3.bf16.msra.mxu1 %v9073_v17 }
 0x4cc   :  { %8286 = vmatprep.subr.bf16.mxu1 %v9074_v62 }
 0x4cf   :  { %8287 = vmatpush3.bf16.msra.mxu1 %v9074_v62 }
 0x4d0   :  { %8288 = vmatprep.subr.bf16.mxu1 %v9075_v13 }
 0x4d3   :  { %8289 = vmatpush3.bf16.msra.mxu1 %v9075_v13  ;;  %v8314_v22 = vpop.f32.mrb[92].mxu0 }
 0x4d4   :  { %8290 = vmatprep.subr.bf16.mxu1 %v9076_v63  ;;  %v4156_v50 = vpop.f32.mrb[93].mxu0 }
 0x4d5   :  { %v8315_v0 = vpop.f32.mrb[94].mxu0 }
 0x4d6   :  { %v4172_v5 = vpack.c.bf16 %v8315_v0, %v8314_v22  ;;  %v4159_v6 = vpop.f32.mrb[95].mxu0  ;;  %v9112_v0 = vld [vmem:[%s10782_s3 + $0x618] sm:$0xff]  }
 0x4d7   :  { %8291 = vmatpush3.bf16.msra.mxu1 %v9076_v63  ;;  %v4171_v7 = vpack.c.bf16 %v4159_v6, %v4156_v50  ;;  %v9111_v50 = vld [vmem:[%s10782_s3 + $0x610] sm:$0xff]   ;;  %v9114_v6 = vld [vmem:[%s10782_s3 + $0x628] sm:$0xff]  }
 0x4d8   :  { %8316 = vmatprep.subr.bf16.mxu1 %v9077_v42 }
 0x4da   :  { %8293 = vmatmul.mubr.bf16.vlgmr.msra.gmra.mrb[4].mxu1 %v3988_v20  ;;  %v9105_v20 = vld [vmem:[%s10782_s3 + $0x5e0] sm:$0xff]  }
 0x4db   :  { %8317 = vmatpush3.bf16.msra.mxu1 %v9077_v42  ;;  %8332 = vmatprep.mubr.bf16.mxu1 %v4171_v7  ;;  %v9110_v42 = vld [vmem:[%s10782_s3 + $0x608] sm:$0xff]   ;;  %v9115_v7 = vld [vmem:[%s10782_s3 + $0x630] sm:$0xff]  }
 0x4dc   :  { %8318 = vmatprep.subr.bf16.mxu1 %v9078_v8 }
 0x4df   :  { %8319 = vmatpush3.bf16.msra.mxu1 %v9078_v8  ;;  %v9116_v8 = vld [vmem:[%s10782_s3 + $0x638] sm:$0xff]  }
 0x4e0   :  { %8320 = vmatprep.subr.bf16.mxu1 %v9079_v9 }
 0x4e3   :  { %8321 = vmatpush3.bf16.msra.mxu1 %v9079_v9  ;;  %v9271_v9 = vmov 0.0  }
 0x4e4   :  { %8322 = vmatprep.subr.bf16.mxu1 %v9080_v11  ;;  %8504 = vmatprep.subr.bf16.mxu0 %v9271_v9 }
 0x4e5   :  { %8508 = vmatprep.mubr.msk.bf16.mxu0 %vm9272_vm0, %v9271_v9 }
 0x4e7   :  { %8323 = vmatpush3.bf16.msra.mxu1 %v9080_v11  ;;  %v5028_v11 = vsub.s32 3, %v9389_v18 }
 0x4e8   :  { %8324 = vmatprep.subr.bf16.mxu1 %v9081_v12 }
 0x4eb   :  { %8325 = vmatpush3.bf16.msra.mxu1 %v9081_v12  ;;  %v10575_v12 = vld [vmem:[%s10785_s6] sm:$0xff] }
 0x4ec   :  { %8326 = vmatprep.subr.bf16.mxu1 %v9082_v14 }
 0x4ef   :  { %8327 = vmatpush3.bf16.msra.mxu1 %v9082_v14  ;;  %v5029_v14 = vrot.slane %v10575_v12, %v5028_v11 }
 0x4f0   :  { %8328 = vmatprep.subr.bf16.mxu1 %v9083_v15 }
 0x4f3   :  { %8329 = vmatpush3.bf16.msra.mxu1 %v9083_v15  ;;  %v8354_v23 = vpop.f32.mrb[96].mxu0 }
 0x4f4   :  { %8330 = vmatprep.subr.bf16.mxu1 %v9084_v16  ;;  %v4340_v25 = vpop.f32.mrb[97].mxu0 }
 0x4f5   :  { %v8355_v33 = vpop.f32.mrb[98].mxu0 }
 0x4f6   :  { %v4356_v45 = vpack.c.bf16 %v8355_v33, %v8354_v23  ;;  %v4343_v53 = vpop.f32.mrb[99].mxu0 }
 0x4f7   :  { %8331 = vmatpush3.bf16.msra.mxu1 %v9084_v16  ;;  %v4355_v26 = vpack.c.bf16 %v4343_v53, %v4340_v25 }
 0x4f8   :  { %8356 = vmatprep.subr.bf16.mxu1 %v9085_v24 }
 0x4fa   :  { %8333 = vmatmul.mubr.bf16.vlgmr.msra.gmra.mrb[4].mxu1 %v4172_v5  ;;  %v9113_v5 = vld [vmem:[%s10782_s3 + $0x620] sm:$0xff]  }
 0x4fb   :  { %8357 = vmatpush3.bf16.msra.mxu1 %v9085_v24  ;;  %8372 = vmatprep.mubr.bf16.mxu1 %v4355_v26 }
 0x4fc   :  { %8358 = vmatprep.subr.bf16.mxu1 %v9086_v1 }
 0x4ff   :  { %8359 = vmatpush3.bf16.msra.mxu1 %v9086_v1 }
 0x500   :  { %8360 = vmatprep.subr.bf16.mxu1 %v9087_v27 }
 0x503   :  { %8361 = vmatpush3.bf16.msra.mxu1 %v9087_v27 }
 0x504   :  { %8362 = vmatprep.subr.bf16.mxu1 %v9088_v28 }
 0x507   :  { %8363 = vmatpush3.bf16.msra.mxu1 %v9088_v28 }
 0x508   :  { %8364 = vmatprep.subr.bf16.mxu1 %v9089_v30 }
 0x50b   :  { %8365 = vmatpush3.bf16.msra.mxu1 %v9089_v30 }
 0x50c   :  { %8366 = vmatprep.subr.bf16.mxu1 %v9090_v34 }
 0x50f   :  { %8367 = vmatpush3.bf16.msra.mxu1 %v9090_v34 }
 0x510   :  { %8368 = vmatprep.subr.bf16.mxu1 %v9091_v2 }
 0x513   :  { %8369 = vmatpush3.bf16.msra.mxu1 %v9091_v2  ;;  %v8394_v35 = vpop.f32.mrb[100].mxu0 }
 0x514   :  { %8370 = vmatprep.subr.bf16.mxu1 %v9092_v3  ;;  %v4524_v21 = vpop.f32.mrb[101].mxu0 }
 0x515   :  { %v8395_v37 = vpop.f32.mrb[102].mxu0 }
 0x516   :  { %v4540_v4 = vpack.c.bf16 %v8395_v37, %v8394_v35  ;;  %v4527_v38 = vpop.f32.mrb[103].mxu0 }
 0x517   :  { %8371 = vmatpush3.bf16.msra.mxu1 %v9092_v3  ;;  %v4539_v39 = vpack.c.bf16 %v4527_v38, %v4524_v21 }
 0x518   :  { %8396 = vmatprep.subr.bf16.mxu1 %v9093_v36 }
 0x51a   :  { %8373 = vmatmul.mubr.bf16.vlgmr.msra.gmra.mrb[4].mxu1 %v4356_v45 }
 0x51b   :  { %8397 = vmatpush3.bf16.msra.mxu1 %v9093_v36  ;;  %8412 = vmatprep.mubr.bf16.mxu1 %v4539_v39 }
 0x51c   :  { %8398 = vmatprep.subr.bf16.mxu1 %v9094_v40 }
 0x51f   :  { %8399 = vmatpush3.bf16.msra.mxu1 %v9094_v40 }
 0x520   :  { %8400 = vmatprep.subr.bf16.mxu1 %v9095_v41 }
 0x523   :  { %8401 = vmatpush3.bf16.msra.mxu1 %v9095_v41 }
 0x524   :  { %8402 = vmatprep.subr.bf16.mxu1 %v9096_v43 }
 0x527   :  { %8403 = vmatpush3.bf16.msra.mxu1 %v9096_v43 }
 0x528   :  { %8404 = vmatprep.subr.bf16.mxu1 %v9097_v44 }
 0x52b   :  { %8405 = vmatpush3.bf16.msra.mxu1 %v9097_v44 }
 0x52c   :  { %8406 = vmatprep.subr.bf16.mxu1 %v9098_v46 }
 0x52f   :  { %8407 = vmatpush3.bf16.msra.mxu1 %v9098_v46 }
 0x530   :  { %8408 = vmatprep.subr.bf16.mxu1 %v9099_v47 }
 0x533   :  { %8409 = vmatpush3.bf16.msra.mxu1 %v9099_v47  ;;  %v8434_v32 = vpop.f32.mrb[104].mxu0 }
 0x534   :  { %8410 = vmatprep.subr.bf16.mxu1 %v9100_v29  ;;  %v4708_v51 = vpop.f32.mrb[105].mxu0 }
 0x535   :  { %v8435_v31 = vpop.f32.mrb[106].mxu0 }
 0x536   :  { %v4724_v49 = vpack.c.bf16 %v8435_v31, %v8434_v32  ;;  %v4711_v54 = vpop.f32.mrb[107].mxu0 }
 0x537   :  { %8411 = vmatpush3.bf16.msra.mxu1 %v9100_v29  ;;  %v4723_v56 = vpack.c.bf16 %v4711_v54, %v4708_v51 }
 0x538   :  { %8436 = vmatprep.subr.bf16.mxu1 %v9101_v48 }
 0x53a   :  { %8413 = vmatmul.mubr.bf16.vlgmr.msra.gmra.mrb[4].mxu1 %v4540_v4 }
 0x53b   :  { %8437 = vmatpush3.bf16.msra.mxu1 %v9101_v48  ;;  %8452 = vmatprep.mubr.bf16.mxu1 %v4723_v56 }
 0x53c   :  { %8438 = vmatprep.subr.bf16.mxu1 %v9102_v55 }
 0x53f   :  { %8439 = vmatpush3.bf16.msra.mxu1 %v9102_v55 }
 0x540   :  { %8440 = vmatprep.subr.bf16.mxu1 %v9103_v52 }
 0x543   :  { %8441 = vmatpush3.bf16.msra.mxu1 %v9103_v52 }
 0x544   :  { %8442 = vmatprep.subr.bf16.mxu1 %v9104_v58 }
 0x547   :  { %8443 = vmatpush3.bf16.msra.mxu1 %v9104_v58 }
 0x548   :  { %8444 = vmatprep.subr.bf16.mxu1 %v9105_v20 }
 0x54b   :  { %8445 = vmatpush3.bf16.msra.mxu1 %v9105_v20  ;;  %v5075_v20 = vsub.s32 4, %v9389_v18 }
 0x54c   :  { %8446 = vmatprep.subr.bf16.mxu1 %v9106_v59 }
 0x54f   :  { %8447 = vmatpush3.bf16.msra.mxu1 %v9106_v59 }
 0x550   :  { %8448 = vmatprep.subr.bf16.mxu1 %v9107_v57 }
 0x553   :  { %8449 = vmatpush3.bf16.msra.mxu1 %v9107_v57  ;;  %v8474_v10 = vpop.f32.mrb[108].mxu0 }
 0x554   :  { %8450 = vmatprep.subr.bf16.mxu1 %v9108_v60  ;;  %v4892_v17 = vpop.f32.mrb[109].mxu0 }
 0x555   :  { %v8475_v62 = vpop.f32.mrb[110].mxu0 }
 0x556   :  { %v4908_v13 = vpack.c.bf16 %v8475_v62, %v8474_v10  ;;  %v4895_v63 = vpop.f32.mrb[111].mxu0 }
 0x557   :  { %8451 = vmatpush3.bf16.msra.mxu1 %v9108_v60  ;;  %v4907_v22 = vpack.c.bf16 %v4895_v63, %v4892_v17 }
 0x558   :  { %8476 = vmatprep.subr.bf16.mxu1 %v9109_v61 }
 0x55a   :  { %8453 = vmatmul.mubr.bf16.vlgmr.msra.gmra.mrb[4].mxu1 %v4724_v49 }
 0x55b   :  { %8477 = vmatpush3.bf16.msra.mxu1 %v9109_v61  ;;  %8492 = vmatprep.mubr.bf16.mxu1 %v4907_v22  ;;  %v5083_v61 = vsub.s32 5, %v9389_v18 }
 0x55c   :  { %8478 = vmatprep.subr.bf16.mxu1 %v9110_v42 }
 0x55f   :  { %8479 = vmatpush3.bf16.msra.mxu1 %v9110_v42 }
 0x560   :  { %8480 = vmatprep.subr.bf16.mxu1 %v9111_v50 }
 0x563   :  { %8481 = vmatpush3.bf16.msra.mxu1 %v9111_v50 }
 0x564   :  { %8482 = vmatprep.subr.bf16.mxu1 %v9112_v0 }
 0x567   :  { %8483 = vmatpush3.bf16.msra.mxu1 %v9112_v0 }
 0x568   :  { %8484 = vmatprep.subr.bf16.mxu1 %v9113_v5 }
 0x56b   :  { %8485 = vmatpush3.bf16.msra.mxu1 %v9113_v5 }
 0x56c   :  { %8486 = vmatprep.subr.bf16.mxu1 %v9114_v6 }
 0x56f   :  { %8487 = vmatpush3.bf16.msra.mxu1 %v9114_v6 }
 0x570   :  { %8488 = vmatprep.subr.bf16.mxu1 %v9115_v7 }
 0x573   :  { %8489 = vmatpush3.bf16.msra.mxu1 %v9115_v7 }
 0x574   :  { %8490 = vmatprep.subr.bf16.mxu1 %v9116_v8 }
 0x577   :  { %8491 = vmatpush3.bf16.msra.mxu1 %v9116_v8 }
 0x578   :  { %8496 = vmatprep.subr.bf16.mxu1 %v9271_v9 }
 0x57a   :  { %8493 = vmatmul.mubr.bf16.vlgmr.msra.gmra.mrb[4].mxu1 %v4908_v13 }
 0x57b   :  { %8500 = vmatprep.mubr.msk.bf16.mxu1 %vm9272_vm0, %v9271_v9 }
 0x64d   :  { %v8494_v15 = vpop.f32.mrb[4].mxu1 }
 0x64e   :  { %v5007_v16 = vpop.f32.mrb[5].mxu1  ;;  %v5032_v23 = vadd.f32 %v8494_v15, %v5029_v14  ;;  %v5153_v15 = vld [vmem:[%s10783_s4 + $0x4] sm:$0xf] }
 0x64f   :  { %v5030_v24 = vadd.f32 %v5029_v14, %v5007_v16  ;;  %v8495_v25 = vpop.f32.mrb[6].mxu1  ;;  %v9117_v16 = vld [vmem:[#allocation6 + $0x40] sm:$0xff]  }
 0x650   :  { %v5010_v33 = vpop.f32.mrb[7].mxu1  ;;  %v5033_v53 = vadd.f32 %v8495_v25, %v5029_v14  ;;  %v5036_v1 = vmax.f32 %v5032_v23, 0.0  ;;  %v9118_v23 = vld [vmem:[#allocation6] sm:$0xff]   ;;  %v9120_v25 = vld [vmem:[#allocation6 + $0x8] sm:$0xff]  }
 0x651   :  { %v5034_v45 = vmax.f32 %v5030_v24, 0.0  ;;  %v5031_v26 = vadd.f32 %v5029_v14, %v5010_v33  ;;  %v5091_v14 = vld [vmem:[%s10783_s4] sm:$0xf]  ;;  %v9119_v24 = vld [vmem:[#allocation6 + $0x48] sm:$0xff]  }
 0x652   :  { %v5037_v30 = vmax.f32 %v5033_v53, 0.0  ;;  %v5050_v3 = vmul.f32 %v5036_v1, %v5036_v1  ;;  %v9121_v33 = vld [vmem:[#allocation6 + $0x50] sm:$0xff]   ;;  %v9123_v53 = vld [vmem:[#allocation6 + $0x58] sm:$0xff]  }
 0x653   :  { %v5035_v27 = vmax.f32 %v5031_v26, 0.0  ;;  %v5048_v28 = vmul.f32 %v5034_v45, %v5034_v45  ;;  %v9124_v26 = vld [vmem:[#allocation6 + $0x18] sm:$0xff]  }
 0x654   :  { %v5051_v21 = vmul.f32 %v5037_v30, %v5037_v30 }
 0x655   :  { %v5038_v34 = vadd.f32 %v5035_v27, %v5034_v45  ;;  %v5049_v2 = vmul.f32 %v5035_v27, %v5035_v27 }
 0x657   :  { %v5039_v35 = vadd.f32 %v5038_v34, %v5036_v1  ;;  %v5052_v36 = vadd.f32 %v5049_v2, %v5048_v28  ;;  %v9127_v28 = vld [vmem:[#allocation6 + $0x68] sm:$0xff]   ;;  %v9129_v34 = vld [vmem:[#allocation6 + $0x70] sm:$0xff]  }
 0x658   :  { %v9130_v2 = vld [vmem:[#allocation6 + $0x30] sm:$0xff]  }
 0x659   :  { %v5040_v37 = vadd.f32 %v5039_v35, %v5037_v30  ;;  %v5053_v4 = vadd.f32 %v5052_v36, %v5050_v3  ;;  %v9131_v3 = vld [vmem:[#allocation6 + $0x78] sm:$0xff]  }
 0x65a   :  { %v9132_v35 = vld [vmem:[#allocation6 + $0x38] sm:$0xff]  }
 0x65b   :  { %v5041_v38 = vrot.slane %v5040_v37, 4  ;;  %v5054_v39 = vadd.f32 %v5053_v4, %v5051_v21 }
 0x65d   :  { %v5042_v40 = vadd.f32 %v5041_v38, %v5040_v37  ;;  %v5055_v41 = vrot.slane %v5054_v39, 4 }
 0x65f   :  { %v5043_v43 = vrot.slane %v5042_v40, 2  ;;  %v5056_v44 = vadd.f32 %v5055_v41, %v5054_v39 }
 0x661   :  { %v5044_v46 = vadd.f32 %v5043_v43, %v5042_v40  ;;  %v5057_v47 = vrot.slane %v5056_v44, 2 }
 0x663   :  { %v5045_v29 = vrot.slane %v5044_v46, 1  ;;  %v5058_v32 = vadd.f32 %v5057_v47, %v5056_v44  ;;  %v5540_v47 = vld [vmem:[%s10783_s4 + $0xc] sm:$0xf] }
 0x665   :  { %v5046_v48 = vadd.f32 %v5045_v29, %v5044_v46  ;;  %v5059_v51 = vrot.slane %v5058_v32, 1  ;;  %v5390_v46 = vld [vmem:[%s10783_s4 + $0x8] sm:$0xf]  ;;  %v9133_v29 = vld [vmem:[#allocation6 + $0x80] sm:$0xff]  }
 0x667   :  { %v5047_v31 = vmul.f32 0.03125, %v5046_v48  ;;  %v5060_v49 = vadd.f32 %v5059_v51, %v5058_v32  ;;  %v9134_v32 = vld [vmem:[#allocation6 + $0xc0] sm:$0xff]   ;;  %v9135_v48 = vld [vmem:[#allocation6 + $0x88] sm:$0xff]  }
 0x668   :  { %v9136_v51 = vld [vmem:[#allocation6 + $0xc8] sm:$0xff]  }
 0x669   :  { %v5061_v54 = vmul.f32 0.03125, %v5060_v49  ;;  %v5062_v56 = vmul.f32 %v5047_v31, %v5047_v31  ;;  %v9138_v49 = vld [vmem:[#allocation6 + $0xd0] sm:$0xff]  }
 0x66b   :  { %v5063_v55 = vsub.f32 %v5061_v54, %v5062_v56  ;;  %v9139_v54 = vld [vmem:[#allocation6 + $0x98] sm:$0xff]  }
 0x66c   :  { %v9140_v56 = vld [vmem:[#allocation6 + $0xd8] sm:$0xff]  }
 0x66d   :  { %v5064_v52 = vmax.f32 %v5063_v55, 0.0  ;;  %v9141_v55 = vld [vmem:[#allocation6 + $0xa0] sm:$0xff]  }
 0x66f   :  { %v5065_v58 = vadd.f32 1e-05, %v5064_v52  ;;  %v9142_v52 = vld [vmem:[#allocation6 + $0xe0] sm:$0xff]  }
 0x671   :  { %9191 = vrsqrt.f32 %v5065_v58  ;;  %v9143_v58 = vld [vmem:[#allocation6 + $0xa8] sm:$0xff]  }
 0x67b   :  { %v9192_v59 = vpop.eup %9191 }
 0x67c   :  { %v5067_v57 = vmul.f32 %v10575_v12, %v9192_v59  ;;  %v9145_v59 = vld [vmem:[#allocation6 + $0xb0] sm:$0xff]  }
 0x67e   :  { %v5068_v60 = vmul.f32 %v5067_v57, %v5047_v31  ;;  %v5076_v10 = vrot.slane %v5067_v57, %v5075_v20  ;;  %v9137_v31 = vld [vmem:[#allocation6 + $0x90] sm:$0xff]   ;;  %v9144_v20 = vld [vmem:[#allocation6 + $0xe8] sm:$0xff]  }
 0x67f   :  { %v9146_v57 = vld [vmem:[#allocation6 + $0xf0] sm:$0xff]  }
 0x680   :  { %v5070_v17 = vrot.slane %v5068_v60, 7  ;;  %v5077_v62 = vmul.f32 %v5076_v10, %v5034_v45  ;;  %v5078_v13 = vmul.f32 %v5076_v10, %v5035_v27  ;;  %v5079_v63 = vmul.f32 %v5076_v10, %v5036_v1  ;;  %v9122_v45 = vld [vmem:[#allocation6 + $0x10] sm:$0xff]   ;;  %v9125_v1 = vld [vmem:[#allocation6 + $0x60] sm:$0xff]   ;;  %v9147_v60 = vld [vmem:[#allocation6 + $0xb8] sm:$0xff]  }
 0x681   :  { %v5080_v22 = vmul.f32 %v5076_v10, %v5037_v30  ;;  %v9126_v27 = vld [vmem:[#allocation6 + $0x20] sm:$0xff]   ;;  %v9128_v30 = vld [vmem:[#allocation6 + $0x28] sm:$0xff]   ;;  %v9148_v10 = vld [vmem:[#allocation6 + $0xf8] sm:$0xff]  }
 0x682   :  { %v5072_v42 = vsub.f32 %v10575_v12, %v5070_v17 }
 0x684   :  { %v5084_v50 = vrot.slane %v5072_v42, %v5083_v61 }
 0x686   :  { %v5085_v0 = vadd.f32 %v5084_v50, %v5077_v62  ;;  %v5086_v5 = vadd.f32 %v5084_v50, %v5078_v13  ;;  %v5087_v6 = vadd.f32 %v5084_v50, %v5079_v63  ;;  %v5088_v7 = vadd.f32 %v5084_v50, %v5080_v22 }
 0x688   :  { %v10582_v8 = vpack.c.bf16 %v5086_v5, %v5085_v0  ;;  %v10584_v11 = vpack.c.bf16 %v5088_v7, %v5087_v6 }
 0x68a   :  { %8497 = vmatpush3.bf16.msra.mxu1 %v10582_v8  ;;  %8505 = vmatpush3.bf16.msra.mxu0 %v10582_v8 }
 0x68b   :  { %8498 = vmatprep.subr.bf16.mxu1 %v9271_v9  ;;  %8506 = vmatprep.subr.bf16.mxu0 %v9271_v9 }
 0x68e   :  { %8499 = vmatpush3.bf16.msra.mxu1 %v10584_v11  ;;  %8507 = vmatpush3.bf16.msra.mxu0 %v10584_v11 }
 0x68f   :  { %8512 = vmatprep.subr.bf16.mxu0 %v9271_v9  ;;  %8532 = vmatprep.subr.bf16.mxu1 %v9271_v9 }
 0x691   :  { %8501 = vmatmul.mubr.msk.bf16.vlgmr.msra.gmra.mrb[8].mxu1 %vm5092_vm1, %v5091_v14  ;;  %8509 = vmatmul.mubr.msk.bf16.vlgmr.msra.gmra.mrb[112].mxu0 %vm5092_vm1, %v5153_v15 }
 0x692   :  { %8513 = vmatpush3.bf16.msra.mxu0 %v9117_v16  ;;  %8533 = vmatpush3.bf16.msra.mxu1 %v9118_v23 }
 0x693   :  { %8514 = vmatprep.subr.bf16.mxu0 %v9271_v9  ;;  %8534 = vmatprep.subr.bf16.mxu1 %v9271_v9 }
 0x694   :  { %8528 = vmatprep.mubr.msk.bf16.mxu0 %vm9272_vm0, %v9271_v9  ;;  %8548 = vmatprep.mubr.msk.bf16.mxu1 %vm9272_vm0, %v9271_v9 }
 0x696   :  { %8515 = vmatpush3.bf16.msra.mxu0 %v9119_v24  ;;  %8535 = vmatpush3.bf16.msra.mxu1 %v9120_v25 }
 0x697   :  { %8516 = vmatprep.subr.bf16.mxu0 %v9271_v9  ;;  %8536 = vmatprep.subr.bf16.mxu1 %v9271_v9 }
 0x69a   :  { %8517 = vmatpush3.bf16.msra.mxu0 %v9121_v33  ;;  %8537 = vmatpush3.bf16.msra.mxu1 %v9122_v45  ;;  %v5690_v45 = vld [vmem:[%s10783_s4 + $0x10] sm:$0xf] }
 0x69b   :  { %8518 = vmatprep.subr.bf16.mxu0 %v9271_v9  ;;  %8538 = vmatprep.subr.bf16.mxu1 %v9271_v9 }
 0x69e   :  { %8519 = vmatpush3.bf16.msra.mxu0 %v9123_v53  ;;  %8539 = vmatpush3.bf16.msra.mxu1 %v9124_v26  ;;  %v5840_v53 = vld [vmem:[%s10783_s4 + $0x14] sm:$0xf] }
 0x69f   :  { %8520 = vmatprep.subr.bf16.mxu0 %v9271_v9  ;;  %8540 = vmatprep.subr.bf16.mxu1 %v9271_v9  ;;  %v9149_v26 = vld [vmem:[#allocation6 + $0x100] sm:$0xff]  }
 0x6a2   :  { %8521 = vmatpush3.bf16.msra.mxu0 %v9125_v1  ;;  %8541 = vmatpush3.bf16.msra.mxu1 %v9126_v27  ;;  %v9150_v1 = vld [vmem:[#allocation6 + $0x140] sm:$0xff]   ;;  %v9151_v27 = vld [vmem:[#allocation6 + $0x108] sm:$0xff]  }
 0x6a3   :  { %8522 = vmatprep.subr.bf16.mxu0 %v9271_v9  ;;  %8542 = vmatprep.subr.bf16.mxu1 %v9271_v9 }
 0x6a6   :  { %8523 = vmatpush3.bf16.msra.mxu0 %v9127_v28  ;;  %8543 = vmatpush3.bf16.msra.mxu1 %v9128_v30  ;;  %v9152_v28 = vld [vmem:[#allocation6 + $0x148] sm:$0xff]   ;;  %v9153_v30 = vld [vmem:[#allocation6 + $0x110] sm:$0xff]  }
 0x6a7   :  { %8524 = vmatprep.subr.bf16.mxu0 %v9271_v9  ;;  %8544 = vmatprep.subr.bf16.mxu1 %v9271_v9 }
 0x6aa   :  { %8525 = vmatpush3.bf16.msra.mxu0 %v9129_v34  ;;  %8545 = vmatpush3.bf16.msra.mxu1 %v9130_v2  ;;  %v9154_v34 = vld [vmem:[#allocation6 + $0x150] sm:$0xff]   ;;  %v9155_v2 = vld [vmem:[#allocation6 + $0x118] sm:$0xff]  }
 0x6ab   :  { %8526 = vmatprep.subr.bf16.mxu0 %v9271_v9  ;;  %8546 = vmatprep.subr.bf16.mxu1 %v9271_v9 }
 0x6ae   :  { %8527 = vmatpush3.bf16.msra.mxu0 %v9131_v3  ;;  %8547 = vmatpush3.bf16.msra.mxu1 %v9132_v35  ;;  %v9156_v3 = vld [vmem:[#allocation6 + $0x158] sm:$0xff]   ;;  %v9157_v35 = vld [vmem:[#allocation6 + $0x120] sm:$0xff]  }
 0x6af   :  { %8552 = vmatprep.subr.bf16.mxu0 %v9271_v9  ;;  %8580 = vmatprep.subr.bf16.mxu1 %v9271_v9 }
 0x764   :  { %v5130_v36 = vpop.f32.mrb[8].mxu1  ;;  %v5191_v21 = vpop.f32.mrb[112].mxu0 }
 0x765   :  { %v5136_v37 = vpack.c.bf16 %v5130_v36, %v5130_v36  ;;  %v5197_v4 = vpack.c.bf16 %v5191_v21, %v5191_v21  ;;  %v8510_v38 = vpop.f32.mrb[113].mxu0  ;;  %v8502_v39 = vpop.f32.mrb[9].mxu1  ;;  %v9158_v36 = vld [vmem:[#allocation6 + $0x160] sm:$0xff]   ;;  %v9159_v21 = vld [vmem:[#allocation6 + $0x128] sm:$0xff]  }
 0x766   :  { %v5194_v40 = vpop.f32.mrb[114].mxu0  ;;  %v5133_v41 = vpop.f32.mrb[10].mxu1  ;;  %v9162_v38 = vld [vmem:[#allocation6 + $0x170] sm:$0xff]   ;;  %v9163_v39 = vld [vmem:[#allocation6 + $0x138] sm:$0xff]  }
 0x767   :  { %v8511_v43 = vpop.f32.mrb[115].mxu0  ;;  %8529 = vmatmul.mubr.bf16.vlgmr.msra.gmra.mrb[116].mxu0 %v5197_v4  ;;  %8549 = vmatmul.mubr.bf16.vlgmr.msra.gmra.mrb[12].mxu1 %v5136_v37  ;;  %v8503_v44 = vpop.f32.mrb[11].mxu1  ;;  %v9160_v37 = vld [vmem:[#allocation6 + $0x168] sm:$0xff]   ;;  %v9161_v4 = vld [vmem:[#allocation6 + $0x130] sm:$0xff]   ;;  %v9164_v40 = vld [vmem:[#allocation6 + $0x178] sm:$0xff]  }
 0x768   :  { %8553 = vmatpush3.bf16.msra.mxu0 %v10582_v8  ;;  %8581 = vmatpush3.bf16.msra.mxu1 %v10582_v8 }
 0x769   :  { %8554 = vmatprep.subr.bf16.mxu0 %v9271_v9  ;;  %8582 = vmatprep.subr.bf16.mxu1 %v9271_v9 }
 0x76a   :  { %8556 = vmatprep.mubr.msk.bf16.mxu0 %vm9272_vm0, %v9271_v9  ;;  %8584 = vmatprep.mubr.msk.bf16.mxu1 %vm9272_vm0, %v9271_v9 }
 0x76c   :  { %8555 = vmatpush3.bf16.msra.mxu0 %v10584_v11  ;;  %8583 = vmatpush3.bf16.msra.mxu1 %v10584_v11 }
 0x76d   :  { %8560 = vmatprep.subr.bf16.mxu0 %v9271_v9  ;;  %8588 = vmatprep.subr.bf16.mxu1 %v9271_v9 }
 0x76f   :  { %8557 = vmatmul.mubr.msk.bf16.vlgmr.msra.gmra.mrb[120].mxu0 %vm5092_vm1, %v5390_v46  ;;  %8585 = vmatmul.mubr.msk.bf16.vlgmr.msra.gmra.mrb[16].mxu1 %vm5092_vm1, %v5540_v47 }
 0x770   :  { %8561 = vmatpush3.bf16.msra.mxu0 %v9133_v29  ;;  %8589 = vmatpush3.bf16.msra.mxu1 %v9134_v32 }
 0x771   :  { %8562 = vmatprep.subr.bf16.mxu0 %v9271_v9  ;;  %8590 = vmatprep.subr.bf16.mxu1 %v9271_v9 }
 0x772   :  { %8576 = vmatprep.mubr.msk.bf16.mxu0 %vm9272_vm0, %v9271_v9  ;;  %8604 = vmatprep.mubr.msk.bf16.mxu1 %vm9272_vm0, %v9271_v9 }
 0x774   :  { %8563 = vmatpush3.bf16.msra.mxu0 %v9135_v48  ;;  %8591 = vmatpush3.bf16.msra.mxu1 %v9136_v51 }
 0x775   :  { %8564 = vmatprep.subr.bf16.mxu0 %v9271_v9  ;;  %8592 = vmatprep.subr.bf16.mxu1 %v9271_v9 }
 0x778   :  { %8565 = vmatpush3.bf16.msra.mxu0 %v9137_v31  ;;  %8593 = vmatpush3.bf16.msra.mxu1 %v9138_v49 }
 0x779   :  { %8566 = vmatprep.subr.bf16.mxu0 %v9271_v9  ;;  %8594 = vmatprep.subr.bf16.mxu1 %v9271_v9 }
 0x77c   :  { %8567 = vmatpush3.bf16.msra.mxu0 %v9139_v54  ;;  %8595 = vmatpush3.bf16.msra.mxu1 %v9140_v56 }
 0x77d   :  { %8568 = vmatprep.subr.bf16.mxu0 %v9271_v9  ;;  %8596 = vmatprep.subr.bf16.mxu1 %v9271_v9 }
 0x780   :  { %8569 = vmatpush3.bf16.msra.mxu0 %v9141_v55  ;;  %8597 = vmatpush3.bf16.msra.mxu1 %v9142_v52 }
 0x781   :  { %8570 = vmatprep.subr.bf16.mxu0 %v9271_v9  ;;  %8598 = vmatprep.subr.bf16.mxu1 %v9271_v9 }
 0x784   :  { %8571 = vmatpush3.bf16.msra.mxu0 %v9143_v58  ;;  %8599 = vmatpush3.bf16.msra.mxu1 %v9144_v20 }
 0x785   :  { %8572 = vmatprep.subr.bf16.mxu0 %v9271_v9  ;;  %8600 = vmatprep.subr.bf16.mxu1 %v9271_v9 }
 0x788   :  { %8573 = vmatpush3.bf16.msra.mxu0 %v9145_v59  ;;  %8601 = vmatpush3.bf16.msra.mxu1 %v9146_v57 }
 0x789   :  { %8574 = vmatprep.subr.bf16.mxu0 %v9271_v9  ;;  %8602 = vmatprep.subr.bf16.mxu1 %v9271_v9 }
 0x78c   :  { %8575 = vmatpush3.bf16.msra.mxu0 %v9147_v60  ;;  %8603 = vmatpush3.bf16.msra.mxu1 %v9148_v10  ;;  %v5990_v10 = vld [vmem:[%s10783_s4 + $0x18] sm:$0xf] }
 0x78d   :  { %8608 = vmatprep.subr.bf16.mxu0 %v9271_v9  ;;  %8636 = vmatprep.subr.bf16.mxu1 %v9271_v9 }
 0x83a   :  { %v5296_v61 = vpop.f32.mrb[116].mxu0  ;;  %v5384_v17 = vpop.f32.mrb[12].mxu1 }
 0x83b   :  { %v8530_v62 = vpop.f32.mrb[117].mxu0  ;;  %v10662_v13 = vadd.f32 %v5384_v17, %v5296_v61  ;;  %v8550_v63 = vpop.f32.mrb[13].mxu1  ;;  %v6140_v61 = vld [vmem:[%s10783_s4 + $0x1c] sm:$0xf]  ;;  %v9165_v17 = vld [vmem:[#allocation6 + $0x180] sm:$0xff]  }
 0x83c   :  { %v5299_v22 = vpop.f32.mrb[118].mxu0  ;;  %v5387_v42 = vpop.f32.mrb[14].mxu1  ;;  %v9166_v62 = vld [vmem:[#allocation6 + $0x1c0] sm:$0xff]   ;;  %v9168_v63 = vld [vmem:[#allocation6 + $0x1c8] sm:$0xff]  }
 0x83d   :  { %v8531_v50 = vpop.f32.mrb[119].mxu0  ;;  %v8551_v0 = vpop.f32.mrb[15].mxu1  ;;  %v9169_v22 = vld [vmem:[#allocation6 + $0x190] sm:$0xff]  }
 0x83e   :  { %v9170_v42 = vld [vmem:[#allocation6 + $0x1d0] sm:$0xff]   ;;  %v9171_v50 = vld [vmem:[#allocation6 + $0x198] sm:$0xff]  }
 0x83f   :  { %v9172_v0 = vld [vmem:[#allocation6 + $0x1d8] sm:$0xff]  }
 0x842   :  { %v5428_v5 = vpop.f32.mrb[120].mxu0  ;;  %v5578_v6 = vpop.f32.mrb[16].mxu1 }
 0x843   :  { %v5434_v7 = vpack.c.bf16 %v5428_v5, %v5428_v5  ;;  %v5584_v14 = vpack.c.bf16 %v5578_v6, %v5578_v6  ;;  %v8558_v15 = vpop.f32.mrb[121].mxu0  ;;  %v8586_v16 = vpop.f32.mrb[17].mxu1  ;;  %v9173_v5 = vld [vmem:[#allocation6 + $0x1a0] sm:$0xff]  }
 0x844   :  { %v5431_v23 = vpop.f32.mrb[122].mxu0  ;;  %v5581_v24 = vpop.f32.mrb[18].mxu1  ;;  %v9174_v6 = vld [vmem:[#allocation6 + $0x1e0] sm:$0xff]   ;;  %v9177_v15 = vld [vmem:[#allocation6 + $0x1b0] sm:$0xff]  }
 0x845   :  { %v8559_v25 = vpop.f32.mrb[123].mxu0  ;;  %8577 = vmatmul.mubr.bf16.vlgmr.msra.gmra.mrb[124].mxu0 %v5434_v7  ;;  %8605 = vmatmul.mubr.bf16.vlgmr.msra.gmra.mrb[20].mxu1 %v5584_v14  ;;  %v8587_v33 = vpop.f32.mrb[19].mxu1  ;;  %v9175_v7 = vld [vmem:[#allocation6 + $0x1a8] sm:$0xff]   ;;  %v9178_v16 = vld [vmem:[#allocation6 + $0x1f0] sm:$0xff]   ;;  %v9179_v23 = vld [vmem:[#allocation6 + $0x1b8] sm:$0xff]  }
 0x846   :  { %8609 = vmatpush3.bf16.msra.mxu0 %v10582_v8  ;;  %8637 = vmatpush3.bf16.msra.mxu1 %v10582_v8  ;;  %v9176_v14 = vld [vmem:[#allocation6 + $0x1e8] sm:$0xff]   ;;  %v9180_v24 = vld [vmem:[#allocation6 + $0x1f8] sm:$0xff]  }
 0x847   :  { %8610 = vmatprep.subr.bf16.mxu0 %v9271_v9  ;;  %8638 = vmatprep.subr.bf16.mxu1 %v9271_v9 }
 0x848   :  { %8612 = vmatprep.mubr.msk.bf16.mxu0 %vm9272_vm0, %v9271_v9  ;;  %8640 = vmatprep.mubr.msk.bf16.mxu1 %vm9272_vm0, %v9271_v9 }
 0x84a   :  { %8611 = vmatpush3.bf16.msra.mxu0 %v10584_v11  ;;  %8639 = vmatpush3.bf16.msra.mxu1 %v10584_v11 }
 0x84b   :  { %8616 = vmatprep.subr.bf16.mxu0 %v9271_v9  ;;  %8644 = vmatprep.subr.bf16.mxu1 %v9271_v9 }
 0x84d   :  { %8613 = vmatmul.mubr.msk.bf16.vlgmr.msra.gmra.mrb[128].mxu0 %vm5092_vm1, %v5690_v45  ;;  %8641 = vmatmul.mubr.msk.bf16.vlgmr.msra.gmra.mrb[24].mxu1 %vm5092_vm1, %v5840_v53 }
 0x84e   :  { %8617 = vmatpush3.bf16.msra.mxu0 %v9149_v26  ;;  %8645 = vmatpush3.bf16.msra.mxu1 %v9150_v1 }
 0x84f   :  { %8618 = vmatprep.subr.bf16.mxu0 %v9271_v9  ;;  %8646 = vmatprep.subr.bf16.mxu1 %v9271_v9 }
 0x850   :  { %8632 = vmatprep.mubr.msk.bf16.mxu0 %vm9272_vm0, %v9271_v9  ;;  %8660 = vmatprep.mubr.msk.bf16.mxu1 %vm9272_vm0, %v9271_v9 }
 0x852   :  { %8619 = vmatpush3.bf16.msra.mxu0 %v9151_v27  ;;  %8647 = vmatpush3.bf16.msra.mxu1 %v9152_v28 }
 0x853   :  { %8620 = vmatprep.subr.bf16.mxu0 %v9271_v9  ;;  %8648 = vmatprep.subr.bf16.mxu1 %v9271_v9 }
 0x856   :  { %8621 = vmatpush3.bf16.msra.mxu0 %v9153_v30  ;;  %8649 = vmatpush3.bf16.msra.mxu1 %v9154_v34 }
 0x857   :  { %8622 = vmatprep.subr.bf16.mxu0 %v9271_v9  ;;  %8650 = vmatprep.subr.bf16.mxu1 %v9271_v9 }
 0x85a   :  { %8623 = vmatpush3.bf16.msra.mxu0 %v9155_v2  ;;  %8651 = vmatpush3.bf16.msra.mxu1 %v9156_v3 }
 0x85b   :  { %8624 = vmatprep.subr.bf16.mxu0 %v9271_v9  ;;  %8652 = vmatprep.subr.bf16.mxu1 %v9271_v9 }
 0x85e   :  { %8625 = vmatpush3.bf16.msra.mxu0 %v9157_v35  ;;  %8653 = vmatpush3.bf16.msra.mxu1 %v9158_v36 }
 0x85f   :  { %8626 = vmatprep.subr.bf16.mxu0 %v9271_v9  ;;  %8654 = vmatprep.subr.bf16.mxu1 %v9271_v9 }
 0x862   :  { %8627 = vmatpush3.bf16.msra.mxu0 %v9159_v21  ;;  %8655 = vmatpush3.bf16.msra.mxu1 %v9160_v37 }
 0x863   :  { %8628 = vmatprep.subr.bf16.mxu0 %v9271_v9  ;;  %8656 = vmatprep.subr.bf16.mxu1 %v9271_v9 }
 0x866   :  { %8629 = vmatpush3.bf16.msra.mxu0 %v9161_v4  ;;  %8657 = vmatpush3.bf16.msra.mxu1 %v9162_v38 }
 0x867   :  { %8630 = vmatprep.subr.bf16.mxu0 %v9271_v9  ;;  %8658 = vmatprep.subr.bf16.mxu1 %v9271_v9 }
 0x86a   :  { %8631 = vmatpush3.bf16.msra.mxu0 %v9163_v39  ;;  %8659 = vmatpush3.bf16.msra.mxu1 %v9164_v40 }
 0x86b   :  { %8664 = vmatprep.subr.bf16.mxu0 %v9271_v9  ;;  %8692 = vmatprep.subr.bf16.mxu1 %v9271_v9 }
 0x918   :  { %v5533_v41 = vpop.f32.mrb[124].mxu0  ;;  %v5683_v43 = vpop.f32.mrb[20].mxu1 }
 0x919   :  { %v5539_v44 = vadd.f32 %v5533_v41, %v10662_v13  ;;  %v8578_v46 = vpop.f32.mrb[125].mxu0  ;;  %v8606_v47 = vpop.f32.mrb[21].mxu1  ;;  %v9167_v13 = vld [vmem:[#allocation6 + $0x188] sm:$0xff]   ;;  %v6290_v41 = vld [vmem:[%s10783_s4 + $0x20] sm:$0xf] }
 0x91a   :  { %v5536_v29 = vpop.f32.mrb[126].mxu0  ;;  %v5686_v32 = vpop.f32.mrb[22].mxu1  ;;  %v9185_v46 = vld [vmem:[#allocation6 + $0x220] sm:$0xff]   ;;  %v9186_v47 = vld [vmem:[#allocation6 + $0x228] sm:$0xff]  }
 0x91b   :  { %v10705_v48 = vadd.f32 %v5683_v43, %v5539_v44  ;;  %v8579_v51 = vpop.f32.mrb[127].mxu0  ;;  %v8607_v31 = vpop.f32.mrb[23].mxu1  ;;  %v9181_v43 = vld [vmem:[#allocation6 + $0x200] sm:$0xff]   ;;  %v9182_v44 = vld [vmem:[#allocation6 + $0x208] sm:$0xff]   ;;  %v9187_v29 = vld [vmem:[#allocation6 + $0x230] sm:$0xff]  }
 0x91c   :  { %v9188_v32 = vld [vmem:[#allocation6 + $0x238] sm:$0xff]  }
 0x920   :  { %v5728_v49 = vpop.f32.mrb[128].mxu0  ;;  %v5878_v54 = vpop.f32.mrb[24].mxu1 }
 0x921   :  { %v5734_v56 = vpack.c.bf16 %v5728_v49, %v5728_v49  ;;  %v5884_v55 = vpack.c.bf16 %v5878_v54, %v5878_v54  ;;  %v8614_v52 = vpop.f32.mrb[129].mxu0  ;;  %v8642_v58 = vpop.f32.mrb[25].mxu1 }
 0x922   :  { %v5731_v20 = vpop.f32.mrb[130].mxu0  ;;  %v5881_v59 = vpop.f32.mrb[26].mxu1 }
 0x923   :  { %v8615_v57 = vpop.f32.mrb[131].mxu0  ;;  %8633 = vmatmul.mubr.bf16.vlgmr.msra.gmra.mrb[132].mxu0 %v5734_v56  ;;  %8661 = vmatmul.mubr.bf16.vlgmr.msra.gmra.mrb[28].mxu1 %v5884_v55  ;;  %v8643_v60 = vpop.f32.mrb[27].mxu1 }
 0x924   :  { %8665 = vmatpush3.bf16.msra.mxu0 %v10582_v8  ;;  %8693 = vmatpush3.bf16.msra.mxu1 %v10582_v8 }
 0x925   :  { %8666 = vmatprep.subr.bf16.mxu0 %v9271_v9  ;;  %8694 = vmatprep.subr.bf16.mxu1 %v9271_v9 }
 0x926   :  { %8668 = vmatprep.mubr.msk.bf16.mxu0 %vm9272_vm0, %v9271_v9  ;;  %8696 = vmatprep.mubr.msk.bf16.mxu1 %vm9272_vm0, %v9271_v9 }
 0x928   :  { %8667 = vmatpush3.bf16.msra.mxu0 %v10584_v11  ;;  %8695 = vmatpush3.bf16.msra.mxu1 %v10584_v11 }
 0x929   :  { %8672 = vmatprep.subr.bf16.mxu0 %v9271_v9  ;;  %8700 = vmatprep.subr.bf16.mxu1 %v9271_v9 }
 0x92b   :  { %8669 = vmatmul.mubr.msk.bf16.vlgmr.msra.gmra.mrb[136].mxu0 %vm5092_vm1, %v5990_v10  ;;  %8697 = vmatmul.mubr.msk.bf16.vlgmr.msra.gmra.mrb[32].mxu1 %vm5092_vm1, %v6140_v61 }
 0x92c   :  { %8673 = vmatpush3.bf16.msra.mxu0 %v9165_v17  ;;  %8701 = vmatpush3.bf16.msra.mxu1 %v9166_v62 }
 0x92d   :  { %8674 = vmatprep.subr.bf16.mxu0 %v9271_v9  ;;  %8702 = vmatprep.subr.bf16.mxu1 %v9271_v9 }
 0x92e   :  { %8688 = vmatprep.mubr.msk.bf16.mxu0 %vm9272_vm0, %v9271_v9  ;;  %8716 = vmatprep.mubr.msk.bf16.mxu1 %vm9272_vm0, %v9271_v9 }
 0x930   :  { %8675 = vmatpush3.bf16.msra.mxu0 %v9167_v13  ;;  %8703 = vmatpush3.bf16.msra.mxu1 %v9168_v63 }
 0x931   :  { %8676 = vmatprep.subr.bf16.mxu0 %v9271_v9  ;;  %8704 = vmatprep.subr.bf16.mxu1 %v9271_v9 }
 0x934   :  { %8677 = vmatpush3.bf16.msra.mxu0 %v9169_v22  ;;  %8705 = vmatpush3.bf16.msra.mxu1 %v9170_v42 }
 0x935   :  { %8678 = vmatprep.subr.bf16.mxu0 %v9271_v9  ;;  %8706 = vmatprep.subr.bf16.mxu1 %v9271_v9 }
 0x938   :  { %8679 = vmatpush3.bf16.msra.mxu0 %v9171_v50  ;;  %8707 = vmatpush3.bf16.msra.mxu1 %v9172_v0 }
 0x939   :  { %8680 = vmatprep.subr.bf16.mxu0 %v9271_v9  ;;  %8708 = vmatprep.subr.bf16.mxu1 %v9271_v9 }
 0x93c   :  { %8681 = vmatpush3.bf16.msra.mxu0 %v9173_v5  ;;  %8709 = vmatpush3.bf16.msra.mxu1 %v9174_v6 }
 0x93d   :  { %8682 = vmatprep.subr.bf16.mxu0 %v9271_v9  ;;  %8710 = vmatprep.subr.bf16.mxu1 %v9271_v9 }
 0x940   :  { %8683 = vmatpush3.bf16.msra.mxu0 %v9175_v7  ;;  %8711 = vmatpush3.bf16.msra.mxu1 %v9176_v14 }
 0x941   :  { %8684 = vmatprep.subr.bf16.mxu0 %v9271_v9  ;;  %8712 = vmatprep.subr.bf16.mxu1 %v9271_v9 }
 0x944   :  { %8685 = vmatpush3.bf16.msra.mxu0 %v9177_v15  ;;  %8713 = vmatpush3.bf16.msra.mxu1 %v9178_v16 }
 0x945   :  { %8686 = vmatprep.subr.bf16.mxu0 %v9271_v9  ;;  %8714 = vmatprep.subr.bf16.mxu1 %v9271_v9 }
 0x948   :  { %8687 = vmatpush3.bf16.msra.mxu0 %v9179_v23  ;;  %8715 = vmatpush3.bf16.msra.mxu1 %v9180_v24 }
 0x949   :  { %8720 = vmatprep.subr.bf16.mxu0 %v9271_v9 }
 0x9f6   :  { %v5833_v25 = vpop.f32.mrb[132].mxu0  ;;  %v5983_v33 = vpop.f32.mrb[28].mxu1 }
 0x9f7   :  { %v5839_v45 = vadd.f32 %v5833_v25, %v10705_v48  ;;  %v8634_v53 = vpop.f32.mrb[133].mxu0  ;;  %v8662_v26 = vpop.f32.mrb[29].mxu1 }
 0x9f8   :  { %v5836_v1 = vpop.f32.mrb[134].mxu0  ;;  %v5986_v27 = vpop.f32.mrb[30].mxu1 }
 0x9f9   :  { %v5989_v28 = vadd.f32 %v5983_v33, %v5839_v45  ;;  %v8635_v30 = vpop.f32.mrb[135].mxu0  ;;  %v8663_v34 = vpop.f32.mrb[31].mxu1 }
 0x9fe   :  { %v6028_v2 = vpop.f32.mrb[136].mxu0  ;;  %v6178_v3 = vpop.f32.mrb[32].mxu1 }
 0x9ff   :  { %v6034_v35 = vpack.c.bf16 %v6028_v2, %v6028_v2  ;;  %v8670_v36 = vpop.f32.mrb[137].mxu0  ;;  %v6184_v21 = vpack.c.bf16 %v6178_v3, %v6178_v3  ;;  %v8698_v37 = vpop.f32.mrb[33].mxu1 }
 0xa00   :  { %v6031_v4 = vpop.f32.mrb[138].mxu0  ;;  %v6181_v38 = vpop.f32.mrb[34].mxu1 }
 0xa01   :  { %v8671_v39 = vpop.f32.mrb[139].mxu0  ;;  %8689 = vmatmul.mubr.bf16.vlgmr.msra.gmra.mrb[140].mxu0 %v6034_v35  ;;  %8717 = vmatmul.mubr.bf16.vlgmr.msra.gmra.mrb[36].mxu1 %v6184_v21  ;;  %v8699_v40 = vpop.f32.mrb[35].mxu1  ;;  %v6478_v21 = vsub.s32 7, %v9389_v18  ;;  %v69_v4 = vld [vmem:[%s10785_s6 + $0x8] sm:$0xff] }
 0xa02   :  { %8721 = vmatpush3.bf16.msra.mxu0 %v10582_v8  ;;  %8724 = vmatprep.mubr.msk.bf16.mxu0 %vm9272_vm0, %v9271_v9  ;;  %v9183_v8 = vld [vmem:[#allocation6 + $0x210] sm:$0xff]  }
 0xa03   :  { %8722 = vmatprep.subr.bf16.mxu0 %v9271_v9 }
 0xa06   :  { %8723 = vmatpush3.bf16.msra.mxu0 %v10584_v11  ;;  %v9184_v11 = vld [vmem:[#allocation6 + $0x218] sm:$0xff]  }
 0xa07   :  { %8728 = vmatprep.subr.bf16.mxu0 %v9271_v9 }
 0xa09   :  { %8725 = vmatmul.mubr.msk.bf16.vlgmr.msra.gmra.mrb[144].mxu0 %vm5092_vm1, %v6290_v41 }
 0xa0a   :  { %8729 = vmatpush3.bf16.msra.mxu0 %v9181_v43  ;;  %8744 = vmatprep.mubr.msk.bf16.mxu0 %vm9272_vm0, %v9271_v9 }
 0xa0b   :  { %8730 = vmatprep.subr.bf16.mxu0 %v9271_v9 }
 0xa0e   :  { %8731 = vmatpush3.bf16.msra.mxu0 %v9182_v44 }
 0xa0f   :  { %8732 = vmatprep.subr.bf16.mxu0 %v9271_v9 }
 0xa12   :  { %8733 = vmatpush3.bf16.msra.mxu0 %v9183_v8 }
 0xa13   :  { %8734 = vmatprep.subr.bf16.mxu0 %v9271_v9 }
 0xa16   :  { %8735 = vmatpush3.bf16.msra.mxu0 %v9184_v11 }
 0xa17   :  { %8736 = vmatprep.subr.bf16.mxu0 %v9271_v9 }
 0xa1a   :  { %8737 = vmatpush3.bf16.msra.mxu0 %v9185_v46 }
 0xa1b   :  { %8738 = vmatprep.subr.bf16.mxu0 %v9271_v9 }
 0xa1e   :  { %8739 = vmatpush3.bf16.msra.mxu0 %v9186_v47 }
 0xa1f   :  { %8740 = vmatprep.subr.bf16.mxu0 %v9271_v9 }
 0xa22   :  { %8741 = vmatpush3.bf16.msra.mxu0 %v9187_v29 }
 0xa23   :  { %8742 = vmatprep.subr.bf16.mxu0 %v9271_v9  ;;  %v6442_v9 = vsub.s32 6, %v9389_v18 }
 0xa25   :  { %v6443_v17 = vrot.slane %v10575_v12, %v6442_v9 }
 0xa26   :  { %8743 = vmatpush3.bf16.msra.mxu0 %v9188_v32 }
 0xad4   :  { %v6133_v48 = vpop.f32.mrb[140].mxu0  ;;  %v6283_v51 = vpop.f32.mrb[36].mxu1 }
 0xad5   :  { %v6139_v31 = vadd.f32 %v6133_v48, %v5989_v28  ;;  %v8690_v49 = vpop.f32.mrb[141].mxu0  ;;  %v8718_v54 = vpop.f32.mrb[37].mxu1 }
 0xad6   :  { %v6136_v56 = vpop.f32.mrb[142].mxu0  ;;  %v6286_v55 = vpop.f32.mrb[38].mxu1 }
 0xad7   :  { %v6289_v52 = vadd.f32 %v6283_v51, %v6139_v31  ;;  %v8691_v58 = vpop.f32.mrb[143].mxu0  ;;  %v8719_v20 = vpop.f32.mrb[39].mxu1 }
 0xadc   :  { %v6328_v59 = vpop.f32.mrb[144].mxu0 }
 0xadd   :  { %v6334_v57 = vpack.c.bf16 %v6328_v59, %v6328_v59  ;;  %v8726_v60 = vpop.f32.mrb[145].mxu0 }
 0xade   :  { %v6331_v10 = vpop.f32.mrb[146].mxu0 }
 0xadf   :  { %v8727_v61 = vpop.f32.mrb[147].mxu0  ;;  %8745 = vmatmul.mubr.bf16.vlgmr.msra.gmra.mrb[148].mxu0 %v6334_v57 }
 0xbb2   :  { %v6433_v62 = vpop.f32.mrb[148].mxu0 }
 0xbb3   :  { %v6439_v13 = vadd.f32 %v6433_v62, %v6289_v52  ;;  %v8746_v63 = vpop.f32.mrb[149].mxu0 }
 0xbb4   :  { %v6436_v22 = vpop.f32.mrb[150].mxu0 }
 0xbb5   :  { %v6444_v42 = vadd.f32 %v6443_v17, %v6439_v13  ;;  %v8747_v50 = vpop.f32.mrb[151].mxu0 }
 0xbb7   :  { %v6445_v0 = vmax.f32 %v6444_v42, 0.0 }
 0xbb9   :  { %v6449_v5 = vsel %vm6448_vm2, %v6445_v0, 0.0 }
 0xbba   :  { %v6450_v6 = vrot.slane %v6449_v5, 4  ;;  %v6457_v7 = vmul.f32 %v6449_v5, %v6449_v5 }
 0xbbc   :  { %v6451_v14 = vadd.f32 %v6450_v6, %v6449_v5  ;;  %v6458_v15 = vrot.slane %v6457_v7, 4 }
 0xbbe   :  { %v6452_v16 = vrot.slane %v6451_v14, 2  ;;  %v6459_v23 = vadd.f32 %v6458_v15, %v6457_v7 }
 0xbc0   :  { %v6453_v24 = vadd.f32 %v6452_v16, %v6451_v14  ;;  %v6460_v25 = vrot.slane %v6459_v23, 2 }
 0xbc2   :  { %v6454_v33 = vrot.slane %v6453_v24, 1  ;;  %v6461_v45 = vadd.f32 %v6460_v25, %v6459_v23 }
 0xbc4   :  { %v6455_v53 = vadd.f32 %v6454_v33, %v6453_v24  ;;  %v6462_v26 = vrot.slane %v6461_v45, 1 }
 0xbc6   :  { %v6456_v1 = vmul.f32 0.5, %v6455_v53  ;;  %v6463_v27 = vadd.f32 %v6462_v26, %v6461_v45 }
 0xbc8   :  { %v6464_v28 = vmul.f32 0.5, %v6463_v27  ;;  %v6465_v30 = vmul.f32 %v6456_v1, %v6456_v1 }
 0xbca   :  { %v6466_v34 = vsub.f32 %v6464_v28, %v6465_v30 }
 0xbcc   :  { %v6467_v2 = vmax.f32 %v6466_v34, 0.0 }
 0xbce   :  { %v6468_v3 = vadd.f32 1e-05, %v6467_v2 }
 0xbd0   :  { %9193 = vrsqrt.f32 %v6468_v3 }
 0xbda   :  { %v9194_v35 = vpop.eup %9193 }
 0xbdb   :  { %v6470_v36 = vmul.f32 %v10575_v12, %v9194_v35 }
 0xbdd   :  { %v6471_v37 = vmul.f32 %v6470_v36, %v6456_v1  ;;  %v6479_v39 = vrot.slane %v6470_v36, %v6478_v21 }
 0xbdf   :  { %v6473_v38 = vrot.slane %v6471_v37, 7  ;;  %v6480_v41 = vmul.f32 %v6479_v39, %v6445_v0 }
 0xbe1   :  { %v6475_v40 = vsub.f32 %v69_v4, %v6473_v38 }
 0xbe3   :  { %v6484_v43 = vrot.slane %v6475_v40, %v104_v19 }
 0xbe5   :  { %v6485_v44 = vadd.f32 %v6484_v43, %v6480_v41 }
 0xbe7   :  { %6486 = vst [vmem:[%s10786_s7] sm:$0xff] %v6485_v44 }
 0xbe8   :  { %6491 = vsyncpa [#allocation3], 1 }
 0xbe9   :  { %6492 = vsyncpa [#allocation5], 1 }

</bundles_post_ra>
